<compile_context>
chip_gen: v6e
topology: v6e:2x2x1
jax: 0.10.0
libtpu: 0.0.40
codegen_flags: <defaults>
</compile_context>

<pallas_src>
import math
import numpy as np
import jax
import jax.numpy as jnp
from jax.experimental import pallas as pl
from jax.experimental.pallas import tpu as pltpu

# ---------------------------------------------------------------- constants
BATCH = 2
SEQ = 8                    # == max_seq_len (RoPE table broadcast requires S == max_seq_len)
HIDDEN = 48                # must be divisible by 12
NUM_HEADS = 12
D_QK = 2 * HIDDEN // NUM_HEADS        # attention_head_size = (2H)/12 = 8
D_V = HIDDEN // NUM_HEADS             # value head size = H/12 = 4
AH = NUM_HEADS * D_QK                 # all_head_size = 2H = 96
INTER = 4 * HIDDEN                    # 192
BS = BATCH * SEQ                      # 16 stacked rows
EPS = 1e-12


# ---------------------------------------------------------------- kernel
def is_block_kernel(xi_ref, xs_ref, mb_ref,
                    proj_ref, ffin_ref, main_ref, attn_ref, vmask_ref,
                    out_ref):
    f32 = jnp.float32
    x_i = xi_ref[...]                         # [BS, H]  intent rows (b*S + s)
    x_s = xs_ref[...]                         # [BS, H]  slot rows
    mask_bias = mb_ref[...]                   # [B, AH]  (1-mask)*-1e4, tiled per head

    mul_a = attn_ref[0:BS, :]                 # [BS, AH] [cos|sin] per head, per row
    mul_b = attn_ref[BS:2 * BS, :]            # [BS, AH] [-sin|cos]
    kmask = attn_ref[2 * BS:2 * BS + AH, :]   # [AH, AH] I_12 (x) ones(S, D_QK)
    vmask = vmask_ref[...]                    # [AH, H]  I_12 (x) ones(S, D_V)

    def project(x, z):
        # one wide matmul per stream: columns = [q_even | q_odd | k_even | k_odd | value]
        p = (jnp.dot(x, proj_ref[z, 0:HIDDEN, :], preferred_element_type=f32)
             + proj_ref[z, HIDDEN:HIDDEN + 1, :])                        # [BS, 432]
        q = p[:, 0:AH] * mul_a + p[:, AH:2 * AH] * mul_b                 # RoPE'd, pre-scaled
        k = p[:, 2 * AH:3 * AH] * mul_a + p[:, 3 * AH:4 * AH] * mul_b    # RoPE'd
        v = p[:, 4 * AH:4 * AH + HIDDEN]
        return q, k, v

    q, ks, vs = project(x_i, 0)     # intent input -> query, key_slot, value_slot
    qs, k, v = project(x_s, 1)      # slot input   -> query_slot, key, value

    trans_b = (((1,), (1,)), ((), ()))   # contract last dims of both (rhs transposed)

    def attend(qg, kg, vg, mb):
        # Kbd[(h,s), (h',d)] = kg[s, h'*D+d] * (h == h')   -> per-head scores in one dot
        kbd = jnp.concatenate([kg] * NUM_HEADS, axis=0) * kmask               # [AH, AH]
        s = jax.lax.dot_general(qg, kbd, trans_b, preferred_element_type=f32) + mb
        e = jnp.exp(s - jnp.max(s, axis=-1, keepdims=True))                   # [S, AH]
        # Vbd[(h,s), (h',dv)] = vg[s, h'*Dv+dv] * (h == h')
        vbd = jnp.concatenate([vg] * NUM_HEADS, axis=0) * vmask               # [AH, H]
        num = jnp.dot(e, vbd, preferred_element_type=f32)                     # [S, H]
        den = jnp.dot(e, vmask, preferred_element_type=f32)                   # per-head sums
        return num / den                                                      # softmax @ V

    ctx_i, ctx_s = [], []
    for b in range(BATCH):
        r = slice(b * SEQ, (b + 1) * SEQ)
        mb = mask_bias[b:b + 1, :]
        ctx_i.append(attend(q[r], k[r], v[r], mb))     # intent ctx: key/value from slot
        ctx_s.append(attend(qs[r], ks[r], vs[r], mb))  # slot ctx:   key/value from intent
    ctx_i = jnp.concatenate(ctx_i, axis=0)             # [BS, H], head-ordered
    ctx_s = jnp.concatenate(ctx_s, axis=0)

    def layernorm(x, g, be):
        u = jnp.mean(x, axis=-1, keepdims=True)
        var = jnp.mean((x - u) * (x - u), axis=-1, keepdims=True)
        return g * (x - u) * jax.lax.rsqrt(var + EPS) + be

    def self_out_ff(ctx, x_res, z):
        vecs = main_ref[z, HIDDEN + INTER:HIDDEN + INTER + 6, :]   # 6 bias/LN rows
        # SelfOutput: dense + residual + LayerNorm
        h1 = layernorm(jnp.dot(ctx, main_ref[z, 0:HIDDEN, :], preferred_element_type=f32)
                       + vecs[0:1] + x_res, vecs[1:2], vecs[2:3])
        # Feed-forward: dense -> ReLU -> dense + residual + LayerNorm
        mid = jnp.maximum(jnp.dot(h1, ffin_ref[z, 0:HIDDEN, :], preferred_element_type=f32)
                          + ffin_ref[z, HIDDEN:HIDDEN + 1, :], 0.0)
        return layernorm(jnp.dot(mid, main_ref[z, HIDDEN:HIDDEN + INTER, :],
                                 preferred_element_type=f32)
                         + vecs[3:4] + h1, vecs[4:5], vecs[5:6])

    h_i = self_out_ff(ctx_i, x_i, 0)    # I_Out / I_Feed_forward
    h_s = self_out_ff(ctx_s, x_s, 1)    # S_Out / S_Feed_forward
    out_ref[...] = jnp.concatenate([h_i, h_s], axis=-1)    # [BS, 2H] lane-dense output


# ---------------------------------------------------------------- wrapper
@jax.jit
def is_block_forward(intent, slot, mask, packed):
    B, S, H = intent.shape
    x_i = intent.reshape(B * S, H)
    x_s = slot.reshape(B * S, H)
    # additive mask bias, tiled once per head to match the [S, nh*S] score layout
    mask_bias = jnp.tile((1.0 - mask.astype(jnp.float32)) * (-10000.0), (1, NUM_HEADS))

    vmem = pltpu.MemorySpace.VMEM
    out = pl.pallas_call(
        is_block_kernel,
        out_shape=jax.ShapeDtypeStruct((B * S, 2 * H), jnp.float32),
        in_specs=[pl.BlockSpec(memory_space=vmem)] * 8,
        out_specs=pl.BlockSpec(memory_space=vmem),
    )(x_i, x_s, mask_bias,
      packed['proj'], packed['ffin'], packed['main'], packed['attn'], packed['vmask'])

    h_intent = out[:, :H].reshape(B, S, H)
    h_slot = out[:, H:].reshape(B, S, H)
    return h_intent, h_slot


# ---------------------------------------------------------------- params
def init_params(key):
    H, S, nh, d, dv = HIDDEN, SEQ, NUM_HEADS, D_QK, D_V
    half = d // 2
    keys = iter(jax.random.split(key, 64))

    def w(i, o):
        return jax.random.normal(next(keys), (i, o), jnp.float32) * 0.05

    def b(o):
        return jax.random.normal(next(keys), (o,), jnp.float32) * 0.05

    def ln():
        g = 1.0 + 0.05 * jax.random.normal(next(keys), (H,), jnp.float32)
        be = 0.05 * jax.random.normal(next(keys), (H,), jnp.float32)
        return g, be

    raw = {}
    for name, o in [('q', AH), ('qs', AH), ('k', AH), ('ks', AH), ('v', H), ('vs', H)]:
        raw['w_' + name] = w(H, o)
        raw['b_' + name] = b(o)
    for name in ['iout', 'sout']:
        raw['w_' + name] = w(H, H)
        raw['b_' + name] = b(H)
        raw['g_' + name], raw['be_' + name] = ln()
    for name in ['iff', 'sff']:
        raw['w_' + name + 'in'] = w(H, INTER)
        raw['b_' + name + 'in'] = b(INTER)
        raw['w_' + name + 'out'] = w(INTER, H)
        raw['b_' + name + 'out'] = b(H)
        raw['g_' + name], raw['be_' + name] = ln()

    # RoFormer sinusoidal table (even/odd frequencies coincide in the torch code)
    pos = np.arange(S, dtype=np.float64)[:, None]
    inv_freq = 1.0 / np.power(10000.0, 2.0 * np.arange(half) / d)
    ang = pos * inv_freq[None, :]
    sin = np.sin(ang).astype(np.float32)   # [S, half]
    cos = np.cos(ang).astype(np.float32)   # [S, half]
    raw['sin'], raw['cos'] = jnp.asarray(sin), jnp.asarray(cos)

    # Fold the interleaved even/odd gather of roEmb into the Q/K weights:
    #   out[j]      = x[2j]*cos_j   - x[2j+1]*sin_j      (j < half)
    #   out[half+m] = x[2m]*sin_m   + x[2m+1]*cos_m
    # => idx_a = 2*(j%half) paired with mul_a=[cos,sin]; idx_b = 2*(j%half)+1 with [-sin,cos]
    j = np.arange(d)
    idx_a = np.repeat(np.arange(nh) * d, d) + np.tile(2 * (j % half), nh)
    idx_b = np.repeat(np.arange(nh) * d, d) + np.tile(2 * (j % half) + 1, nh)
    scale = 1.0 / math.sqrt(d)   # attention scale folded into the query blocks

    def rope_split(W, B_, s=1.0):
        Wn, Bn = np.asarray(W), np.asarray(B_)
        return s * Wn[:, idx_a], s * Wn[:, idx_b], s * Bn[idx_a], s * Bn[idx_b]

    qa, qb, qba, qbb = rope_split(raw['w_q'], raw['b_q'], scale)
    ksa, ksb, ksba, ksbb = rope_split(raw['w_ks'], raw['b_ks'])
    qsa, qsb, qsba, qsbb = rope_split(raw['w_qs'], raw['b_qs'], scale)
    ka, kb, kba, kbb = rope_split(raw['w_k'], raw['b_k'])

    # stream 0 (intent input): q(rope,scaled) | key_slot(rope) | value_slot
    W_i = np.concatenate([qa, qb, ksa, ksb, np.asarray(raw['w_vs'])], axis=1)   # [48, 432]
    B_i = np.concatenate([qba, qbb, ksba, ksbb, np.asarray(raw['b_vs'])], axis=0)
    # stream 1 (slot input): q_slot(rope,scaled) | key(rope) | value
    W_s = np.concatenate([qsa, qsb, ka, kb, np.asarray(raw['w_v'])], axis=1)
    B_s = np.concatenate([qsba, qsbb, kba, kbb, np.asarray(raw['b_v'])], axis=0)
    proj = np.stack([np.concatenate([W_i, B_i[None, :]], axis=0),
                     np.concatenate([W_s, B_s[None, :]], axis=0)])              # [2, 49, 432]

    # attention constants: RoPE multipliers per stacked B*S row + 0/1 block-diag masks
    mul_a = np.tile(np.tile(np.concatenate([cos, sin], axis=-1), (1, nh)), (BATCH, 1))
    mul_b = np.tile(np.tile(np.concatenate([-sin, cos], axis=-1), (1, nh)), (BATCH, 1))
    kmask = np.kron(np.eye(nh), np.ones((S, d))).astype(np.float32)             # [96, 96]
    vmask = np.kron(np.eye(nh), np.ones((S, dv))).astype(np.float32)            # [96, 48]
    attn = np.concatenate([mul_a, mul_b, kmask], axis=0).astype(np.float32)     # [128, 96]

    def ffin_stream(pfx):
        return np.concatenate([np.asarray(raw['w_' + pfx + 'in']),
                               np.asarray(raw['b_' + pfx + 'in'])[None, :]], axis=0)  # [49,192]

    def main_stream(o, f):
        rows = [np.asarray(raw['w_' + o]),                 # out_w    rows   0: 48
                np.asarray(raw['w_' + f + 'out'])]         # ff_out_w rows  48:240
        for nm in ['b_' + o, 'g_' + o, 'be_' + o, 'b_' + f + 'out', 'g_' + f, 'be_' + f]:
            rows.append(np.asarray(raw[nm])[None, :])      # 6 bias/LN rows 240:246
        return np.concatenate(rows, axis=0)                # [246, 48]

    packed = {
        'proj': jnp.asarray(proj, jnp.float32),
        'ffin': jnp.asarray(np.stack([ffin_stream('iff'), ffin_stream('sff')]), jnp.float32),
        'main': jnp.asarray(np.stack([main_stream('iout', 'iff'),
                                      main_stream('sout', 'sff')]), jnp.float32),
        'attn': jnp.asarray(attn, jnp.float32),
        'vmask': jnp.asarray(vmask, jnp.float32),
    }
    return raw, packed


# ---------------------------------------------------------------- pure-JAX reference
def reference_forward(p, intent, slot, mask):
    B, S, H = intent.shape
    nh, d, dv = NUM_HEADS, D_QK, D_V
    sin, cos = p['sin'], p['cos']

    def lin(x, w_, b_):
        return x @ w_ + b_

    def heads(x, hd):
        return x.reshape(B, S, nh, hd).transpose(0, 2, 1, 3)

    am = (1.0 - mask)[:, None, None, :] * -10000.0
    q = heads(lin(intent, p['w_q'], p['b_q']), d)
    k = heads(lin(slot, p['w_k'], p['b_k']), d)
    v = heads(lin(slot, p['w_v'], p['b_v']), dv)
    qs = heads(lin(slot, p['w_qs'], p['b_qs']), d)
    ks = heads(lin(intent, p['w_ks'], p['b_ks']), d)
    vs = heads(lin(intent, p['w_vs'], p['b_vs']), dv)

    def roemb(x):
        x1, x2 = x[..., 0::2], x[..., 1::2]
        return jnp.concatenate([x1 * cos - x2 * sin, x2 * cos + x1 * sin], axis=-1)

    q, qs, k, ks = roemb(q), roemb(qs), roemb(k), roemb(ks)
    sc_i = q @ jnp.swapaxes(k, -1, -2) / math.sqrt(d) + am
    sc_s = qs @ jnp.swapaxes(ks, -1, -2) / math.sqrt(d) + am
    p_i = jax.nn.softmax(sc_i, -1)
    p_s = jax.nn.softmax(sc_s, -1)
    ctx_i = (p_i @ v).transpose(0, 2, 1, 3).reshape(B, S, H)
    ctx_s = (p_s @ vs).transpose(0, 2, 1, 3).reshape(B, S, H)

    def ln(x, g, b_):
        u = x.mean(-1, keepdims=True)
        s = ((x - u) ** 2).mean(-1, keepdims=True)
        return g * (x - u) / jnp.sqrt(s + EPS) + b_

    h_i = ln(lin(ctx_i, p['w_iout'], p['b_iout']) + intent, p['g_iout'], p['be_iout'])
    h_s = ln(lin(ctx_s, p['w_sout'], p['b_sout']) + slot, p['g_sout'], p['be_sout'])

    def ff(x, win, bin_, wout, bout, g, be):
        mid = jax.nn.relu(lin(x, win, bin_))
        return ln(lin(mid, wout, bout) + x, g, be)

    h_i = ff(h_i, p['w_iffin'], p['b_iffin'], p['w_iffout'], p['b_iffout'], p['g_iff'], p['be_iff'])
    h_s = ff(h_s, p['w_sffin'], p['b_sffin'], p['w_sffout'], p['b_sffout'], p['g_sff'], p['be_sff'])
    return h_i, h_s


# ---------------------------------------------------------------- main
if __name__ == "__main__":
    key = jax.random.PRNGKey(0)
    k_p, k_i, k_s = jax.random.split(key, 3)
    raw, packed = init_params(k_p)

    intent = jax.random.normal(k_i, (BATCH, SEQ, HIDDEN), jnp.float32)
    slot = jax.random.normal(k_s, (BATCH, SEQ, HIDDEN), jnp.float32)
    lengths = np.array([SEQ, SEQ - 2])
    mask = jnp.asarray((np.arange(SEQ)[None, :] < lengths[:, None]).astype(np.float32))

    h_intent, h_slot = is_block_forward(intent, slot, mask, packed)
    jax.block_until_ready((h_intent, h_slot))

    with jax.default_matmul_precision("highest"):
        ref_i, ref_s = reference_forward(raw, intent, slot, mask)
    jax.block_until_ready((ref_i, ref_s))

    # Kernel matmuls run at MXU-native DEFAULT precision (per the perf review); the
    # baseline is HIGHEST f32, so the tolerance covers single-pass bf16 rounding
    # propagated through three matmul layers (values are O(1) after LayerNorm).
    np.testing.assert_allclose(np.asarray(h_intent), np.asarray(ref_i), rtol=5e-3, atol=5e-3)
    np.testing.assert_allclose(np.asarray(h_slot), np.asarray(ref_s), rtol=5e-3, atol=5e-3)

    print("KERNEL_OK")
</pallas_src>

<mosaic_0001>
module attributes {stable_mosaic.version = 11 : i64} {
  func.func @is_block_kernel(%arg0: memref<16x48xf32, #tpu.memory_space<vmem>>, %arg1: memref<16x48xf32, #tpu.memory_space<vmem>>, %arg2: memref<2x96xf32, #tpu.memory_space<vmem>>, %arg3: memref<2x49x432xf32, #tpu.memory_space<vmem>>, %arg4: memref<2x49x192xf32, #tpu.memory_space<vmem>>, %arg5: memref<2x246x48xf32, #tpu.memory_space<vmem>>, %arg6: memref<128x96xf32, #tpu.memory_space<vmem>>, %arg7: memref<96x48xf32, #tpu.memory_space<vmem>>, %arg8: memref<16x96xf32, #tpu.memory_space<vmem>>) attributes {dimension_semantics = [], scalar_prefetch = 0 : i64, scratch_operands = 0 : i64, tpu.core_type = #tpu.core_type<tc>} {
    %c0 = arith.constant 0 : index
    %c0_0 = arith.constant 0 : index
    %0 = vector.load %arg0[%c0, %c0_0] : memref<16x48xf32, #tpu.memory_space<vmem>>, vector<16x48xf32>
    %c0_1 = arith.constant 0 : index
    %c0_2 = arith.constant 0 : index
    %1 = vector.load %arg1[%c0_1, %c0_2] : memref<16x48xf32, #tpu.memory_space<vmem>>, vector<16x48xf32>
    %c0_3 = arith.constant 0 : index
    %c0_4 = arith.constant 0 : index
    %2 = vector.load %arg2[%c0_3, %c0_4] : memref<2x96xf32, #tpu.memory_space<vmem>>, vector<2x96xf32>
    %c0_5 = arith.constant 0 : index
    %c0_6 = arith.constant 0 : index
    %3 = vector.load %arg6[%c0_5, %c0_6] : memref<128x96xf32, #tpu.memory_space<vmem>>, vector<16x96xf32>
    %c16 = arith.constant 16 : index
    %c0_7 = arith.constant 0 : index
    %4 = vector.load %arg6[%c16, %c0_7] : memref<128x96xf32, #tpu.memory_space<vmem>>, vector<16x96xf32>
    %c32 = arith.constant 32 : index
    %c0_8 = arith.constant 0 : index
    %5 = vector.load %arg6[%c32, %c0_8] : memref<128x96xf32, #tpu.memory_space<vmem>>, vector<96x96xf32>
    %c0_9 = arith.constant 0 : index
    %c0_10 = arith.constant 0 : index
    %6 = vector.load %arg7[%c0_9, %c0_10] : memref<96x48xf32, #tpu.memory_space<vmem>>, vector<96x48xf32>
    %c0_11 = arith.constant 0 : index
    %c0_12 = arith.constant 0 : index
    %c0_13 = arith.constant 0 : index
    %7 = vector.load %arg3[%c0_11, %c0_12, %c0_13] : memref<2x49x432xf32, #tpu.memory_space<vmem>>, vector<1x48x432xf32>
    %8 = vector.shape_cast %7 : vector<1x48x432xf32> to vector<48x432xf32>
    %cst = arith.constant dense<0.000000e+00> : vector<16x432xf32>
    %9 = tpu.matmul %0, %8, %cst {dimension_numbers = #tpu.dot_dimension_numbers<[1], [0], [0], [1], [0, 0, 1, 1], [], []>} : vector<16x48xf32>, vector<48x432xf32>, vector<16x432xf32> -> vector<16x432xf32>
    %c0_14 = arith.constant 0 : index
    %c48 = arith.constant 48 : index
    %c0_15 = arith.constant 0 : index
    %10 = vector.load %arg3[%c0_14, %c48, %c0_15] : memref<2x49x432xf32, #tpu.memory_space<vmem>>, vector<1x1x432xf32>
    %11 = vector.shape_cast %10 : vector<1x1x432xf32> to vector<1x432xf32>
    %12 = vector.broadcast %11 : vector<1x432xf32> to vector<16x432xf32>
    %13 = arith.addf %9, %12 : vector<16x432xf32>
    %14 = vector.extract_strided_slice %13 {offsets = [0, 0], sizes = [16, 96], strides = [1, 1]} : vector<16x432xf32> to vector<16x96xf32>
    %15 = arith.mulf %14, %3 : vector<16x96xf32>
    %16 = vector.extract_strided_slice %13 {offsets = [0, 96], sizes = [16, 96], strides = [1, 1]} : vector<16x432xf32> to vector<16x96xf32>
    %17 = arith.mulf %16, %4 : vector<16x96xf32>
    %18 = arith.addf %15, %17 : vector<16x96xf32>
    %19 = vector.extract_strided_slice %13 {offsets = [0, 192], sizes = [16, 96], strides = [1, 1]} : vector<16x432xf32> to vector<16x96xf32>
    %20 = arith.mulf %19, %3 : vector<16x96xf32>
    %21 = vector.extract_strided_slice %13 {offsets = [0, 288], sizes = [16, 96], strides = [1, 1]} : vector<16x432xf32> to vector<16x96xf32>
    %22 = arith.mulf %21, %4 : vector<16x96xf32>
    %23 = arith.addf %20, %22 : vector<16x96xf32>
    %24 = vector.extract_strided_slice %13 {offsets = [0, 384], sizes = [16, 48], strides = [1, 1]} : vector<16x432xf32> to vector<16x48xf32>
    %c1 = arith.constant 1 : index
    %c0_16 = arith.constant 0 : index
    %c0_17 = arith.constant 0 : index
    %25 = vector.load %arg3[%c1, %c0_16, %c0_17] : memref<2x49x432xf32, #tpu.memory_space<vmem>>, vector<1x48x432xf32>
    %26 = vector.shape_cast %25 : vector<1x48x432xf32> to vector<48x432xf32>
    %cst_18 = arith.constant dense<0.000000e+00> : vector<16x432xf32>
    %27 = tpu.matmul %1, %26, %cst_18 {dimension_numbers = #tpu.dot_dimension_numbers<[1], [0], [0], [1], [0, 0, 1, 1], [], []>} : vector<16x48xf32>, vector<48x432xf32>, vector<16x432xf32> -> vector<16x432xf32>
    %c1_19 = arith.constant 1 : index
    %c48_20 = arith.constant 48 : index
    %c0_21 = arith.constant 0 : index
    %28 = vector.load %arg3[%c1_19, %c48_20, %c0_21] : memref<2x49x432xf32, #tpu.memory_space<vmem>>, vector<1x1x432xf32>
    %29 = vector.shape_cast %28 : vector<1x1x432xf32> to vector<1x432xf32>
    %30 = vector.broadcast %29 : vector<1x432xf32> to vector<16x432xf32>
    %31 = arith.addf %27, %30 : vector<16x432xf32>
    %32 = vector.extract_strided_slice %31 {offsets = [0, 0], sizes = [16, 96], strides = [1, 1]} : vector<16x432xf32> to vector<16x96xf32>
    %33 = arith.mulf %32, %3 : vector<16x96xf32>
    %34 = vector.extract_strided_slice %31 {offsets = [0, 96], sizes = [16, 96], strides = [1, 1]} : vector<16x432xf32> to vector<16x96xf32>
    %35 = arith.mulf %34, %4 : vector<16x96xf32>
    %36 = arith.addf %33, %35 : vector<16x96xf32>
    %37 = vector.extract_strided_slice %31 {offsets = [0, 192], sizes = [16, 96], strides = [1, 1]} : vector<16x432xf32> to vector<16x96xf32>
    %38 = arith.mulf %37, %3 : vector<16x96xf32>
    %39 = vector.extract_strided_slice %31 {offsets = [0, 288], sizes = [16, 96], strides = [1, 1]} : vector<16x432xf32> to vector<16x96xf32>
    %40 = arith.mulf %39, %4 : vector<16x96xf32>
    %41 = arith.addf %38, %40 : vector<16x96xf32>
    %42 = vector.extract_strided_slice %31 {offsets = [0, 384], sizes = [16, 48], strides = [1, 1]} : vector<16x432xf32> to vector<16x48xf32>
    %43 = vector.extract_strided_slice %2 {offsets = [0, 0], sizes = [1, 96], strides = [1, 1]} : vector<2x96xf32> to vector<1x96xf32>
    %44 = vector.extract_strided_slice %18 {offsets = [0, 0], sizes = [8, 96], strides = [1, 1]} : vector<16x96xf32> to vector<8x96xf32>
    %45 = vector.extract_strided_slice %41 {offsets = [0, 0], sizes = [8, 96], strides = [1, 1]} : vector<16x96xf32> to vector<8x96xf32>
    %46 = vector.extract_strided_slice %42 {offsets = [0, 0], sizes = [8, 48], strides = [1, 1]} : vector<16x48xf32> to vector<8x48xf32>
    %47 = tpu.concatenate %45, %45, %45, %45, %45, %45, %45, %45, %45, %45, %45, %45 in 0 : vector<8x96xf32>, vector<8x96xf32>, vector<8x96xf32>, vector<8x96xf32>, vector<8x96xf32>, vector<8x96xf32>, vector<8x96xf32>, vector<8x96xf32>, vector<8x96xf32>, vector<8x96xf32>, vector<8x96xf32>, vector<8x96xf32> -> vector<96x96xf32>
    %48 = arith.mulf %47, %5 : vector<96x96xf32>
    %cst_22 = arith.constant dense<0.000000e+00> : vector<8x96xf32>
    %49 = tpu.matmul %44, %48, %cst_22 {dimension_numbers = #tpu.dot_dimension_numbers<[1], [1], [0], [0], [0, 0, 1, 0], [], []>} : vector<8x96xf32>, vector<96x96xf32>, vector<8x96xf32> -> vector<8x96xf32>
    %50 = vector.broadcast %43 : vector<1x96xf32> to vector<8x96xf32>
    %51 = arith.addf %49, %50 : vector<8x96xf32>
    %cst_23 = arith.constant dense<0xFF800000> : vector<8xf32>
    %52 = vector.multi_reduction <maximumf>, %51, %cst_23 [1] : vector<8x96xf32> to vector<8xf32>
    %53 = vector.shape_cast %52 : vector<8xf32> to vector<8x1xf32>
    %54 = vector.broadcast %53 : vector<8x1xf32> to vector<8x96xf32>
    %55 = arith.subf %51, %54 : vector<8x96xf32>
    %56 = math.exp %55 : vector<8x96xf32>
    %57 = tpu.concatenate %46, %46, %46, %46, %46, %46, %46, %46, %46, %46, %46, %46 in 0 : vector<8x48xf32>, vector<8x48xf32>, vector<8x48xf32>, vector<8x48xf32>, vector<8x48xf32>, vector<8x48xf32>, vector<8x48xf32>, vector<8x48xf32>, vector<8x48xf32>, vector<8x48xf32>, vector<8x48xf32>, vector<8x48xf32> -> vector<96x48xf32>
    %58 = arith.mulf %57, %6 : vector<96x48xf32>
    %cst_24 = arith.constant dense<0.000000e+00> : vector<8x48xf32>
    %59 = tpu.matmul %56, %58, %cst_24 {dimension_numbers = #tpu.dot_dimension_numbers<[1], [0], [0], [1], [0, 0, 1, 1], [], []>} : vector<8x96xf32>, vector<96x48xf32>, vector<8x48xf32> -> vector<8x48xf32>
    %cst_25 = arith.constant dense<0.000000e+00> : vector<8x48xf32>
    %60 = tpu.matmul %56, %6, %cst_25 {dimension_numbers = #tpu.dot_dimension_numbers<[1], [0], [0], [1], [0, 0, 1, 1], [], []>} : vector<8x96xf32>, vector<96x48xf32>, vector<8x48xf32> -> vector<8x48xf32>
    %61 = arith.divf %59, %60 : vector<8x48xf32>
    %62 = vector.extract_strided_slice %36 {offsets = [0, 0], sizes = [8, 96], strides = [1, 1]} : vector<16x96xf32> to vector<8x96xf32>
    %63 = vector.extract_strided_slice %23 {offsets = [0, 0], sizes = [8, 96], strides = [1, 1]} : vector<16x96xf32> to vector<8x96xf32>
    %64 = vector.extract_strided_slice %24 {offsets = [0, 0], sizes = [8, 48], strides = [1, 1]} : vector<16x48xf32> to vector<8x48xf32>
    %65 = tpu.concatenate %63, %63, %63, %63, %63, %63, %63, %63, %63, %63, %63, %63 in 0 : vector<8x96xf32>, vector<8x96xf32>, vector<8x96xf32>, vector<8x96xf32>, vector<8x96xf32>, vector<8x96xf32>, vector<8x96xf32>, vector<8x96xf32>, vector<8x96xf32>, vector<8x96xf32>, vector<8x96xf32>, vector<8x96xf32> -> vector<96x96xf32>
    %66 = arith.mulf %65, %5 : vector<96x96xf32>
    %cst_26 = arith.constant dense<0.000000e+00> : vector<8x96xf32>
    %67 = tpu.matmul %62, %66, %cst_26 {dimension_numbers = #tpu.dot_dimension_numbers<[1], [1], [0], [0], [0, 0, 1, 0], [], []>} : vector<8x96xf32>, vector<96x96xf32>, vector<8x96xf32> -> vector<8x96xf32>
    %68 = vector.broadcast %43 : vector<1x96xf32> to vector<8x96xf32>
    %69 = arith.addf %67, %68 : vector<8x96xf32>
    %cst_27 = arith.constant dense<0xFF800000> : vector<8xf32>
    %70 = vector.multi_reduction <maximumf>, %69, %cst_27 [1] : vector<8x96xf32> to vector<8xf32>
    %71 = vector.shape_cast %70 : vector<8xf32> to vector<8x1xf32>
    %72 = vector.broadcast %71 : vector<8x1xf32> to vector<8x96xf32>
    %73 = arith.subf %69, %72 : vector<8x96xf32>
    %74 = math.exp %73 : vector<8x96xf32>
    %75 = tpu.concatenate %64, %64, %64, %64, %64, %64, %64, %64, %64, %64, %64, %64 in 0 : vector<8x48xf32>, vector<8x48xf32>, vector<8x48xf32>, vector<8x48xf32>, vector<8x48xf32>, vector<8x48xf32>, vector<8x48xf32>, vector<8x48xf32>, vector<8x48xf32>, vector<8x48xf32>, vector<8x48xf32>, vector<8x48xf32> -> vector<96x48xf32>
    %76 = arith.mulf %75, %6 : vector<96x48xf32>
    %cst_28 = arith.constant dense<0.000000e+00> : vector<8x48xf32>
    %77 = tpu.matmul %74, %76, %cst_28 {dimension_numbers = #tpu.dot_dimension_numbers<[1], [0], [0], [1], [0, 0, 1, 1], [], []>} : vector<8x96xf32>, vector<96x48xf32>, vector<8x48xf32> -> vector<8x48xf32>
    %cst_29 = arith.constant dense<0.000000e+00> : vector<8x48xf32>
    %78 = tpu.matmul %74, %6, %cst_29 {dimension_numbers = #tpu.dot_dimension_numbers<[1], [0], [0], [1], [0, 0, 1, 1], [], []>} : vector<8x96xf32>, vector<96x48xf32>, vector<8x48xf32> -> vector<8x48xf32>
    %79 = arith.divf %77, %78 : vector<8x48xf32>
    %80 = vector.extract_strided_slice %2 {offsets = [1, 0], sizes = [1, 96], strides = [1, 1]} : vector<2x96xf32> to vector<1x96xf32>
    %81 = vector.extract_strided_slice %18 {offsets = [8, 0], sizes = [8, 96], strides = [1, 1]} : vector<16x96xf32> to vector<8x96xf32>
    %82 = vector.extract_strided_slice %41 {offsets = [8, 0], sizes = [8, 96], strides = [1, 1]} : vector<16x96xf32> to vector<8x96xf32>
    %83 = vector.extract_strided_slice %42 {offsets = [8, 0], sizes = [8, 48], strides = [1, 1]} : vector<16x48xf32> to vector<8x48xf32>
    %84 = tpu.concatenate %82, %82, %82, %82, %82, %82, %82, %82, %82, %82, %82, %82 in 0 : vector<8x96xf32>, vector<8x96xf32>, vector<8x96xf32>, vector<8x96xf32>, vector<8x96xf32>, vector<8x96xf32>, vector<8x96xf32>, vector<8x96xf32>, vector<8x96xf32>, vector<8x96xf32>, vector<8x96xf32>, vector<8x96xf32> -> vector<96x96xf32>
    %85 = arith.mulf %84, %5 : vector<96x96xf32>
    %cst_30 = arith.constant dense<0.000000e+00> : vector<8x96xf32>
    %86 = tpu.matmul %81, %85, %cst_30 {dimension_numbers = #tpu.dot_dimension_numbers<[1], [1], [0], [0], [0, 0, 1, 0], [], []>} : vector<8x96xf32>, vector<96x96xf32>, vector<8x96xf32> -> vector<8x96xf32>
    %87 = vector.broadcast %80 : vector<1x96xf32> to vector<8x96xf32>
    %88 = arith.addf %86, %87 : vector<8x96xf32>
    %cst_31 = arith.constant dense<0xFF800000> : vector<8xf32>
    %89 = vector.multi_reduction <maximumf>, %88, %cst_31 [1] : vector<8x96xf32> to vector<8xf32>
    %90 = vector.shape_cast %89 : vector<8xf32> to vector<8x1xf32>
    %91 = vector.broadcast %90 : vector<8x1xf32> to vector<8x96xf32>
    %92 = arith.subf %88, %91 : vector<8x96xf32>
    %93 = math.exp %92 : vector<8x96xf32>
    %94 = tpu.concatenate %83, %83, %83, %83, %83, %83, %83, %83, %83, %83, %83, %83 in 0 : vector<8x48xf32>, vector<8x48xf32>, vector<8x48xf32>, vector<8x48xf32>, vector<8x48xf32>, vector<8x48xf32>, vector<8x48xf32>, vector<8x48xf32>, vector<8x48xf32>, vector<8x48xf32>, vector<8x48xf32>, vector<8x48xf32> -> vector<96x48xf32>
    %95 = arith.mulf %94, %6 : vector<96x48xf32>
    %cst_32 = arith.constant dense<0.000000e+00> : vector<8x48xf32>
    %96 = tpu.matmul %93, %95, %cst_32 {dimension_numbers = #tpu.dot_dimension_numbers<[1], [0], [0], [1], [0, 0, 1, 1], [], []>} : vector<8x96xf32>, vector<96x48xf32>, vector<8x48xf32> -> vector<8x48xf32>
    %cst_33 = arith.constant dense<0.000000e+00> : vector<8x48xf32>
    %97 = tpu.matmul %93, %6, %cst_33 {dimension_numbers = #tpu.dot_dimension_numbers<[1], [0], [0], [1], [0, 0, 1, 1], [], []>} : vector<8x96xf32>, vector<96x48xf32>, vector<8x48xf32> -> vector<8x48xf32>
    %98 = arith.divf %96, %97 : vector<8x48xf32>
    %99 = vector.extract_strided_slice %36 {offsets = [8, 0], sizes = [8, 96], strides = [1, 1]} : vector<16x96xf32> to vector<8x96xf32>
    %100 = vector.extract_strided_slice %23 {offsets = [8, 0], sizes = [8, 96], strides = [1, 1]} : vector<16x96xf32> to vector<8x96xf32>
    %101 = vector.extract_strided_slice %24 {offsets = [8, 0], sizes = [8, 48], strides = [1, 1]} : vector<16x48xf32> to vector<8x48xf32>
    %102 = tpu.concatenate %100, %100, %100, %100, %100, %100, %100, %100, %100, %100, %100, %100 in 0 : vector<8x96xf32>, vector<8x96xf32>, vector<8x96xf32>, vector<8x96xf32>, vector<8x96xf32>, vector<8x96xf32>, vector<8x96xf32>, vector<8x96xf32>, vector<8x96xf32>, vector<8x96xf32>, vector<8x96xf32>, vector<8x96xf32> -> vector<96x96xf32>
    %103 = arith.mulf %102, %5 : vector<96x96xf32>
    %cst_34 = arith.constant dense<0.000000e+00> : vector<8x96xf32>
    %104 = tpu.matmul %99, %103, %cst_34 {dimension_numbers = #tpu.dot_dimension_numbers<[1], [1], [0], [0], [0, 0, 1, 0], [], []>} : vector<8x96xf32>, vector<96x96xf32>, vector<8x96xf32> -> vector<8x96xf32>
    %105 = vector.broadcast %80 : vector<1x96xf32> to vector<8x96xf32>
    %106 = arith.addf %104, %105 : vector<8x96xf32>
    %cst_35 = arith.constant dense<0xFF800000> : vector<8xf32>
    %107 = vector.multi_reduction <maximumf>, %106, %cst_35 [1] : vector<8x96xf32> to vector<8xf32>
    %108 = vector.shape_cast %107 : vector<8xf32> to vector<8x1xf32>
    %109 = vector.broadcast %108 : vector<8x1xf32> to vector<8x96xf32>
    %110 = arith.subf %106, %109 : vector<8x96xf32>
    %111 = math.exp %110 : vector<8x96xf32>
    %112 = tpu.concatenate %101, %101, %101, %101, %101, %101, %101, %101, %101, %101, %101, %101 in 0 : vector<8x48xf32>, vector<8x48xf32>, vector<8x48xf32>, vector<8x48xf32>, vector<8x48xf32>, vector<8x48xf32>, vector<8x48xf32>, vector<8x48xf32>, vector<8x48xf32>, vector<8x48xf32>, vector<8x48xf32>, vector<8x48xf32> -> vector<96x48xf32>
    %113 = arith.mulf %112, %6 : vector<96x48xf32>
    %cst_36 = arith.constant dense<0.000000e+00> : vector<8x48xf32>
    %114 = tpu.matmul %111, %113, %cst_36 {dimension_numbers = #tpu.dot_dimension_numbers<[1], [0], [0], [1], [0, 0, 1, 1], [], []>} : vector<8x96xf32>, vector<96x48xf32>, vector<8x48xf32> -> vector<8x48xf32>
    %cst_37 = arith.constant dense<0.000000e+00> : vector<8x48xf32>
    %115 = tpu.matmul %111, %6, %cst_37 {dimension_numbers = #tpu.dot_dimension_numbers<[1], [0], [0], [1], [0, 0, 1, 1], [], []>} : vector<8x96xf32>, vector<96x48xf32>, vector<8x48xf32> -> vector<8x48xf32>
    %116 = arith.divf %114, %115 : vector<8x48xf32>
    %117 = tpu.concatenate %61, %98 in 0 : vector<8x48xf32>, vector<8x48xf32> -> vector<16x48xf32>
    %118 = tpu.concatenate %79, %116 in 0 : vector<8x48xf32>, vector<8x48xf32> -> vector<16x48xf32>
    %c0_38 = arith.constant 0 : index
    %c240 = arith.constant 240 : index
    %c0_39 = arith.constant 0 : index
    %119 = vector.load %arg5[%c0_38, %c240, %c0_39] : memref<2x246x48xf32, #tpu.memory_space<vmem>>, vector<1x6x48xf32>
    %120 = vector.shape_cast %119 : vector<1x6x48xf32> to vector<6x48xf32>
    %c0_40 = arith.constant 0 : index
    %c0_41 = arith.constant 0 : index
    %c0_42 = arith.constant 0 : index
    %121 = vector.load %arg5[%c0_40, %c0_41, %c0_42] : memref<2x246x48xf32, #tpu.memory_space<vmem>>, vector<1x48x48xf32>
    %122 = vector.shape_cast %121 : vector<1x48x48xf32> to vector<48x48xf32>
    %cst_43 = arith.constant dense<0.000000e+00> : vector<16x48xf32>
    %123 = tpu.matmul %117, %122, %cst_43 {dimension_numbers = #tpu.dot_dimension_numbers<[1], [0], [0], [1], [0, 0, 1, 1], [], []>} : vector<16x48xf32>, vector<48x48xf32>, vector<16x48xf32> -> vector<16x48xf32>
    %124 = vector.extract_strided_slice %120 {offsets = [0, 0], sizes = [1, 48], strides = [1, 1]} : vector<6x48xf32> to vector<1x48xf32>
    %125 = vector.broadcast %124 : vector<1x48xf32> to vector<16x48xf32>
    %126 = arith.addf %123, %125 : vector<16x48xf32>
    %127 = arith.addf %126, %0 : vector<16x48xf32>
    %128 = vector.extract_strided_slice %120 {offsets = [1, 0], sizes = [1, 48], strides = [1, 1]} : vector<6x48xf32> to vector<1x48xf32>
    %129 = vector.extract_strided_slice %120 {offsets = [2, 0], sizes = [1, 48], strides = [1, 1]} : vector<6x48xf32> to vector<1x48xf32>
    %cst_44 = arith.constant dense<0.000000e+00> : vector<16xf32>
    %130 = vector.multi_reduction <add>, %127, %cst_44 [1] : vector<16x48xf32> to vector<16xf32>
    %131 = vector.shape_cast %130 : vector<16xf32> to vector<16x1xf32>
    %cst_45 = arith.constant 4.800000e+01 : f32
    %132 = vector.broadcast %cst_45 : f32 to vector<16x1xf32>
    %133 = arith.divf %131, %132 : vector<16x1xf32>
    %134 = vector.broadcast %133 : vector<16x1xf32> to vector<16x48xf32>
    %135 = arith.subf %127, %134 : vector<16x48xf32>
    %136 = vector.broadcast %133 : vector<16x1xf32> to vector<16x48xf32>
    %137 = arith.subf %127, %136 : vector<16x48xf32>
    %138 = arith.mulf %135, %137 : vector<16x48xf32>
    %cst_46 = arith.constant dense<0.000000e+00> : vector<16xf32>
    %139 = vector.multi_reduction <add>, %138, %cst_46 [1] : vector<16x48xf32> to vector<16xf32>
    %140 = vector.shape_cast %139 : vector<16xf32> to vector<16x1xf32>
    %cst_47 = arith.constant 4.800000e+01 : f32
    %141 = vector.broadcast %cst_47 : f32 to vector<16x1xf32>
    %142 = arith.divf %140, %141 : vector<16x1xf32>
    %143 = vector.broadcast %133 : vector<16x1xf32> to vector<16x48xf32>
    %144 = arith.subf %127, %143 : vector<16x48xf32>
    %145 = vector.broadcast %128 : vector<1x48xf32> to vector<16x48xf32>
    %146 = arith.mulf %145, %144 : vector<16x48xf32>
    %cst_48 = arith.constant 9.99999996E-13 : f32
    %147 = vector.broadcast %cst_48 : f32 to vector<16x1xf32>
    %148 = arith.addf %142, %147 : vector<16x1xf32>
    %149 = math.rsqrt %148 : vector<16x1xf32>
    %150 = vector.broadcast %149 : vector<16x1xf32> to vector<16x48xf32>
    %151 = arith.mulf %146, %150 : vector<16x48xf32>
    %152 = vector.broadcast %129 : vector<1x48xf32> to vector<16x48xf32>
    %153 = arith.addf %151, %152 : vector<16x48xf32>
    %c0_49 = arith.constant 0 : index
    %c0_50 = arith.constant 0 : index
    %c0_51 = arith.constant 0 : index
    %154 = vector.load %arg4[%c0_49, %c0_50, %c0_51] : memref<2x49x192xf32, #tpu.memory_space<vmem>>, vector<1x48x192xf32>
    %155 = vector.shape_cast %154 : vector<1x48x192xf32> to vector<48x192xf32>
    %cst_52 = arith.constant dense<0.000000e+00> : vector<16x192xf32>
    %156 = tpu.matmul %153, %155, %cst_52 {dimension_numbers = #tpu.dot_dimension_numbers<[1], [0], [0], [1], [0, 0, 1, 1], [], []>} : vector<16x48xf32>, vector<48x192xf32>, vector<16x192xf32> -> vector<16x192xf32>
    %c0_53 = arith.constant 0 : index
    %c48_54 = arith.constant 48 : index
    %c0_55 = arith.constant 0 : index
    %157 = vector.load %arg4[%c0_53, %c48_54, %c0_55] : memref<2x49x192xf32, #tpu.memory_space<vmem>>, vector<1x1x192xf32>
    %158 = vector.shape_cast %157 : vector<1x1x192xf32> to vector<1x192xf32>
    %159 = vector.broadcast %158 : vector<1x192xf32> to vector<16x192xf32>
    %160 = arith.addf %156, %159 : vector<16x192xf32>
    %cst_56 = arith.constant 0.000000e+00 : f32
    %161 = vector.broadcast %cst_56 : f32 to vector<16x192xf32>
    %162 = arith.maximumf %160, %161 : vector<16x192xf32>
    %c0_57 = arith.constant 0 : index
    %c48_58 = arith.constant 48 : index
    %c0_59 = arith.constant 0 : index
    %163 = vector.load %arg5[%c0_57, %c48_58, %c0_59] : memref<2x246x48xf32, #tpu.memory_space<vmem>>, vector<1x192x48xf32>
    %164 = vector.shape_cast %163 : vector<1x192x48xf32> to vector<192x48xf32>
    %cst_60 = arith.constant dense<0.000000e+00> : vector<16x48xf32>
    %165 = tpu.matmul %162, %164, %cst_60 {dimension_numbers = #tpu.dot_dimension_numbers<[1], [0], [0], [1], [0, 0, 1, 1], [], []>} : vector<16x192xf32>, vector<192x48xf32>, vector<16x48xf32> -> vector<16x48xf32>
    %166 = vector.extract_strided_slice %120 {offsets = [3, 0], sizes = [1, 48], strides = [1, 1]} : vector<6x48xf32> to vector<1x48xf32>
    %167 = vector.broadcast %166 : vector<1x48xf32> to vector<16x48xf32>
    %168 = arith.addf %165, %167 : vector<16x48xf32>
    %169 = arith.addf %168, %153 : vector<16x48xf32>
    %170 = vector.extract_strided_slice %120 {offsets = [4, 0], sizes = [1, 48], strides = [1, 1]} : vector<6x48xf32> to vector<1x48xf32>
    %171 = vector.extract_strided_slice %120 {offsets = [5, 0], sizes = [1, 48], strides = [1, 1]} : vector<6x48xf32> to vector<1x48xf32>
    %cst_61 = arith.constant dense<0.000000e+00> : vector<16xf32>
    %172 = vector.multi_reduction <add>, %169, %cst_61 [1] : vector<16x48xf32> to vector<16xf32>
    %173 = vector.shape_cast %172 : vector<16xf32> to vector<16x1xf32>
    %cst_62 = arith.constant 4.800000e+01 : f32
    %174 = vector.broadcast %cst_62 : f32 to vector<16x1xf32>
    %175 = arith.divf %173, %174 : vector<16x1xf32>
    %176 = vector.broadcast %175 : vector<16x1xf32> to vector<16x48xf32>
    %177 = arith.subf %169, %176 : vector<16x48xf32>
    %178 = vector.broadcast %175 : vector<16x1xf32> to vector<16x48xf32>
    %179 = arith.subf %169, %178 : vector<16x48xf32>
    %180 = arith.mulf %177, %179 : vector<16x48xf32>
    %cst_63 = arith.constant dense<0.000000e+00> : vector<16xf32>
    %181 = vector.multi_reduction <add>, %180, %cst_63 [1] : vector<16x48xf32> to vector<16xf32>
    %182 = vector.shape_cast %181 : vector<16xf32> to vector<16x1xf32>
    %cst_64 = arith.constant 4.800000e+01 : f32
    %183 = vector.broadcast %cst_64 : f32 to vector<16x1xf32>
    %184 = arith.divf %182, %183 : vector<16x1xf32>
    %185 = vector.broadcast %175 : vector<16x1xf32> to vector<16x48xf32>
    %186 = arith.subf %169, %185 : vector<16x48xf32>
    %187 = vector.broadcast %170 : vector<1x48xf32> to vector<16x48xf32>
    %188 = arith.mulf %187, %186 : vector<16x48xf32>
    %cst_65 = arith.constant 9.99999996E-13 : f32
    %189 = vector.broadcast %cst_65 : f32 to vector<16x1xf32>
    %190 = arith.addf %184, %189 : vector<16x1xf32>
    %191 = math.rsqrt %190 : vector<16x1xf32>
    %192 = vector.broadcast %191 : vector<16x1xf32> to vector<16x48xf32>
    %193 = arith.mulf %188, %192 : vector<16x48xf32>
    %194 = vector.broadcast %171 : vector<1x48xf32> to vector<16x48xf32>
    %195 = arith.addf %193, %194 : vector<16x48xf32>
    %c1_66 = arith.constant 1 : index
    %c240_67 = arith.constant 240 : index
    %c0_68 = arith.constant 0 : index
    %196 = vector.load %arg5[%c1_66, %c240_67, %c0_68] : memref<2x246x48xf32, #tpu.memory_space<vmem>>, vector<1x6x48xf32>
    %197 = vector.shape_cast %196 : vector<1x6x48xf32> to vector<6x48xf32>
    %c1_69 = arith.constant 1 : index
    %c0_70 = arith.constant 0 : index
    %c0_71 = arith.constant 0 : index
    %198 = vector.load %arg5[%c1_69, %c0_70, %c0_71] : memref<2x246x48xf32, #tpu.memory_space<vmem>>, vector<1x48x48xf32>
    %199 = vector.shape_cast %198 : vector<1x48x48xf32> to vector<48x48xf32>
    %cst_72 = arith.constant dense<0.000000e+00> : vector<16x48xf32>
    %200 = tpu.matmul %118, %199, %cst_72 {dimension_numbers = #tpu.dot_dimension_numbers<[1], [0], [0], [1], [0, 0, 1, 1], [], []>} : vector<16x48xf32>, vector<48x48xf32>, vector<16x48xf32> -> vector<16x48xf32>
    %201 = vector.extract_strided_slice %197 {offsets = [0, 0], sizes = [1, 48], strides = [1, 1]} : vector<6x48xf32> to vector<1x48xf32>
    %202 = vector.broadcast %201 : vector<1x48xf32> to vector<16x48xf32>
    %203 = arith.addf %200, %202 : vector<16x48xf32>
    %204 = arith.addf %203, %1 : vector<16x48xf32>
    %205 = vector.extract_strided_slice %197 {offsets = [1, 0], sizes = [1, 48], strides = [1, 1]} : vector<6x48xf32> to vector<1x48xf32>
    %206 = vector.extract_strided_slice %197 {offsets = [2, 0], sizes = [1, 48], strides = [1, 1]} : vector<6x48xf32> to vector<1x48xf32>
    %cst_73 = arith.constant dense<0.000000e+00> : vector<16xf32>
    %207 = vector.multi_reduction <add>, %204, %cst_73 [1] : vector<16x48xf32> to vector<16xf32>
    %208 = vector.shape_cast %207 : vector<16xf32> to vector<16x1xf32>
    %cst_74 = arith.constant 4.800000e+01 : f32
    %209 = vector.broadcast %cst_74 : f32 to vector<16x1xf32>
    %210 = arith.divf %208, %209 : vector<16x1xf32>
    %211 = vector.broadcast %210 : vector<16x1xf32> to vector<16x48xf32>
    %212 = arith.subf %204, %211 : vector<16x48xf32>
    %213 = vector.broadcast %210 : vector<16x1xf32> to vector<16x48xf32>
    %214 = arith.subf %204, %213 : vector<16x48xf32>
    %215 = arith.mulf %212, %214 : vector<16x48xf32>
    %cst_75 = arith.constant dense<0.000000e+00> : vector<16xf32>
    %216 = vector.multi_reduction <add>, %215, %cst_75 [1] : vector<16x48xf32> to vector<16xf32>
    %217 = vector.shape_cast %216 : vector<16xf32> to vector<16x1xf32>
    %cst_76 = arith.constant 4.800000e+01 : f32
    %218 = vector.broadcast %cst_76 : f32 to vector<16x1xf32>
    %219 = arith.divf %217, %218 : vector<16x1xf32>
    %220 = vector.broadcast %210 : vector<16x1xf32> to vector<16x48xf32>
    %221 = arith.subf %204, %220 : vector<16x48xf32>
    %222 = vector.broadcast %205 : vector<1x48xf32> to vector<16x48xf32>
    %223 = arith.mulf %222, %221 : vector<16x48xf32>
    %cst_77 = arith.constant 9.99999996E-13 : f32
    %224 = vector.broadcast %cst_77 : f32 to vector<16x1xf32>
    %225 = arith.addf %219, %224 : vector<16x1xf32>
    %226 = math.rsqrt %225 : vector<16x1xf32>
    %227 = vector.broadcast %226 : vector<16x1xf32> to vector<16x48xf32>
    %228 = arith.mulf %223, %227 : vector<16x48xf32>
    %229 = vector.broadcast %206 : vector<1x48xf32> to vector<16x48xf32>
    %230 = arith.addf %228, %229 : vector<16x48xf32>
    %c1_78 = arith.constant 1 : index
    %c0_79 = arith.constant 0 : index
    %c0_80 = arith.constant 0 : index
    %231 = vector.load %arg4[%c1_78, %c0_79, %c0_80] : memref<2x49x192xf32, #tpu.memory_space<vmem>>, vector<1x48x192xf32>
    %232 = vector.shape_cast %231 : vector<1x48x192xf32> to vector<48x192xf32>
    %cst_81 = arith.constant dense<0.000000e+00> : vector<16x192xf32>
    %233 = tpu.matmul %230, %232, %cst_81 {dimension_numbers = #tpu.dot_dimension_numbers<[1], [0], [0], [1], [0, 0, 1, 1], [], []>} : vector<16x48xf32>, vector<48x192xf32>, vector<16x192xf32> -> vector<16x192xf32>
    %c1_82 = arith.constant 1 : index
    %c48_83 = arith.constant 48 : index
    %c0_84 = arith.constant 0 : index
    %234 = vector.load %arg4[%c1_82, %c48_83, %c0_84] : memref<2x49x192xf32, #tpu.memory_space<vmem>>, vector<1x1x192xf32>
    %235 = vector.shape_cast %234 : vector<1x1x192xf32> to vector<1x192xf32>
    %236 = vector.broadcast %235 : vector<1x192xf32> to vector<16x192xf32>
    %237 = arith.addf %233, %236 : vector<16x192xf32>
    %cst_85 = arith.constant 0.000000e+00 : f32
    %238 = vector.broadcast %cst_85 : f32 to vector<16x192xf32>
    %239 = arith.maximumf %237, %238 : vector<16x192xf32>
    %c1_86 = arith.constant 1 : index
    %c48_87 = arith.constant 48 : index
    %c0_88 = arith.constant 0 : index
    %240 = vector.load %arg5[%c1_86, %c48_87, %c0_88] : memref<2x246x48xf32, #tpu.memory_space<vmem>>, vector<1x192x48xf32>
    %241 = vector.shape_cast %240 : vector<1x192x48xf32> to vector<192x48xf32>
    %cst_89 = arith.constant dense<0.000000e+00> : vector<16x48xf32>
    %242 = tpu.matmul %239, %241, %cst_89 {dimension_numbers = #tpu.dot_dimension_numbers<[1], [0], [0], [1], [0, 0, 1, 1], [], []>} : vector<16x192xf32>, vector<192x48xf32>, vector<16x48xf32> -> vector<16x48xf32>
    %243 = vector.extract_strided_slice %197 {offsets = [3, 0], sizes = [1, 48], strides = [1, 1]} : vector<6x48xf32> to vector<1x48xf32>
    %244 = vector.broadcast %243 : vector<1x48xf32> to vector<16x48xf32>
    %245 = arith.addf %242, %244 : vector<16x48xf32>
    %246 = arith.addf %245, %230 : vector<16x48xf32>
    %247 = vector.extract_strided_slice %197 {offsets = [4, 0], sizes = [1, 48], strides = [1, 1]} : vector<6x48xf32> to vector<1x48xf32>
    %248 = vector.extract_strided_slice %197 {offsets = [5, 0], sizes = [1, 48], strides = [1, 1]} : vector<6x48xf32> to vector<1x48xf32>
    %cst_90 = arith.constant dense<0.000000e+00> : vector<16xf32>
    %249 = vector.multi_reduction <add>, %246, %cst_90 [1] : vector<16x48xf32> to vector<16xf32>
    %250 = vector.shape_cast %249 : vector<16xf32> to vector<16x1xf32>
    %cst_91 = arith.constant 4.800000e+01 : f32
    %251 = vector.broadcast %cst_91 : f32 to vector<16x1xf32>
    %252 = arith.divf %250, %251 : vector<16x1xf32>
    %253 = vector.broadcast %252 : vector<16x1xf32> to vector<16x48xf32>
    %254 = arith.subf %246, %253 : vector<16x48xf32>
    %255 = vector.broadcast %252 : vector<16x1xf32> to vector<16x48xf32>
    %256 = arith.subf %246, %255 : vector<16x48xf32>
    %257 = arith.mulf %254, %256 : vector<16x48xf32>
    %cst_92 = arith.constant dense<0.000000e+00> : vector<16xf32>
    %258 = vector.multi_reduction <add>, %257, %cst_92 [1] : vector<16x48xf32> to vector<16xf32>
    %259 = vector.shape_cast %258 : vector<16xf32> to vector<16x1xf32>
    %cst_93 = arith.constant 4.800000e+01 : f32
    %260 = vector.broadcast %cst_93 : f32 to vector<16x1xf32>
    %261 = arith.divf %259, %260 : vector<16x1xf32>
    %262 = vector.broadcast %252 : vector<16x1xf32> to vector<16x48xf32>
    %263 = arith.subf %246, %262 : vector<16x48xf32>
    %264 = vector.broadcast %247 : vector<1x48xf32> to vector<16x48xf32>
    %265 = arith.mulf %264, %263 : vector<16x48xf32>
    %cst_94 = arith.constant 9.99999996E-13 : f32
    %266 = vector.broadcast %cst_94 : f32 to vector<16x1xf32>
    %267 = arith.addf %261, %266 : vector<16x1xf32>
    %268 = math.rsqrt %267 : vector<16x1xf32>
    %269 = vector.broadcast %268 : vector<16x1xf32> to vector<16x48xf32>
    %270 = arith.mulf %265, %269 : vector<16x48xf32>
    %271 = vector.broadcast %248 : vector<1x48xf32> to vector<16x48xf32>
    %272 = arith.addf %270, %271 : vector<16x48xf32>
    %273 = tpu.concatenate %195, %272 in 1 : vector<16x48xf32>, vector<16x48xf32> -> vector<16x96xf32>
    %c0_95 = arith.constant 0 : index
    %c0_96 = arith.constant 0 : index
    %274 = vector.load %arg8[%c0_95, %c0_96] : memref<16x96xf32, #tpu.memory_space<vmem>>, vector<16x96xf32>
    tpu.vector_store %arg8[%c0_95, %c0_96], %273 {strides = array<i32>} : memref<16x96xf32, #tpu.memory_space<vmem>>, vector<16x96xf32>,
    return
  }
}

</mosaic_0001>

<bundles_post_ra>
// kernel: tile.9
= control target key start
LH: loop header
LB: loop body
LE: loop exit
PB: predicated region body
PF: predicated region fallthrough
CT: control target
= control target key end

     0   :  { %s7_s6 = smov 3  ;;  %s21_s9 = smov 3  ;;  %vm4_vm0 = vcmask 64512   ;;  %vm11_vm1 = vcmask 786112   ;;  %vm18_vm2 = vcmask 720512   ;;  %vm25_vm3 = vcmask 654912   ;;  %s173_s0 = inlined_call_operand.vmem [shape: f32[2,12,8], index: 0, kind: input, shape index: {}]   ;;  %s174_s1 = inlined_call_operand.vmem [shape: f32[2,96], index: 1, kind: output, shape index: {}]  }
   0x1   :  { %v91_v0 = vld [vmem:[%s173_s0 + $0xb] ss:$16 sm:%s7_s6]   ;;  %s113_s10 = smov 88   ;;  %v93_v1 = vld [vmem:[%s173_s0 + $0x9] ss:$16 sm:%s21_s9]   ;;  %s14_s13 = smov 3 }
   0x2   :  { %9 = vrot.lane.b32.xlu0 %v91_v0, %s113_s10  ;;  %s114_s14 = smov 72   ;;  %v92_v2 = vld [vmem:[%s173_s0 + $0xa] ss:$16 sm:%s14_s13]   ;;  %s28_s17 = smov 3  ;;  %vm32_vm4 = vcmask 589312   ;;  %vm39_vm5 = vcmask 523712  }
   0x3   :  { %23 = vrot.lane.b32.xlu1 %v93_v1, %s114_s14  ;;  %v94_v3 = vld [vmem:[%s173_s0 + $0x8] ss:$16 sm:%s28_s17]   ;;  %s35_s20 = smov 3  ;;  %s42_s21 = smov 3  ;;  %vm46_vm6 = vcmask 458112   ;;  %vm53_vm7 = vcmask 392512  }
   0x4   :  { %s115_s22 = smov 80   ;;  %s116_s23 = smov 64   ;;  %v95_v4 = vld [vmem:[%s173_s0 + $0x7] ss:$16 sm:%s35_s20]   ;;  %v96_v5 = vld [vmem:[%s173_s0 + $0x6] ss:$16 sm:%s42_s21]  }
   0x5   :  { %s49_s28 = smov 3  ;;  %s56_s29 = smov 3  ;;  %vm60_vm8 = vcmask 326912   ;;  %vm67_vm9 = vcmask 261312   ;;  %vm74_vm10 = vcmask 195712   ;;  %vm81_vm11 = vcmask 130112  }
   0x6   :  { %16 = vrot.lane.b32.xlu0 %v92_v2, %s115_s22  ;;  %s117_s30 = smov 56   ;;  %s118_s2 = smov 48   ;;  %v97_v6 = vld [vmem:[%s173_s0 + $0x5] ss:$16 sm:%s49_s28]  }
   0x7   :  { %30 = vrot.lane.b32.xlu1 %v94_v3, %s116_s23  ;;  %s2_s5 = smov 3  ;;  %v98_v7 = vld [vmem:[%s173_s0 + $0x4] ss:$16 sm:%s56_s29]   ;;  %s63_s8 = smov 3 }
   0x8   :  { %v3_v8 = vld [vmem:[%s173_s0] ss:$16 sm:%s2_s5]   ;;  %s70_s11 = smov 3  ;;  %s119_s12 = smov 40   ;;  %v99_v9 = vld [vmem:[%s173_s0 + $0x3] ss:$16 sm:%s63_s8]  }
   0x9   :  { %5 = vst.msk [vmem:[#allocation0] sm:$0x3] %vm4_vm0, %v3_v8   ;;  %s120_s13 = smov 32   ;;  %v100_v10 = vld [vmem:[%s173_s0 + $0x2] ss:$16 sm:%s70_s11]   ;;  %s77_s18 = smov 3 }
   0xa   :  { %37 = vrot.lane.b32.xlu0 %v95_v4, %s117_s30  ;;  %s121_s19 = smov 24   ;;  %s122_s20 = smov 16   ;;  %v101_v11 = vld [vmem:[%s173_s0 + $0x1] ss:$16 sm:%s77_s18]  }
   0xb   :  { %44 = vrot.lane.b32.xlu1 %v96_v5, %s118_s2  ;;  %s123_s0 = smov 8  }
   0xe   :  { %51 = vrot.lane.b32.xlu0 %v97_v6, %s119_s12 }
   0xf   :  { %58 = vrot.lane.b32.xlu1 %v98_v7, %s120_s13 }
  0x12   :  { %65 = vrot.lane.b32.xlu0 %v99_v9, %s121_s19 }
  0x13   :  { %72 = vrot.lane.b32.xlu1 %v100_v10, %s122_s20 }
  0x16   :  { %79 = vrot.lane.b32.xlu0 %v101_v11, %s123_s0 }
  0x74   :  { %v10_v12 = vpop.permute.xlu0 %9  }
  0x75   :  { %12 = vst.msk [vmem:[#allocation0] sm:$0x3] %vm11_vm1, %v10_v12   ;;  %v24_v13 = vpop.permute.xlu1 %23  }
  0x78   :  { %v17_v14 = vpop.permute.xlu0 %16  }
  0x79   :  { %19 = vst.msk [vmem:[#allocation0] sm:$0x3] %vm18_vm2, %v17_v14   ;;  %v31_v15 = vpop.permute.xlu1 %30  }
  0x7a   :  { %26 = vst.msk [vmem:[#allocation0] sm:$0x3] %vm25_vm3, %v24_v13  }
  0x7b   :  { %33 = vst.msk [vmem:[#allocation0] sm:$0x3] %vm32_vm4, %v31_v15  }
  0x7c   :  { %v38_v16 = vpop.permute.xlu0 %37  }
  0x7d   :  { %40 = vst.msk [vmem:[#allocation0] sm:$0x3] %vm39_vm5, %v38_v16   ;;  %v45_v17 = vpop.permute.xlu1 %44  }
  0x7e   :  { %47 = vst.msk [vmem:[#allocation0] sm:$0x3] %vm46_vm6, %v45_v17  }
  0x80   :  { %v52_v18 = vpop.permute.xlu0 %51  }
  0x81   :  { %54 = vst.msk [vmem:[#allocation0] sm:$0x3] %vm53_vm7, %v52_v18   ;;  %v59_v19 = vpop.permute.xlu1 %58  }
  0x82   :  { %61 = vst.msk [vmem:[#allocation0] sm:$0x3] %vm60_vm8, %v59_v19  }
  0x84   :  { %v66_v20 = vpop.permute.xlu0 %65  }
  0x85   :  { %68 = vst.msk [vmem:[#allocation0] sm:$0x3] %vm67_vm9, %v66_v20   ;;  %v73_v21 = vpop.permute.xlu1 %72  }
  0x86   :  { %75 = vst.msk [vmem:[#allocation0] sm:$0x3] %vm74_vm10, %v73_v21  }
  0x88   :  { %v80_v22 = vpop.permute.xlu0 %79  }
  0x89   :  { %82 = vst.msk [vmem:[#allocation0] sm:$0x3] %vm81_vm11, %v80_v22  }
  0x90   :  { %v87_v23 = vld [vmem:[#allocation0] sm:$0x3] }
  0x91   :  { %90 = vst [vmem:[%s174_s1] sm:$0x3] %v87_v23 }

// kernel: is_block_forward.1
= control target key start
LH: loop header
LB: loop body
LE: loop exit
PB: predicated region body
PF: predicated region fallthrough
CT: control target
= control target key end

     0   :  { %v3654_v3 = vmov 0.0   ;;  %vm109_vm0 = vcmask 392192   ;;  %s3655_s19 = smov 32   ;;  %s3656_s30 = smov 64   ;;  %vm3658_vm1 = vmmov 0   ;;  %vm733_vm2 = vcmask 523264   ;;  %s5382_s3 = inlined_call_operand.vmem [shape: f32[2,49,432], index: 3, kind: input, shape index: {}]   ;;  %s5383_s0 = inlined_call_operand.vmem [shape: f32[16,48], index: 0, kind: input, shape index: {}]   ;;  %s5384_s1 = inlined_call_operand.vmem [shape: f32[16,48], index: 1, kind: input, shape index: {}]   ;;  %s5385_s6 = inlined_call_operand.vmem [shape: f32[128,96], index: 6, kind: input, shape index: {}]   ;;  %s5386_s7 = inlined_call_operand.vmem [shape: f32[96,48], index: 7, kind: input, shape index: {}]   ;;  %s5387_s2 = inlined_call_operand.vmem [shape: f32[2,96], index: 2, kind: input, shape index: {}]   ;;  %s5388_s5 = inlined_call_operand.vmem [shape: f32[2,246,48], index: 5, kind: input, shape index: {}]   ;;  %s5389_s4 = inlined_call_operand.vmem [shape: f32[2,49,192], index: 4, kind: input, shape index: {}]   ;;  %s5390_s8 = inlined_call_operand.vmem [shape: f32[16,96], index: 8, kind: output, shape index: {}]  }
   0x1   :  { %v83_v0 = vld [vmem:[%s5382_s3 + $0xa8] sm:$0xff]  ;;  %v2950_v1 = vld [vmem:[%s5382_s3 + $0x198] sm:$0xff]  ;;  %v82_v2 = vld [vmem:[%s5382_s3 + $0xa0] sm:$0xff]  ;;  %180 = vmatprep.mubr.f32.mxu0 %v3654_v3  ;;  %530 = vmatprep.mubr.f32.mxu1 %v3654_v3  ;;  %s3657_s20 = smov 96   ;;  %vm746_vm3 = vcmask 785408   ;;  %vm296_vm4 = vcmask 261120  }
   0x2   :  { %136 = vmatprep.subr.mxu0 %v83_v0  ;;  %486 = vmatprep.subr.mxu1 %v2950_v1  ;;  %v2949_v4 = vld [vmem:[%s5382_s3 + $0x190] sm:$0xff]  ;;  %v79_v5 = vld [vmem:[%s5382_s3 + $0x88] sm:$0xff]  ;;  %v2946_v6 = vld [vmem:[%s5382_s3 + $0x178] sm:$0xff] }
   0x3   :  { %137 = vmatpush1.msra.mxu0 %v82_v2  ;;  %487 = vmatpush1.msra.mxu1 %v2949_v4  ;;  %v78_v7 = vld [vmem:[%s5382_s3 + $0x80] sm:$0xff]  ;;  %v2945_v8 = vld [vmem:[%s5382_s3 + $0x170] sm:$0xff]  ;;  %v75_v9 = vld [vmem:[%s5382_s3 + $0x68] sm:$0xff] }
   0x4   :  { %138 = vmatprep.subr.mxu0 %v79_v5  ;;  %488 = vmatprep.subr.mxu1 %v2946_v6  ;;  %v2942_v10 = vld [vmem:[%s5382_s3 + $0x158] sm:$0xff]  ;;  %v74_v11 = vld [vmem:[%s5382_s3 + $0x60] sm:$0xff]  ;;  %v2941_v12 = vld [vmem:[%s5382_s3 + $0x150] sm:$0xff]  ;;  %v89_v5 = vlaneseq }
   0x5   :  { %139 = vmatpush1.msra.mxu0 %v78_v7  ;;  %489 = vmatpush1.msra.mxu1 %v2945_v8  ;;  %v71_v13 = vld [vmem:[%s5382_s3 + $0x48] sm:$0xff]  ;;  %v2938_v14 = vld [vmem:[%s5382_s3 + $0x138] sm:$0xff]  ;;  %v70_v15 = vld [vmem:[%s5382_s3 + $0x40] sm:$0xff] }
   0x6   :  { %140 = vmatprep.subr.mxu0 %v75_v9  ;;  %490 = vmatprep.subr.mxu1 %v2942_v10  ;;  %v2937_v16 = vld [vmem:[%s5382_s3 + $0x130] sm:$0xff]  ;;  %v67_v17 = vld [vmem:[%s5382_s3 + $0x28] sm:$0xff]  ;;  %v2934_v18 = vld [vmem:[%s5382_s3 + $0x118] sm:$0xff]  ;;  %v3944_v7 = vshrl.u32 %v89_v5, 7 }
   0x7   :  { %141 = vmatpush1.msra.mxu0 %v74_v11  ;;  %491 = vmatpush1.msra.mxu1 %v2941_v12  ;;  %v66_v19 = vld [vmem:[%s5382_s3 + $0x20] sm:$0xff]  ;;  %v2933_v20 = vld [vmem:[%s5382_s3 + $0x110] sm:$0xff]  ;;  %v63_v21 = vld [vmem:[%s5382_s3 + $0x8] sm:$0xff] }
   0x8   :  { %142 = vmatprep.subr.mxu0 %v71_v13  ;;  %492 = vmatprep.subr.mxu1 %v2938_v14  ;;  %v2930_v22 = vld [vmem:[%s5382_s3 + $0xf8] sm:$0xff]  ;;  %v62_v23 = vld [vmem:[%s5382_s3] sm:$0xff]  ;;  %v2929_v24 = vld [vmem:[%s5382_s3 + $0xf0] sm:$0xff]  ;;  %v3947_v8 = vsub.s32 0, %v3944_v7  ;;  %v3955_v11 = vsub.s32 2, %v3944_v7  ;;  %v3963_v13 = vsub.s32 3, %v3944_v7 }
   0x9   :  { %143 = vmatpush1.msra.mxu0 %v70_v15  ;;  %493 = vmatpush1.msra.mxu1 %v2937_v16  ;;  %v29_v25 = vld [vmem:[%s5383_s0] sm:$0xff]  ;;  %v85_v26 = vld [vmem:[%s5382_s3 + $0xb8] sm:$0xff]  ;;  %v84_v28 = vld [vmem:[%s5382_s3 + $0xb0] sm:$0xff] }
   0xa   :  { %144 = vmatprep.subr.mxu0 %v67_v17  ;;  %494 = vmatprep.subr.mxu1 %v2934_v18  ;;  %v3788_v27 = vld [vmem:[%s5384_s1] sm:$0xff]  ;;  %v81_v29 = vld [vmem:[%s5382_s3 + $0x98] sm:$0xff]  ;;  %v80_v30 = vld [vmem:[%s5382_s3 + $0x90] sm:$0xff] }
   0xb   :  { %145 = vmatpush1.msra.mxu0 %v66_v19  ;;  %495 = vmatpush1.msra.mxu1 %v2933_v20  ;;  %v77_v31 = vld [vmem:[%s5382_s3 + $0x78] sm:$0xff]  ;;  %v30_v32 = vld [vmem:[%s5383_s0 + $0x8] sm:$0xff]  ;;  %v76_v33 = vld [vmem:[%s5382_s3 + $0x70] sm:$0xff] }
   0xc   :  { %146 = vmatprep.subr.mxu0 %v63_v21  ;;  %496 = vmatprep.subr.mxu1 %v2930_v22  ;;  %v73_v34 = vld [vmem:[%s5382_s3 + $0x58] sm:$0xff]  ;;  %v72_v35 = vld [vmem:[%s5382_s3 + $0x50] sm:$0xff]  ;;  %v32_v36 = vld [vmem:[%s5384_s1 + $0x8] sm:$0xff]  ;;  %v3979_v21 = vsub.s32 1, %v3944_v7 }
   0xd   :  { %147 = vmatpush1.msra.mxu0 %v62_v23  ;;  %497 = vmatpush1.msra.mxu1 %v2929_v24  ;;  %v3826_v37 = vld [vmem:[%s5385_s6 + $0x10] sm:$0xff]  ;;  %v69_v38 = vld [vmem:[%s5382_s3 + $0x38] sm:$0xff]  ;;  %v3847_v42 = vld [vmem:[%s5385_s6] sm:$0xff] }
   0xe   :  { %2923 = vmatmul.mubr.msk.f32.vlgmr.msra.gmra.mxu0 %vm109_vm0, %v29_v25  ;;  %213 = vmatprep.subr.mxu0 %v85_v26  ;;  %v68_v39 = vld [vmem:[%s5382_s3 + $0x30] sm:$0xff]  ;;  %v65_v40 = vld [vmem:[%s5382_s3 + $0x18] sm:$0xff]  ;;  %v2948_v43 = vld [vmem:[%s5382_s3 + $0x188] sm:$0xff] }
   0xf   :  { %2954 = vmatmul.mubr.msk.f32.vlgmr.msra.gmra.mxu1 %vm109_vm0, %v3788_v27  ;;  %214 = vmatpush1.msra.mxu0 %v84_v28  ;;  %v64_v41 = vld [vmem:[%s5382_s3 + $0x10] sm:$0xff]  ;;  %v2947_v44 = vld [vmem:[%s5382_s3 + $0x180] sm:$0xff]  ;;  %v2944_v45 = vld [vmem:[%s5382_s3 + $0x168] sm:$0xff] }
  0x10   :  { %215 = vmatprep.subr.mxu0 %v81_v29  ;;  %186 = vmatprep.mubr.f32.mxu0 %v3654_v3  ;;  %v2943_v46 = vld [vmem:[%s5382_s3 + $0x160] sm:$0xff]  ;;  %v48_v47 = vld [vmem:[%s5385_s6 + $0x70] sm:$0xff]  ;;  %v2940_v48 = vld [vmem:[%s5382_s3 + $0x148] sm:$0xff] }
  0x11   :  { %216 = vmatpush1.msra.mxu0 %v80_v30  ;;  %536 = vmatprep.mubr.f32.mxu1 %v3654_v3  ;;  %v2939_v49 = vld [vmem:[%s5382_s3 + $0x140] sm:$0xff]  ;;  %v2936_v50 = vld [vmem:[%s5382_s3 + $0x128] sm:$0xff]  ;;  %v44_v57 = vld [vmem:[%s5385_s6 + $0x50] sm:$0xff] }
  0x12   :  { %217 = vmatprep.subr.mxu0 %v77_v31  ;;  %2924 = vmatmul.mubr.msk.f32.gmra.mxu0 %vm109_vm0, %v30_v32  ;;  %v2935_v51 = vld [vmem:[%s5382_s3 + $0x120] sm:$0xff]  ;;  %v2932_v53 = vld [vmem:[%s5382_s3 + $0x108] sm:$0xff]  ;;  %v37_v59 = vld [vmem:[%s5385_s6 + $0x18] sm:$0xff] }
  0x13   :  { %218 = vmatpush1.msra.mxu0 %v76_v33  ;;  %257 = vmatprep.mubr.f32.mxu0 %v3654_v3  ;;  %v46_v52 = vld [vmem:[%s5385_s6 + $0x60] sm:$0xff]  ;;  %v2928_v55 = vld [vmem:[%s5382_s3 + $0xe8] sm:$0xff]  ;;  %v61_v26 = vld [vmem:[%s5386_s7 + $0x58] sm:$0xff] }
  0x14   :  { %219 = vmatprep.subr.mxu0 %v73_v34  ;;  %2955 = vmatmul.mubr.msk.f32.gmra.mxu1 %vm109_vm0, %v32_v36  ;;  %v2931_v54 = vld [vmem:[%s5382_s3 + $0x100] sm:$0xff]  ;;  %v39_v60 = vld [vmem:[%s5385_s6 + $0x28] sm:$0xff] }
  0x15   :  { %220 = vmatpush1.msra.mxu0 %v72_v35  ;;  %315 = vrot.lane.b32.xlu0 %v3826_v37, %s3655_s19  ;;  %v2927_v56 = vld [vmem:[%s5382_s3 + $0xe0] sm:$0xff]  ;;  %v3926_v61 = vld [vmem:[%s5385_s6 + $0x8] sm:$0xff]  ;;  %v49_v35 = vld [vmem:[%s5385_s6 + $0x78] sm:$0xff] }
  0x16   :  { %221 = vmatprep.subr.mxu0 %v69_v38  ;;  %3272 = vmatprep.subr.mxu1 %v3654_v3  ;;  %v42_v58 = vld [vmem:[%s5385_s6 + $0x40] sm:$0xff] }
  0x17   :  { %222 = vmatpush1.msra.mxu0 %v68_v39  ;;  %v2922_v10 = vld [vmem:[%s5382_s3 + $0xc0] ss:$8 sm:$0xf]  ;;  %3296 = vmatprep.mubr.msk.f32.mxu1 %vm3658_vm1, %v3654_v3 }
  0x18   :  { %223 = vmatprep.subr.mxu0 %v65_v40  ;;  %v3960_v12 = vld [vmem:[%s5382_s3 + $0x1a0] ss:$8 sm:$0xf]  ;;  %v92_v14 = vrot.slane %v2922_v10, %v3947_v8  ;;  %v3998_v30 = vrot.slane %v2922_v10, %v3979_v21 }
  0x19   :  { %224 = vmatpush1.msra.mxu0 %v64_v41  ;;  %305 = vrot.lane.b32.xlu0 %v3847_v42, %s3656_s30  ;;  %v3968_v15 = vrot.slane %v3960_v12, %v3955_v11  ;;  %v3974_v18 = vrot.slane %v3960_v12, %v3963_v13  ;;  %v58_v39 = vld [vmem:[%s5386_s7 + $0x40] sm:$0xff]  ;;  %v47_v41 = vld [vmem:[%s5385_s6 + $0x68] sm:$0xff] }
  0x1a   :  { %2925 = vmatmul.mubr.msk.f32.vlgmr.msra.gmra.mxu0 %vm109_vm0, %v29_v25  ;;  %409 = vmatprep.subr.mxu0 %v2948_v43  ;;  %v57_v43 = vld [vmem:[%s5386_s7 + $0x38] sm:$0xff] }
  0x1b   :  { %410 = vmatpush1.msra.mxu0 %v2947_v44  ;;  %263 = vmatprep.mubr.f32.mxu0 %v3654_v3  ;;  %v104_v44 = vrot.slane %v2922_v10, %v3963_v13 }
  0x1c   :  { %411 = vmatprep.subr.mxu0 %v2944_v45 }
  0x1d   :  { %412 = vmatpush1.msra.mxu0 %v2943_v46  ;;  %617 = vrot.lane.b32.xlu0 %v48_v47, %s3656_s30  ;;  %v56_v47 = vld [vmem:[%s5386_s7 + $0x30] sm:$0xff] }
  0x1e   :  { %413 = vmatprep.subr.mxu0 %v2940_v48  ;;  %2926 = vmatmul.mubr.msk.f32.gmra.mxu0 %vm109_vm0, %v30_v32  ;;  %v60_v32 = vld [vmem:[%s5386_s7 + $0x50] sm:$0xff] }
  0x1f   :  { %414 = vmatpush1.msra.mxu0 %v2939_v49  ;;  %453 = vmatprep.mubr.f32.mxu0 %v3654_v3 }
  0x20   :  { %415 = vmatprep.subr.mxu0 %v2936_v50  ;;  %v100_v50 = vrot.slane %v2922_v10, %v3955_v11  ;;  %v4069_v10 = vld [vmem:[%s5386_s7 + $0x18] sm:$0xff] }
  0x21   :  { %416 = vmatpush1.msra.mxu0 %v2935_v51  ;;  %613 = vrot.lane.b32.xlu0 %v46_v52, %s3656_s30  ;;  %v45_v51 = vld [vmem:[%s5385_s6 + $0x58] sm:$0xff] }
  0x22   :  { %417 = vmatprep.subr.mxu0 %v2932_v53  ;;  %v55_v53 = vld [vmem:[%s5386_s7 + $0x28] sm:$0xff] }
  0x23   :  { %418 = vmatpush1.msra.mxu0 %v2931_v54 }
  0x24   :  { %419 = vmatprep.subr.mxu0 %v2928_v55 }
  0x25   :  { %420 = vmatpush1.msra.mxu0 %v2927_v56  ;;  %609 = vrot.lane.b32.xlu0 %v44_v57, %s3656_s30  ;;  %v54_v57 = vld [vmem:[%s5386_s7 + $0x20] sm:$0xff] }
  0x26   :  { %2952 = vmatmul.mubr.msk.f32.vlgmr.msra.gmra.mxu0 %vm109_vm0, %v3788_v27  ;;  %3245 = vmatprep.subr.mxu0 %v3654_v3 }
  0x27   :  { %459 = vmatprep.mubr.f32.mxu0 %v3654_v3 }
  0x29   :  { %605 = vrot.lane.b32.xlu0 %v42_v58, %s3656_s30 }
  0x2a   :  { %2953 = vmatmul.mubr.msk.f32.gmra.mxu0 %vm109_vm0, %v32_v36 }
  0x2b   :  { %3269 = vmatprep.mubr.msk.f32.mxu0 %vm3658_vm1, %v3654_v3 }
  0x2d   :  { %317 = vrot.lane.b32.xlu0 %v37_v59, %s3655_s19 }
  0x31   :  { %599 = vrot.lane.b32.xlu0 %v39_v60, %s3656_s30  ;;  %v43_v60 = vld [vmem:[%s5385_s6 + $0x48] sm:$0xff] }
  0x35   :  { %274 = vrot.lane.b32.xlu0 %v3826_v37, %s3657_s20  ;;  %v59_v37 = vld [vmem:[%s5386_s7 + $0x48] sm:$0xff] }
  0x39   :  { %307 = vrot.lane.b32.xlu0 %v3926_v61, %s3656_s30 }
  0x87   :  { %v3930_v62 = vpop.permute.xlu0 %315 }
  0x8b   :  { %v3932_v63 = vpop.permute.xlu0 %305 }
  0x8f   :  { %v3934_v0 = vpop.permute.xlu0 %617 }
  0x93   :  { %v3936_v1 = vpop.permute.xlu0 %613 }
  0x97   :  { %v3938_v2 = vpop.permute.xlu0 %609 }
  0x9b   :  { %v3940_v4 = vpop.permute.xlu0 %605 }
  0x9f   :  { %v3942_v6 = vpop.permute.xlu0 %317 }
  0xa3   :  { %v3949_v9 = vpop.permute.xlu0 %599 }
  0xa7   :  { %v3970_v17 = vpop.permute.xlu0 %274 }
  0xce   :  { %v182_v16 = vpop.f32.mrf.mxu0 }
  0xcf   :  { %v3976_v19 = vadd.f32 %v182_v16, %v92_v14  ;;  %v532_v20 = vpop.f32.mrf.mxu1  ;;  %v4076_v16 = vld [vmem:[%s5386_s7 + $0x10] sm:$0xff] }
  0xd0   :  { %v3982_v22 = vadd.f32 %v532_v20, %v3968_v15  ;;  %v3984_v23 = vpop.f32.mrf.mxu0 }
  0xd1   :  { %v534_v24 = vpop.f32.mrf.mxu1  ;;  %v280_v25 = vmul.f32 %v3970_v17, %v3976_v19 }
  0xd2   :  { %v3992_v27 = vadd.f32 %v534_v24, %v3974_v18  ;;  %v571_v28 = vmul.f32 %v3982_v22, %v3930_v62  ;;  %v188_v29 = vpop.f32.mrf.mxu0  ;;  %v41_v24 = vld [vmem:[%s5385_s6 + $0x38] sm:$0xff] }
  0xd3   :  { %288 = vrot.lane.b32.xlu0 %v280_v25, %s3655_s19  ;;  %v4000_v31 = vadd.f32 %v188_v29, %v92_v14  ;;  %v4087_v25 = vrot.slane %v3960_v12, %v3979_v21 }
  0xd4   :  { %575 = vrot.lane.b32.xlu1 %v571_v28, %s3655_s19  ;;  %v861_v33 = vmul.f32 %v3992_v27, %v61_v26  ;;  %v190_v34 = vpop.f32.mrf.mxu0  ;;  %v860_v38 = vmul.f32 %v3992_v27, %v60_v32  ;;  %v859_v40 = vmul.f32 %v3992_v27, %v59_v37  ;;  %v858_v46 = vmul.f32 %v3992_v27, %v58_v39  ;;  %v4092_v26 = vld [vmem:[%s5386_s7 + $0x8] sm:$0xff]  ;;  %v4100_v32 = vld [vmem:[%s5386_s7] sm:$0xff]  ;;  %v538_v39 = vpop.f32.mrf.mxu1 }
  0xd5   :  { %v4011_v36 = vadd.f32 %v190_v34, %v3998_v30  ;;  %v857_v48 = vmul.f32 %v3992_v27, %v57_v43  ;;  %v856_v54 = vmul.f32 %v3992_v27, %v56_v47  ;;  %v855_v58 = vmul.f32 %v3992_v27, %v55_v53 }
  0xd6   :  { %3273 = vmatpush3.msra.mxu1 %v861_v33  ;;  %v854_v14 = vmul.f32 %v3992_v27, %v54_v57  ;;  %v853_v20 = vmul.f32 %v3992_v27, %v4069_v10  ;;  %v852_v29 = vmul.f32 %v3992_v27, %v4076_v16  ;;  %v851_v34 = vmul.f32 %v3992_v27, %v4092_v26 }
  0xd7   :  { %3274 = vmatprep.subr.mxu1 %v3654_v3  ;;  %276 = vrot.lane.b32.xlu0 %v37_v59, %s3657_s20 }
  0xd8   :  { %3275 = vmatpush3.msra.mxu1 %v860_v38  ;;  %619 = vrot.lane.b32.xlu1 %v49_v35, %s3656_s30  ;;  %v366_v35 = vrot.slane %v3960_v12, %v3947_v8  ;;  %v40_v38 = vld [vmem:[%s5385_s6 + $0x30] sm:$0xff]  ;;  %v4120_v12 = vadd.f32 %v538_v39, %v3968_v15  ;;  %v4136_v15 = vadd.f32 %v3984_v23, %v3998_v30 }
  0xd9   :  { %3276 = vmatprep.subr.mxu1 %v3654_v3  ;;  %v568_v23 = vmul.f32 %v3982_v22, %v3932_v63 }
  0xda   :  { %3277 = vmatpush3.msra.mxu1 %v859_v40  ;;  %v4032_v45 = vpop.f32.mrf.mxu0  ;;  %v850_v40 = vmul.f32 %v3992_v27, %v4100_v32  ;;  %v572_v27 = vmul.f32 %v4120_v12, %v3942_v6 }
  0xdb   :  { %3278 = vmatprep.subr.mxu1 %v3654_v3  ;;  %v4131_v47 = vadd.f32 %v4032_v45, %v100_v50 }
  0xdc   :  { %3279 = vmatpush3.msra.mxu1 %v858_v46  ;;  %615 = vrot.lane.b32.xlu1 %v47_v41, %s3656_s30  ;;  %v261_v49 = vpop.f32.mrf.mxu0  ;;  %v38_v46 = vld [vmem:[%s5385_s6 + $0x20] sm:$0xff] }
  0xdd   :  { %3280 = vmatprep.subr.mxu1 %v3654_v3  ;;  %v4046_v52 = vadd.f32 %v261_v49, %v104_v44  ;;  %v281_v49 = vmul.f32 %v3970_v17, %v4136_v15 }
  0xde   :  { %3281 = vmatpush3.msra.mxu1 %v857_v48  ;;  %v265_v55 = vpop.f32.mrf.mxu0  ;;  %v321_v48 = vmul.f32 %v3930_v62, %v4131_v47 }
  0xdf   :  { %3282 = vmatprep.subr.mxu1 %v3654_v3  ;;  %v4053_v56 = vadd.f32 %v265_v55, %v100_v50 }
  0xe0   :  { %3283 = vmatpush3.msra.mxu1 %v856_v54  ;;  %611 = vrot.lane.b32.xlu1 %v45_v51, %s3656_s30  ;;  %v267_v59 = vpop.f32.mrf.mxu0 }
  0xe1   :  { %3284 = vmatprep.subr.mxu1 %v3654_v3  ;;  %v4064_v5 = vadd.f32 %v267_v59, %v104_v44 }
  0xe2   :  { %3285 = vmatpush3.msra.mxu1 %v855_v58 }
  0xe3   :  { %3286 = vmatprep.subr.mxu1 %v3654_v3 }
  0xe4   :  { %3287 = vmatpush3.msra.mxu1 %v854_v14  ;;  %607 = vrot.lane.b32.xlu1 %v43_v60, %s3656_s30 }
  0xe5   :  { %3288 = vmatprep.subr.mxu1 %v3654_v3 }
  0xe6   :  { %3289 = vmatpush3.msra.mxu1 %v853_v20  ;;  %v455_v28 = vpop.f32.mrf.mxu0 }
  0xe7   :  { %3290 = vmatprep.subr.mxu1 %v3654_v3  ;;  %v4142_v51 = vadd.f32 %v455_v28, %v366_v35 }
  0xe8   :  { %3291 = vmatpush3.msra.mxu1 %v852_v29  ;;  %603 = vrot.lane.b32.xlu1 %v41_v24, %s3656_s30  ;;  %v457_v33 = vpop.f32.mrf.mxu0 }
  0xe9   :  { %v458_v37 = vadd.f32 %v457_v33, %v4087_v25  ;;  %3292 = vmatprep.subr.mxu1 %v3654_v3  ;;  %v545_v45 = vmul.f32 %v4142_v51, %v3970_v17 }
  0xea   :  { %3293 = vmatpush3.msra.mxu1 %v851_v34  ;;  %v461_v41 = vpop.f32.mrf.mxu0 }
  0xeb   :  { %v546_v43 = vmul.f32 %v458_v37, %v3970_v17  ;;  %3294 = vmatprep.subr.mxu1 %v3654_v3  ;;  %v4116_v44 = vadd.f32 %v461_v41, %v366_v35  ;;  %v567_v62 = vmul.f32 %v458_v37, %v3932_v63 }
  0xec   :  { %3295 = vmatpush3.msra.mxu1 %v850_v40  ;;  %601 = vrot.lane.b32.xlu1 %v40_v38, %s3656_s30 }
  0xed   :  { %555 = vrot.lane.b32.xlu0 %v546_v43, %s3655_s19  ;;  %3299 = vmatprep.subr.mxu1 %v3654_v3 }
  0xf0   :  { %597 = vrot.lane.b32.xlu1 %v38_v46, %s3656_s30 }
  0xf4   :  { %577 = vrot.lane.b32.xlu1 %v572_v27, %s3655_s19 }
  0xf8   :  { %325 = vrot.lane.b32.xlu1 %v321_v48, %s3655_s19 }
  0xfc   :  { %290 = vrot.lane.b32.xlu1 %v281_v49, %s3655_s19 }
 0x100   :  { %553 = vrot.lane.b32.xlu1 %v545_v45, %s3655_s19 }
 0x146   :  { %v576_v50 = vpop.permute.xlu1 %575 }
 0x147   :  { %v4152_v30 = vadd.f32 %v576_v50, %v567_v62  ;;  %v582_v53 = vadd.f32 %v576_v50, %v568_v23 }
 0x149   :  { %v654_v22 = vmul.f32 %v3934_v0, %v582_v53  ;;  %v653_v58 = vmul.f32 %v3934_v0, %v4152_v30  ;;  %v650_v24 = vmul.f32 %v3936_v1, %v582_v53  ;;  %v649_v28 = vmul.f32 %v3936_v1, %v4152_v30 }
 0x14a   :  { %v4154_v54 = vpop.permute.xlu1 %619  ;;  %v646_v35 = vmul.f32 %v3938_v2, %v582_v53  ;;  %v645_v37 = vmul.f32 %v3938_v2, %v4152_v30  ;;  %v642_v41 = vmul.f32 %v3940_v4, %v582_v53  ;;  %v641_v43 = vmul.f32 %v3940_v4, %v4152_v30 }
 0x14b   :  { %v656_v55 = vmul.f32 %v4154_v54, %v582_v53  ;;  %v655_v17 = vmul.f32 %v4154_v54, %v4152_v30  ;;  %v636_v23 = vmul.f32 %v3949_v9, %v582_v53  ;;  %v635_v62 = vmul.f32 %v3949_v9, %v4152_v30 }
 0x14d   :  { %731 = vrot.lane.b32.xlu1 %v656_v55, %s3656_s30  ;;  %729 = vrot.lane.b32.xlu0 %v655_v17, %s3656_s30  ;;  %v311_v17 = vmul.f32 %v3932_v63, %v4136_v15 }
 0x14e   :  { %v4161_v57 = vpop.permute.xlu1 %615 }
 0x14f   :  { %v652_v60 = vmul.f32 %v4161_v57, %v582_v53  ;;  %v651_v14 = vmul.f32 %v4161_v57, %v4152_v30 }
 0x151   :  { %727 = vrot.lane.b32.xlu1 %v654_v22, %s3656_s30  ;;  %725 = vrot.lane.b32.xlu0 %v653_v58, %s3656_s30  ;;  %v312_v22 = vmul.f32 %v3932_v63, %v4131_v47 }
 0x152   :  { %v4168_v59 = vpop.permute.xlu1 %611 }
 0x153   :  { %v648_v29 = vmul.f32 %v4168_v59, %v582_v53  ;;  %v647_v33 = vmul.f32 %v4168_v59, %v4152_v30 }
 0x155   :  { %723 = vrot.lane.b32.xlu1 %v652_v60, %s3656_s30  ;;  %721 = vrot.lane.b32.xlu0 %v651_v14, %s3656_s30 }
 0x156   :  { %v4175_v20 = vpop.permute.xlu1 %607 }
 0x157   :  { %v644_v39 = vmul.f32 %v4175_v20, %v582_v53  ;;  %v643_v40 = vmul.f32 %v4175_v20, %v4152_v30 }
 0x159   :  { %719 = vrot.lane.b32.xlu1 %v650_v24, %s3656_s30  ;;  %717 = vrot.lane.b32.xlu0 %v649_v28, %s3656_s30 }
 0x15a   :  { %v4185_v34 = vpop.permute.xlu1 %603 }
 0x15b   :  { %v639_v27 = vmul.f32 %v4185_v34, %v4152_v30  ;;  %v640_v48 = vmul.f32 %v4185_v34, %v582_v53 }
 0x15d   :  { %715 = vrot.lane.b32.xlu1 %v648_v29, %s3656_s30  ;;  %713 = vrot.lane.b32.xlu0 %v647_v33, %s3656_s30 }
 0x15e   :  { %v4194_v38 = vpop.permute.xlu1 %601 }
 0x15f   :  { %v638_v45 = vmul.f32 %v4194_v38, %v582_v53  ;;  %v637_v50 = vmul.f32 %v4194_v38, %v4152_v30 }
 0x161   :  { %711 = vrot.lane.b32.xlu1 %v646_v35, %s3656_s30  ;;  %709 = vrot.lane.b32.xlu0 %v645_v37, %s3656_s30 }
 0x162   :  { %v4204_v46 = vpop.permute.xlu1 %597 }
 0x163   :  { %v634_v14 = vmul.f32 %v4204_v46, %v582_v53  ;;  %v633_v24 = vmul.f32 %v4204_v46, %v4152_v30 }
 0x165   :  { %707 = vrot.lane.b32.xlu1 %v644_v39, %s3656_s30  ;;  %705 = vrot.lane.b32.xlu0 %v643_v40, %s3656_s30 }
 0x166   :  { %v4213_v49 = vpop.permute.xlu1 %577 }
 0x169   :  { %703 = vrot.lane.b32.xlu1 %v642_v41, %s3656_s30  ;;  %701 = vrot.lane.b32.xlu0 %v641_v43, %s3656_s30 }
 0x16a   :  { %v326_v55 = vpop.permute.xlu1 %325 }
 0x16b   :  { %v331_v58 = vadd.f32 %v326_v55, %v311_v17  ;;  %v332_v60 = vadd.f32 %v326_v55, %v312_v22  ;;  %v4281_v22 = vpop.permute.xlu0 %307 }
 0x16d   :  { %697 = vrot.lane.b32.xlu1 %v639_v27, %s3656_s30  ;;  %699 = vrot.lane.b32.xlu0 %v640_v48, %s3656_s30  ;;  %v1030_v15 = vmul.f32 %v4154_v54, %v332_v60  ;;  %v1029_v28 = vmul.f32 %v4154_v54, %v331_v58  ;;  %v1028_v63 = vmul.f32 %v3934_v0, %v332_v60 }
 0x16e   :  { %v1027_v47 = vmul.f32 %v3934_v0, %v331_v58  ;;  %v1026_v30 = vmul.f32 %v4161_v57, %v332_v60  ;;  %v1025_v53 = vmul.f32 %v4161_v57, %v331_v58  ;;  %v1024_v29 = vmul.f32 %v3936_v1, %v332_v60 }
 0x16f   :  { %v1023_v33 = vmul.f32 %v3936_v1, %v331_v58  ;;  %v1022_v35 = vmul.f32 %v4168_v59, %v332_v60  ;;  %v1021_v37 = vmul.f32 %v4168_v59, %v331_v58  ;;  %v1020_v39 = vmul.f32 %v3938_v2, %v332_v60 }
 0x170   :  { %v1019_v40 = vmul.f32 %v3938_v2, %v331_v58  ;;  %v1018_v41 = vmul.f32 %v4175_v20, %v332_v60  ;;  %v1017_v43 = vmul.f32 %v4175_v20, %v331_v58  ;;  %v1016_v27 = vmul.f32 %v3940_v4, %v332_v60 }
 0x171   :  { %695 = vrot.lane.b32.xlu1 %v638_v45, %s3656_s30  ;;  %693 = vrot.lane.b32.xlu0 %v637_v50, %s3656_s30  ;;  %v1015_v48 = vmul.f32 %v3940_v4, %v331_v58  ;;  %v1014_v45 = vmul.f32 %v4185_v34, %v332_v60  ;;  %v1013_v50 = vmul.f32 %v4185_v34, %v331_v58 }
 0x172   :  { %v1011_v55 = vmul.f32 %v4194_v38, %v331_v58  ;;  %v1012_v17 = vmul.f32 %v4194_v38, %v332_v60 }
 0x175   :  { %691 = vrot.lane.b32.xlu1 %v636_v23, %s3656_s30  ;;  %689 = vrot.lane.b32.xlu0 %v635_v62, %s3656_s30  ;;  %v463_v23 = vpop.f32.mrf.mxu0 }
 0x176   :  { %v4275_v62 = vadd.f32 %v463_v23, %v4087_v25  ;;  %v570_v25 = vmul.f32 %v4120_v12, %v4281_v22 }
 0x179   :  { %687 = vrot.lane.b32.xlu1 %v634_v14, %s3656_s30  ;;  %685 = vrot.lane.b32.xlu0 %v633_v24, %s3656_s30  ;;  %v569_v14 = vmul.f32 %v4275_v62, %v4281_v22  ;;  %v1009_v24 = vmul.f32 %v3949_v9, %v331_v58 }
 0x17d   :  { %1101 = vrot.lane.b32.xlu1 %v1030_v15, %s3656_s30  ;;  %1099 = vrot.lane.b32.xlu0 %v1029_v28, %s3656_s30  ;;  %v1010_v15 = vmul.f32 %v3949_v9, %v332_v60  ;;  %v4292_v28 = vadd.f32 %v4213_v49, %v569_v14 }
 0x17f   :  { %v1397_v12 = vmul.f32 %v4154_v54, %v4292_v28  ;;  %v1387_v23 = vmul.f32 %v3938_v2, %v4292_v28 }
 0x181   :  { %1097 = vrot.lane.b32.xlu1 %v1028_v63, %s3656_s30  ;;  %1095 = vrot.lane.b32.xlu0 %v1027_v47, %s3656_s30  ;;  %v4295_v63 = vadd.f32 %v4213_v49, %v570_v25  ;;  %v1007_v47 = vmul.f32 %v4204_v46, %v331_v58  ;;  %v1395_v49 = vmul.f32 %v3934_v0, %v4292_v28 }
 0x183   :  { %v1396_v58 = vmul.f32 %v3934_v0, %v4295_v63  ;;  %v1386_v25 = vmul.f32 %v4175_v20, %v4295_v63 }
 0x185   :  { %1093 = vrot.lane.b32.xlu1 %v1026_v30, %s3656_s30  ;;  %1091 = vrot.lane.b32.xlu0 %v1025_v53, %s3656_s30  ;;  %v1008_v30 = vmul.f32 %v4204_v46, %v332_v60  ;;  %v1398_v53 = vmul.f32 %v4154_v54, %v4295_v63  ;;  %v4311_v60 = vpop.permute.xlu0 %288 }
 0x189   :  { %1089 = vrot.lane.b32.xlu1 %v1024_v29, %s3656_s30  ;;  %1087 = vrot.lane.b32.xlu0 %v1023_v33, %s3656_s30  ;;  %v1393_v29 = vmul.f32 %v4161_v57, %v4292_v28  ;;  %v1394_v33 = vmul.f32 %v4161_v57, %v4295_v63 }
 0x18d   :  { %1085 = vrot.lane.b32.xlu1 %v1022_v35, %s3656_s30  ;;  %1083 = vrot.lane.b32.xlu0 %v1021_v37, %s3656_s30  ;;  %v4319_v35 = vpop.permute.xlu1 %290  ;;  %v4323_v37 = vpop.permute.xlu0 %276 }
 0x191   :  { %1081 = vrot.lane.b32.xlu1 %v1020_v39, %s3656_s30  ;;  %1079 = vrot.lane.b32.xlu0 %v1019_v40, %s3656_s30  ;;  %v1391_v39 = vmul.f32 %v3936_v1, %v4292_v28  ;;  %v1392_v40 = vmul.f32 %v3936_v1, %v4295_v63 }
 0x195   :  { %1077 = vrot.lane.b32.xlu1 %v1018_v41, %s3656_s30  ;;  %1075 = vrot.lane.b32.xlu0 %v1017_v43, %s3656_s30  ;;  %v4331_v41 = vpop.permute.xlu1 %553  ;;  %v4333_v43 = vpop.permute.xlu0 %555 }
 0x199   :  { %1073 = vrot.lane.b32.xlu1 %v1016_v27, %s3656_s30  ;;  %1071 = vrot.lane.b32.xlu0 %v1015_v48, %s3656_s30  ;;  %v1389_v27 = vmul.f32 %v4168_v59, %v4292_v28  ;;  %v1390_v48 = vmul.f32 %v4168_v59, %v4295_v63 }
 0x19d   :  { %1069 = vrot.lane.b32.xlu1 %v1014_v45, %s3656_s30  ;;  %1067 = vrot.lane.b32.xlu0 %v1013_v50, %s3656_s30 }
 0x1a1   :  { %1063 = vrot.lane.b32.xlu1 %v1011_v55, %s3656_s30  ;;  %1065 = vrot.lane.b32.xlu0 %v1012_v17, %s3656_s30  ;;  %v1388_v55 = vmul.f32 %v3938_v2, %v4295_v63 }
 0x1a5   :  { %1059 = vrot.lane.b32.xlu1 %v1009_v24, %s3656_s30  ;;  %1061 = vrot.lane.b32.xlu0 %v1010_v15, %s3656_s30  ;;  %v1385_v15 = vmul.f32 %v4175_v20, %v4292_v28 }
 0x1a9   :  { %1055 = vrot.lane.b32.xlu1 %v1007_v47, %s3656_s30  ;;  %1057 = vrot.lane.b32.xlu0 %v1008_v30, %s3656_s30 }
 0x1ad   :  { %1471 = vrot.lane.b32.xlu1 %v1397_v12, %s3656_s30  ;;  %1473 = vrot.lane.b32.xlu0 %v1398_v53, %s3656_s30  ;;  %v1383_v53 = vmul.f32 %v3940_v4, %v4292_v28 }
 0x1b1   :  { %1467 = vrot.lane.b32.xlu1 %v1395_v49, %s3656_s30  ;;  %1469 = vrot.lane.b32.xlu0 %v1396_v58, %s3656_s30  ;;  %v1384_v49 = vmul.f32 %v3940_v4, %v4295_v63 }
 0x1b5   :  { %1463 = vrot.lane.b32.xlu1 %v1393_v29, %s3656_s30  ;;  %1465 = vrot.lane.b32.xlu0 %v1394_v33, %s3656_s30 }
 0x1b9   :  { %1459 = vrot.lane.b32.xlu1 %v1391_v39, %s3656_s30  ;;  %1461 = vrot.lane.b32.xlu0 %v1392_v40, %s3656_s30  ;;  %v1381_v39 = vmul.f32 %v4185_v34, %v4292_v28  ;;  %v1382_v40 = vmul.f32 %v4185_v34, %v4295_v63 }
 0x1bd   :  { %1455 = vrot.lane.b32.xlu1 %v1389_v27, %s3656_s30  ;;  %1457 = vrot.lane.b32.xlu0 %v1390_v48, %s3656_s30 }
 0x1bf   :  { %v732_v45 = vpop.permute.xlu1 %731  ;;  %v730_v50 = vpop.permute.xlu0 %729 }
 0x1c0   :  { %v745_v17 = vsel %vm733_vm2, %v730_v50, %v732_v45  ;;  %v1379_v50 = vmul.f32 %v4194_v38, %v4292_v28 }
 0x1c1   :  { %1451 = vrot.lane.b32.xlu1 %v1387_v23, %s3656_s30  ;;  %1453 = vrot.lane.b32.xlu0 %v1388_v55, %s3656_s30  ;;  %v1380_v23 = vmul.f32 %v4194_v38, %v4295_v63 }
 0x1c2   :  { %3246 = vmatpush3.xpose.msk.msra.mxu0 %vm746_vm3, %v745_v17 }
 0x1c3   :  { %v728_v14 = vpop.permute.xlu1 %727  ;;  %v726_v24 = vpop.permute.xlu0 %725  ;;  %3247 = vmatprep.subr.mxu0 %v3654_v3 }
 0x1c4   :  { %v744_v47 = vsel %vm733_vm2, %v726_v24, %v728_v14  ;;  %v1377_v24 = vmul.f32 %v3949_v9, %v4292_v28 }
 0x1c5   :  { %1447 = vrot.lane.b32.xlu1 %v1385_v15, %s3656_s30  ;;  %1449 = vrot.lane.b32.xlu0 %v1386_v25, %s3656_s30  ;;  %v1378_v15 = vmul.f32 %v3949_v9, %v4295_v63 }
 0x1c6   :  { %3248 = vmatpush3.xpose.msk.msra.mxu0 %vm746_vm3, %v744_v47 }
 0x1c7   :  { %v724_v30 = vpop.permute.xlu1 %723  ;;  %v722_v12 = vpop.permute.xlu0 %721  ;;  %3249 = vmatprep.subr.mxu0 %v3654_v3 }
 0x1c8   :  { %v743_v58 = vsel %vm733_vm2, %v722_v12, %v724_v30  ;;  %v1375_v12 = vmul.f32 %v4204_v46, %v4292_v28  ;;  %v282_v28 = vmul.f32 %v4323_v37, %v4000_v31 }
 0x1c9   :  { %1443 = vrot.lane.b32.xlu1 %v1383_v53, %s3656_s30  ;;  %1445 = vrot.lane.b32.xlu0 %v1384_v49, %s3656_s30  ;;  %v1376_v53 = vmul.f32 %v4204_v46, %v4295_v63 }
 0x1ca   :  { %3250 = vmatpush3.xpose.msk.msra.mxu0 %vm746_vm3, %v743_v58 }
 0x1cb   :  { %v720_v29 = vpop.permute.xlu1 %719  ;;  %v718_v33 = vpop.permute.xlu0 %717  ;;  %3251 = vmatprep.subr.mxu0 %v3654_v3 }
 0x1cc   :  { %v742_v27 = vsel %vm733_vm2, %v718_v33, %v720_v29  ;;  %v283_v33 = vmul.f32 %v4323_v37, %v4011_v36 }
 0x1cd   :  { %1439 = vrot.lane.b32.xlu1 %v1381_v39, %s3656_s30  ;;  %1441 = vrot.lane.b32.xlu0 %v1382_v40, %s3656_s30 }
 0x1ce   :  { %3252 = vmatpush3.xpose.msk.msra.mxu0 %vm746_vm3, %v742_v27 }
 0x1cf   :  { %v716_v48 = vpop.permute.xlu1 %715  ;;  %v714_v45 = vpop.permute.xlu0 %713  ;;  %3253 = vmatprep.subr.mxu0 %v3654_v3 }
 0x1d0   :  { %v741_v55 = vsel %vm733_vm2, %v714_v45, %v716_v48 }
 0x1d1   :  { %1435 = vrot.lane.b32.xlu1 %v1379_v50, %s3656_s30  ;;  %1437 = vrot.lane.b32.xlu0 %v1380_v23, %s3656_s30 }
 0x1d2   :  { %3254 = vmatpush3.xpose.msk.msra.mxu0 %vm746_vm3, %v741_v55 }
 0x1d3   :  { %v712_v17 = vpop.permute.xlu1 %711  ;;  %v710_v14 = vpop.permute.xlu0 %709  ;;  %3255 = vmatprep.subr.mxu0 %v3654_v3 }
 0x1d4   :  { %v740_v25 = vsel %vm733_vm2, %v710_v14, %v712_v17 }
 0x1d5   :  { %1431 = vrot.lane.b32.xlu1 %v1377_v24, %s3656_s30  ;;  %1433 = vrot.lane.b32.xlu0 %v1378_v15, %s3656_s30  ;;  %v297_v15 = vsel %vm296_vm4, %v4311_v60, %v4319_v35 }
 0x1d6   :  { %3256 = vmatpush3.xpose.msk.msra.mxu0 %vm746_vm3, %v740_v25 }
 0x1d7   :  { %v708_v47 = vpop.permute.xlu1 %707  ;;  %v706_v30 = vpop.permute.xlu0 %705  ;;  %3257 = vmatprep.subr.mxu0 %v3654_v3 }
 0x1d8   :  { %v739_v49 = vsel %vm733_vm2, %v706_v30, %v708_v47  ;;  %v270_v47 = vmul.f32 %v3976_v19, %v3847_v42 }
 0x1d9   :  { %1427 = vrot.lane.b32.xlu1 %v1375_v12, %s3656_s30  ;;  %1429 = vrot.lane.b32.xlu0 %v1376_v53, %s3656_s30 }
 0x1da   :  { %3258 = vmatpush3.xpose.msk.msra.mxu0 %vm746_vm3, %v739_v49  ;;  %v301_v30 = vadd.f32 %v297_v15, %v270_v47 }
 0x1db   :  { %v704_v58 = vpop.permute.xlu1 %703  ;;  %v702_v29 = vpop.permute.xlu0 %701  ;;  %3259 = vmatprep.subr.mxu0 %v3654_v3 }
 0x1dc   :  { %v738_v63 = vsel %vm733_vm2, %v702_v29, %v704_v58 }
 0x1dd   :  { %294 = vrot.lane.b32.xlu0 %v283_v33, %s3655_s19  ;;  %292 = vrot.lane.b32.xlu1 %v282_v28, %s3655_s19 }
 0x1de   :  { %3260 = vmatpush3.xpose.msk.msra.mxu0 %vm746_vm3, %v738_v63 }
 0x1df   :  { %v698_v39 = vpop.permute.xlu1 %697  ;;  %v700_v40 = vpop.permute.xlu0 %699  ;;  %3261 = vmatprep.subr.mxu0 %v3654_v3 }
 0x1e0   :  { %v737_v27 = vsel %vm733_vm2, %v698_v39, %v700_v40 }
 0x1e2   :  { %3262 = vmatpush3.xpose.msk.msra.mxu0 %vm746_vm3, %v737_v27 }
 0x1e3   :  { %v696_v48 = vpop.permute.xlu1 %695  ;;  %v694_v45 = vpop.permute.xlu0 %693  ;;  %3263 = vmatprep.subr.mxu0 %v3654_v3 }
 0x1e4   :  { %v736_v50 = vsel %vm733_vm2, %v694_v45, %v696_v48 }
 0x1e6   :  { %3264 = vmatpush3.xpose.msk.msra.mxu0 %vm746_vm3, %v736_v50 }
 0x1e7   :  { %v692_v23 = vpop.permute.xlu1 %691  ;;  %v690_v55 = vpop.permute.xlu0 %689  ;;  %3265 = vmatprep.subr.mxu0 %v3654_v3 }
 0x1e8   :  { %v735_v17 = vsel %vm733_vm2, %v690_v55, %v692_v23 }
 0x1ea   :  { %3266 = vmatpush3.xpose.msk.msra.mxu0 %vm746_vm3, %v735_v17 }
 0x1eb   :  { %v688_v14 = vpop.permute.xlu1 %687  ;;  %v686_v24 = vpop.permute.xlu0 %685  ;;  %3267 = vmatprep.subr.mxu0 %v3654_v3 }
 0x1ec   :  { %v734_v25 = vsel %vm733_vm2, %v686_v24, %v688_v14 }
 0x1ee   :  { %3268 = vmatpush3.xpose.msk.msra.mxu0 %vm746_vm3, %v734_v25 }
 0x1ef   :  { %v1102_v12 = vpop.permute.xlu1 %1101  ;;  %v1100_v53 = vpop.permute.xlu0 %1099  ;;  %3326 = vmatprep.subr.mxu0 %v3654_v3 }
 0x1f0   :  { %v1114_v49 = vsel %vm733_vm2, %v1100_v53, %v1102_v12 }
 0x1f1   :  { %3270 = vmatmul.mubr.msk.f32.vlgmr.msra.gmra.mxu0 %vm746_vm3, %v301_v30 }
 0x1f2   :  { %3327 = vmatpush3.xpose.msk.msra.mxu0 %vm746_vm3, %v1114_v49  ;;  %3350 = vmatprep.mubr.msk.f32.mxu0 %vm3658_vm1, %v3654_v3 }
 0x1f3   :  { %v1098_v60 = vpop.permute.xlu1 %1097  ;;  %v1096_v35 = vpop.permute.xlu0 %1095  ;;  %3328 = vmatprep.subr.mxu0 %v3654_v3 }
 0x1f4   :  { %v1113_v19 = vsel %vm733_vm2, %v1096_v35, %v1098_v60 }
 0x1f6   :  { %3329 = vmatpush3.xpose.msk.msra.mxu0 %vm746_vm3, %v1113_v19 }
 0x1f7   :  { %v1094_v58 = vpop.permute.xlu1 %1093  ;;  %v1092_v29 = vpop.permute.xlu0 %1091  ;;  %3330 = vmatprep.subr.mxu0 %v3654_v3 }
 0x1f8   :  { %v1112_v33 = vsel %vm733_vm2, %v1092_v29, %v1094_v58 }
 0x1fa   :  { %3331 = vmatpush3.xpose.msk.msra.mxu0 %vm746_vm3, %v1112_v33 }
 0x1fb   :  { %v1090_v28 = vpop.permute.xlu1 %1089  ;;  %v1088_v63 = vpop.permute.xlu0 %1087  ;;  %3332 = vmatprep.subr.mxu0 %v3654_v3 }
 0x1fc   :  { %v1111_v39 = vsel %vm733_vm2, %v1088_v63, %v1090_v28  ;;  %v561_v28 = vsel %vm296_vm4, %v4331_v41, %v4333_v43 }
 0x1fe   :  { %3333 = vmatpush3.xpose.msk.msra.mxu0 %vm746_vm3, %v1111_v39  ;;  %v543_v39 = vmul.f32 %v4142_v51, %v3847_v42 }
 0x1ff   :  { %v1086_v40 = vpop.permute.xlu1 %1085  ;;  %v1084_v27 = vpop.permute.xlu0 %1083  ;;  %3334 = vmatprep.subr.mxu0 %v3654_v3 }
 0x200   :  { %v1110_v48 = vsel %vm733_vm2, %v1084_v27, %v1086_v40  ;;  %v565_v40 = vadd.f32 %v561_v28, %v543_v39 }
 0x202   :  { %3335 = vmatpush3.xpose.msk.msra.mxu0 %vm746_vm3, %v1110_v48 }
 0x203   :  { %v1082_v45 = vpop.permute.xlu1 %1081  ;;  %v1080_v50 = vpop.permute.xlu0 %1079  ;;  %3336 = vmatprep.subr.mxu0 %v3654_v3 }
 0x204   :  { %v1109_v23 = vsel %vm733_vm2, %v1080_v50, %v1082_v45 }
 0x206   :  { %3337 = vmatpush3.xpose.msk.msra.mxu0 %vm746_vm3, %v1109_v23 }
 0x207   :  { %v1078_v55 = vpop.permute.xlu1 %1077  ;;  %v1076_v17 = vpop.permute.xlu0 %1075  ;;  %3338 = vmatprep.subr.mxu0 %v3654_v3 }
 0x208   :  { %v1108_v14 = vsel %vm733_vm2, %v1076_v17, %v1078_v55 }
 0x20a   :  { %3339 = vmatpush3.xpose.msk.msra.mxu0 %vm746_vm3, %v1108_v14 }
 0x20b   :  { %v1074_v24 = vpop.permute.xlu1 %1073  ;;  %v1072_v15 = vpop.permute.xlu0 %1071  ;;  %3340 = vmatprep.subr.mxu0 %v3654_v3 }
 0x20c   :  { %v1107_v25 = vsel %vm733_vm2, %v1072_v15, %v1074_v24 }
 0x20e   :  { %3341 = vmatpush3.xpose.msk.msra.mxu0 %vm746_vm3, %v1107_v25 }
 0x20f   :  { %v1070_v47 = vpop.permute.xlu1 %1069  ;;  %v1068_v30 = vpop.permute.xlu0 %1067  ;;  %3342 = vmatprep.subr.mxu0 %v3654_v3 }
 0x210   :  { %v1106_v12 = vsel %vm733_vm2, %v1068_v30, %v1070_v47 }
 0x212   :  { %3343 = vmatpush3.xpose.msk.msra.mxu0 %vm746_vm3, %v1106_v12 }
 0x213   :  { %v1064_v53 = vpop.permute.xlu1 %1063  ;;  %v1066_v49 = vpop.permute.xlu0 %1065  ;;  %3344 = vmatprep.subr.mxu0 %v3654_v3 }
 0x214   :  { %v1105_v60 = vsel %vm733_vm2, %v1064_v53, %v1066_v49 }
 0x216   :  { %3345 = vmatpush3.xpose.msk.msra.mxu0 %vm746_vm3, %v1105_v60 }
 0x217   :  { %v1060_v35 = vpop.permute.xlu1 %1059  ;;  %v1062_v19 = vpop.permute.xlu0 %1061  ;;  %3346 = vmatprep.subr.mxu0 %v3654_v3 }
 0x218   :  { %v1104_v58 = vsel %vm733_vm2, %v1060_v35, %v1062_v19 }
 0x21a   :  { %3347 = vmatpush3.xpose.msk.msra.mxu0 %vm746_vm3, %v1104_v58 }
 0x21b   :  { %v1056_v29 = vpop.permute.xlu1 %1055  ;;  %v1058_v33 = vpop.permute.xlu0 %1057  ;;  %3348 = vmatprep.subr.mxu0 %v3654_v3 }
 0x21c   :  { %v1103_v63 = vsel %vm733_vm2, %v1056_v29, %v1058_v33 }
 0x21e   :  { %3349 = vmatpush3.xpose.msk.msra.mxu0 %vm746_vm3, %v1103_v63 }
 0x21f   :  { %v1472_v27 = vpop.permute.xlu1 %1471  ;;  %v1474_v48 = vpop.permute.xlu0 %1473  ;;  %3407 = vmatprep.subr.mxu0 %v3654_v3 }
 0x220   :  { %v1486_v45 = vsel %vm733_vm2, %v1472_v27, %v1474_v48 }
 0x221   :  { %3351 = vmatmul.mubr.msk.f32.vlgmr.msra.gmra.mxu0 %vm746_vm3, %v565_v40 }
 0x222   :  { %3408 = vmatpush3.xpose.msk.msra.mxu0 %vm746_vm3, %v1486_v45  ;;  %3431 = vmatprep.mubr.msk.f32.mxu0 %vm3658_vm1, %v3654_v3 }
 0x223   :  { %v1468_v41 = vpop.permute.xlu1 %1467  ;;  %v1470_v43 = vpop.permute.xlu0 %1469  ;;  %3409 = vmatprep.subr.mxu0 %v3654_v3 }
 0x224   :  { %v1485_v42 = vsel %vm733_vm2, %v1468_v41, %v1470_v43 }
 0x226   :  { %3410 = vmatpush3.xpose.msk.msra.mxu0 %vm746_vm3, %v1485_v42 }
 0x227   :  { %v1464_v51 = vpop.permute.xlu1 %1463  ;;  %v1466_v50 = vpop.permute.xlu0 %1465  ;;  %3411 = vmatprep.subr.mxu0 %v3654_v3 }
 0x228   :  { %v1484_v23 = vsel %vm733_vm2, %v1464_v51, %v1466_v50  ;;  %v271_v51 = vmul.f32 %v4000_v31, %v3926_v61 }
 0x22a   :  { %3412 = vmatpush3.xpose.msk.msra.mxu0 %vm746_vm3, %v1484_v23 }
 0x22b   :  { %v1460_v55 = vpop.permute.xlu1 %1459  ;;  %v1462_v17 = vpop.permute.xlu0 %1461  ;;  %3413 = vmatprep.subr.mxu0 %v3654_v3 }
 0x22c   :  { %v1483_v14 = vsel %vm733_vm2, %v1460_v55, %v1462_v17 }
 0x22e   :  { %3414 = vmatpush3.xpose.msk.msra.mxu0 %vm746_vm3, %v1483_v14  ;;  %v33_v14 = vld [vmem:[%s5387_s2] sm:$0x3] }
 0x22f   :  { %v1456_v24 = vpop.permute.xlu1 %1455  ;;  %v1458_v15 = vpop.permute.xlu0 %1457  ;;  %3415 = vmatprep.subr.mxu0 %v3654_v3 }
 0x230   :  { %v1482_v25 = vsel %vm733_vm2, %v1456_v24, %v1458_v15  ;;  %v660_v24 = vrot.slane %v33_v14, %v3947_v8 }
 0x232   :  { %3416 = vmatpush3.xpose.msk.msra.mxu0 %vm746_vm3, %v1482_v25 }
 0x233   :  { %v1452_v47 = vpop.permute.xlu1 %1451  ;;  %v1454_v30 = vpop.permute.xlu0 %1453  ;;  %3417 = vmatprep.subr.mxu0 %v3654_v3 }
 0x234   :  { %v1481_v12 = vsel %vm733_vm2, %v1452_v47, %v1454_v30  ;;  %v322_v47 = vmul.f32 %v3942_v6, %v4053_v56 }
 0x236   :  { %3418 = vmatpush3.xpose.msk.msra.mxu0 %vm746_vm3, %v1481_v12 }
 0x237   :  { %v1448_v53 = vpop.permute.xlu1 %1447  ;;  %v1450_v49 = vpop.permute.xlu0 %1449  ;;  %3419 = vmatprep.subr.mxu0 %v3654_v3 }
 0x238   :  { %v1480_v60 = vsel %vm733_vm2, %v1448_v53, %v1450_v49 }
 0x23a   :  { %3420 = vmatpush3.xpose.msk.msra.mxu0 %vm746_vm3, %v1480_v60  ;;  %v4532_v60 = vrot.slane %v33_v14, %v3979_v21 }
 0x23b   :  { %v1444_v35 = vpop.permute.xlu1 %1443  ;;  %v1446_v19 = vpop.permute.xlu0 %1445  ;;  %3421 = vmatprep.subr.mxu0 %v3654_v3 }
 0x23c   :  { %v1479_v58 = vsel %vm733_vm2, %v1444_v35, %v1446_v19 }
 0x23e   :  { %3422 = vmatpush3.xpose.msk.msra.mxu0 %vm746_vm3, %v1479_v58 }
 0x23f   :  { %v1440_v29 = vpop.permute.xlu1 %1439  ;;  %v1442_v33 = vpop.permute.xlu0 %1441  ;;  %3423 = vmatprep.subr.mxu0 %v3654_v3 }
 0x240   :  { %v1478_v28 = vsel %vm733_vm2, %v1440_v29, %v1442_v33 }
 0x242   :  { %3424 = vmatpush3.xpose.msk.msra.mxu0 %vm746_vm3, %v1478_v28 }
 0x243   :  { %v1436_v63 = vpop.permute.xlu1 %1435  ;;  %v1438_v39 = vpop.permute.xlu0 %1437  ;;  %3425 = vmatprep.subr.mxu0 %v3654_v3 }
 0x244   :  { %v1477_v40 = vsel %vm733_vm2, %v1436_v63, %v1438_v39  ;;  %v313_v63 = vmul.f32 %v4281_v22, %v4011_v36  ;;  %v314_v39 = vmul.f32 %v4281_v22, %v4053_v56 }
 0x246   :  { %3426 = vmatpush3.xpose.msk.msra.mxu0 %vm746_vm3, %v1477_v40 }
 0x247   :  { %v1432_v27 = vpop.permute.xlu1 %1431  ;;  %v1434_v48 = vpop.permute.xlu0 %1433  ;;  %3427 = vmatprep.subr.mxu0 %v3654_v3 }
 0x248   :  { %v1476_v45 = vsel %vm733_vm2, %v1432_v27, %v1434_v48 }
 0x24a   :  { %3428 = vmatpush3.xpose.msk.msra.mxu0 %vm746_vm3, %v1476_v45 }
 0x24b   :  { %v1428_v41 = vpop.permute.xlu1 %1427  ;;  %v1430_v43 = vpop.permute.xlu0 %1429  ;;  %3429 = vmatprep.subr.mxu0 %v3654_v3 }
 0x24c   :  { %v1475_v42 = vsel %vm733_vm2, %v1428_v41, %v1430_v43 }
 0x24e   :  { %3430 = vmatpush3.xpose.msk.msra.mxu0 %vm746_vm3, %v1475_v42  ;;  %v4571_v42 = vld [vmem:[%s5386_s7 + $0x58] sm:$0xff] }
 0x24f   :  { %v293_v50 = vpop.permute.xlu1 %292  ;;  %v295_v23 = vpop.permute.xlu0 %294  ;;  %3488 = vmatprep.subr.mxu0 %v3654_v3 }
 0x250   :  { %v298_v55 = vsel %vm296_vm4, %v293_v50, %v295_v23  ;;  %v4593_v50 = vld [vmem:[%s5386_s7 + $0x48] sm:$0xff] }
 0x251   :  { %v302_v17 = vadd.f32 %v298_v55, %v271_v51  ;;  %v4583_v51 = vld [vmem:[%s5386_s7 + $0x50] sm:$0xff]  ;;  %v4603_v55 = vld [vmem:[%s5386_s7 + $0x40] sm:$0xff] }
 0x253   :  { %3432 = vmatmul.mubr.msk.f32.vlgmr.msra.gmra.mxu0 %vm746_vm3, %v302_v17 }
 0x254   :  { %3512 = vmatprep.mubr.msk.f32.mxu0 %vm3658_vm1, %v3654_v3 }
 0x2b1   :  { %v840_v15 = vpop.f32.mrf.mxu0 }
 0x2b2   :  { %v841_v61 = vadd.f32 %v840_v15, %v660_v24 }
 0x2b3   :  { %v3271_v31 = vpop.f32.mrf.mxu0 }
 0x2b4   :  { %v844_v25 = vsel %vm746_vm3, %v841_v61, -inf  ;;  %v4643_v31 = vld [vmem:[%s5386_s7 + $0x20] sm:$0xff] }
 0x2b5   :  { %845 = vmax.xlane.f32.xlu1 %v844_v25 }
 0x2c6   :  { %327 = vrot.lane.b32.xlu1 %v322_v47, %s3655_s19 }
 0x2e1   :  { %v1208_v30 = vpop.f32.mrf.mxu0 }
 0x2e2   :  { %v4527_v12 = vadd.f32 %v1208_v30, %v660_v24  ;;  %v4623_v24 = vld [vmem:[%s5386_s7 + $0x30] sm:$0xff] }
 0x2e3   :  { %v3352_v53 = vpop.f32.mrf.mxu0 }
 0x2e4   :  { %v1212_v49 = vsel %vm746_vm3, %v4527_v12, -inf  ;;  %v1226_v53 = vmul.f32 %v4603_v55, %v4046_v52 }
 0x2e5   :  { %1213 = vmax.xlane.f32.xlu0 %v1212_v49 }
 0x313   :  { %v1580_v35 = vpop.f32.mrf.mxu0 }
 0x314   :  { %v4535_v19 = vadd.f32 %v1580_v35, %v4532_v60 }
 0x315   :  { %v3433_v58 = vpop.f32.mrf.mxu0 }
 0x316   :  { %v1584_v6 = vsel %vm746_vm3, %v4535_v19, -inf }
 0x317   :  { %1585 = vmax.xlane.f32.xlu0 %v1584_v6 }
 0x33e   :  { %v846_v29 = vpop.xlane.xlu1 %845 }
 0x33f   :  { %v847_v33 = vsub.f32 %v841_v61, %v846_v29 }
 0x341   :  { %v848_v28 = vmul.f32 1.442695, %v847_v33 }
 0x342   :  { %v328_v40 = vpop.permute.xlu1 %327 }
 0x343   :  { %3605 = vpow2.f32 %v848_v28  ;;  %v4543_v27 = vadd.f32 %v328_v40, %v313_v63  ;;  %v4545_v48 = vadd.f32 %v328_v40, %v314_v39  ;;  %v547_v28 = vmul.f32 %v4116_v44, %v4323_v37  ;;  %v4722_v39 = vld [vmem:[%s5386_s7 + $0x18] sm:$0xff] }
 0x344   :  { %v548_v63 = vmul.f32 %v4275_v62, %v4323_v37  ;;  %v1221_v40 = vmul.f32 %v4722_v39, %v4046_v52  ;;  %v4730_v62 = vld [vmem:[%s5386_s7 + $0x10] sm:$0xff] }
 0x345   :  { %v1770_v45 = vmul.f32 %v4154_v54, %v4545_v48  ;;  %v1769_v41 = vmul.f32 %v4154_v54, %v4543_v27  ;;  %v1767_v36 = vmul.f32 %v3934_v0, %v4543_v27  ;;  %v1768_v56 = vmul.f32 %v3934_v0, %v4545_v48 }
 0x346   :  { %v1765_v22 = vmul.f32 %v4161_v57, %v4543_v27  ;;  %v1766_v54 = vmul.f32 %v4161_v57, %v4545_v48  ;;  %v1763_v0 = vmul.f32 %v3936_v1, %v4543_v27  ;;  %v1764_v57 = vmul.f32 %v3936_v1, %v4545_v48 }
 0x347   :  { %1841 = vrot.lane.b32.xlu1 %v1770_v45, %s3656_s30  ;;  %1839 = vrot.lane.b32.xlu0 %v1769_v41, %s3656_s30  ;;  %v1761_v1 = vmul.f32 %v4168_v59, %v4543_v27  ;;  %v1762_v23 = vmul.f32 %v4168_v59, %v4545_v48  ;;  %v1759_v17 = vmul.f32 %v3938_v2, %v4543_v27  ;;  %v4613_v59 = vld [vmem:[%s5386_s7 + $0x38] sm:$0xff]  ;;  %v4746_v45 = vld [vmem:[%s5386_s7] sm:$0xff] }
 0x348   :  { %v1760_v14 = vmul.f32 %v3938_v2, %v4545_v48  ;;  %v1757_v15 = vmul.f32 %v4175_v20, %v4543_v27  ;;  %v4633_v2 = vld [vmem:[%s5386_s7 + $0x28] sm:$0xff]  ;;  %v1758_v61 = vmul.f32 %v4175_v20, %v4545_v48  ;;  %v1755_v25 = vmul.f32 %v3940_v4, %v4543_v27 }
 0x349   :  { %v1756_v20 = vmul.f32 %v3940_v4, %v4545_v48  ;;  %v1753_v47 = vmul.f32 %v4185_v34, %v4543_v27  ;;  %v1229_v4 = vmul.f32 %v4571_v42, %v4046_v52  ;;  %v1749_v30 = vmul.f32 %v3949_v9, %v4543_v27 }
 0x34a   :  { %v1750_v49 = vmul.f32 %v3949_v9, %v4545_v48  ;;  %v1225_v58 = vmul.f32 %v4613_v59, %v4046_v52  ;;  %v1747_v29 = vmul.f32 %v4204_v46, %v4543_v27  ;;  %v1224_v9 = vmul.f32 %v4623_v24, %v4046_v52 }
 0x34b   :  { %1835 = vrot.lane.b32.xlu1 %v1767_v36, %s3656_s30  ;;  %1837 = vrot.lane.b32.xlu0 %v1768_v56, %s3656_s30  ;;  %v1223_v33 = vmul.f32 %v4633_v2, %v4046_v52  ;;  %v1220_v37 = vmul.f32 %v4730_v62, %v4046_v52  ;;  %v1218_v41 = vmul.f32 %v4746_v45, %v4046_v52 }
 0x34f   :  { %1831 = vrot.lane.b32.xlu1 %v1765_v22, %s3656_s30  ;;  %1833 = vrot.lane.b32.xlu0 %v1766_v54, %s3656_s30 }
 0x350   :  { %v3606_v43 = vpop.eup %3605 }
 0x351   :  { %3297 = vmatmul.mubr.msk.f32.vlgmr.msra.gmra.mxu1 %vm746_vm3, %v3606_v43 }
 0x352   :  { %3300 = vmatpush3.msra.mxu1 %v4571_v42  ;;  %3323 = vmatprep.mubr.msk.f32.mxu1 %vm3658_vm1, %v3654_v3 }
 0x353   :  { %3301 = vmatprep.subr.mxu1 %v3654_v3  ;;  %1827 = vrot.lane.b32.xlu1 %v1763_v0, %s3656_s30 }
 0x354   :  { %3302 = vmatpush3.msra.mxu1 %v4583_v51  ;;  %1829 = vrot.lane.b32.xlu0 %v1764_v57, %s3656_s30 }
 0x355   :  { %3303 = vmatprep.subr.mxu1 %v3654_v3 }
 0x356   :  { %3304 = vmatpush3.msra.mxu1 %v4593_v50 }
 0x357   :  { %3305 = vmatprep.subr.mxu1 %v3654_v3  ;;  %1823 = vrot.lane.b32.xlu1 %v1761_v1, %s3656_s30 }
 0x358   :  { %3306 = vmatpush3.msra.mxu1 %v4603_v55  ;;  %1825 = vrot.lane.b32.xlu0 %v1762_v23, %s3656_s30 }
 0x359   :  { %3307 = vmatprep.subr.mxu1 %v3654_v3 }
 0x35a   :  { %3308 = vmatpush3.msra.mxu1 %v4613_v59 }
 0x35b   :  { %3309 = vmatprep.subr.mxu1 %v3654_v3  ;;  %1819 = vrot.lane.b32.xlu1 %v1759_v17, %s3656_s30 }
 0x35c   :  { %3310 = vmatpush3.msra.mxu1 %v4623_v24  ;;  %1821 = vrot.lane.b32.xlu0 %v1760_v14, %s3656_s30 }
 0x35d   :  { %3311 = vmatprep.subr.mxu1 %v3654_v3 }
 0x35e   :  { %3312 = vmatpush3.msra.mxu1 %v4633_v2 }
 0x35f   :  { %3313 = vmatprep.subr.mxu1 %v3654_v3  ;;  %1815 = vrot.lane.b32.xlu1 %v1757_v15, %s3656_s30 }
 0x360   :  { %3314 = vmatpush3.msra.mxu1 %v4643_v31  ;;  %1817 = vrot.lane.b32.xlu0 %v1758_v61, %s3656_s30 }
 0x361   :  { %3315 = vmatprep.subr.mxu1 %v3654_v3 }
 0x362   :  { %3316 = vmatpush3.msra.mxu1 %v4069_v10  ;;  %v1754_v10 = vmul.f32 %v4185_v34, %v4545_v48  ;;  %v1752_v34 = vmul.f32 %v4194_v38, %v4545_v48 }
 0x363   :  { %3317 = vmatprep.subr.mxu1 %v3654_v3  ;;  %1811 = vrot.lane.b32.xlu1 %v1755_v25, %s3656_s30 }
 0x364   :  { %3318 = vmatpush3.msra.mxu1 %v4076_v16  ;;  %1813 = vrot.lane.b32.xlu0 %v1756_v20, %s3656_s30  ;;  %v1751_v16 = vmul.f32 %v4194_v38, %v4543_v27  ;;  %v4738_v27 = vld [vmem:[%s5386_s7 + $0x8] sm:$0xff] }
 0x365   :  { %3319 = vmatprep.subr.mxu1 %v3654_v3 }
 0x366   :  { %3320 = vmatpush3.msra.mxu1 %v4092_v26  ;;  %v1228_v26 = vmul.f32 %v4583_v51, %v4046_v52 }
 0x367   :  { %3321 = vmatprep.subr.mxu1 %v3654_v3  ;;  %1807 = vrot.lane.b32.xlu1 %v1753_v47, %s3656_s30 }
 0x368   :  { %3322 = vmatpush3.msra.mxu1 %v4100_v32  ;;  %1809 = vrot.lane.b32.xlu0 %v1754_v10, %s3656_s30  ;;  %v1227_v32 = vmul.f32 %v4593_v50, %v4046_v52 }
 0x369   :  { %3324 = vmatmul.mubr.msk.f32.vlgmr.msra.gmra.mxu1 %vm746_vm3, %v3606_v43  ;;  %3353 = vmatprep.subr.mxu1 %v3654_v3 }
 0x36a   :  { %3354 = vmatpush3.msra.mxu1 %v1229_v4  ;;  %3377 = vmatprep.mubr.msk.f32.mxu1 %vm3658_vm1, %v3654_v3 }
 0x36b   :  { %3355 = vmatprep.subr.mxu1 %v3654_v3  ;;  %1803 = vrot.lane.b32.xlu1 %v1751_v16, %s3656_s30 }
 0x36c   :  { %3356 = vmatpush3.msra.mxu1 %v1228_v26  ;;  %1805 = vrot.lane.b32.xlu0 %v1752_v34, %s3656_s30 }
 0x36d   :  { %3357 = vmatprep.subr.mxu1 %v3654_v3 }
 0x36e   :  { %3358 = vmatpush3.msra.mxu1 %v1227_v32  ;;  %v1214_v38 = vpop.xlane.xlu0 %1213 }
 0x36f   :  { %3359 = vmatprep.subr.mxu1 %v3654_v3  ;;  %v1215_v35 = vsub.f32 %v4527_v12, %v1214_v38  ;;  %1799 = vrot.lane.b32.xlu1 %v1749_v30, %s3656_s30  ;;  %v1748_v12 = vmul.f32 %v4204_v46, %v4545_v48  ;;  %v1222_v46 = vmul.f32 %v4643_v31, %v4046_v52 }
 0x370   :  { %3360 = vmatpush3.msra.mxu1 %v1226_v53  ;;  %1801 = vrot.lane.b32.xlu0 %v1750_v49, %s3656_s30  ;;  %v1219_v48 = vmul.f32 %v4738_v27, %v4046_v52  ;;  %v540_v52 = vpop.f32.mrf.mxu1 }
 0x371   :  { %v1216_v6 = vmul.f32 1.442695, %v1215_v35  ;;  %3361 = vmatprep.subr.mxu1 %v3654_v3  ;;  %v541_v56 = vadd.f32 %v540_v52, %v3974_v18 }
 0x372   :  { %3362 = vmatpush3.msra.mxu1 %v1225_v58 }
 0x373   :  { %3607 = vpow2.f32 %v1216_v6  ;;  %3363 = vmatprep.subr.mxu1 %v3654_v3  ;;  %1795 = vrot.lane.b32.xlu1 %v1747_v29, %s3656_s30  ;;  %v1601_v22 = vmul.f32 %v4571_v42, %v541_v56  ;;  %v1600_v54 = vmul.f32 %v4583_v51, %v541_v56  ;;  %v1599_v18 = vmul.f32 %v4593_v50, %v541_v56 }
 0x374   :  { %3364 = vmatpush3.msra.mxu1 %v1224_v9  ;;  %1797 = vrot.lane.b32.xlu0 %v1748_v12, %s3656_s30  ;;  %v1598_v43 = vmul.f32 %v4603_v55, %v541_v56  ;;  %v1597_v0 = vmul.f32 %v4613_v59, %v541_v56  ;;  %v1596_v23 = vmul.f32 %v4623_v24, %v541_v56 }
 0x375   :  { %3365 = vmatprep.subr.mxu1 %v3654_v3  ;;  %v1595_v14 = vmul.f32 %v4633_v2, %v541_v56  ;;  %v1594_v15 = vmul.f32 %v4643_v31, %v541_v56  ;;  %v1592_v61 = vmul.f32 %v4730_v62, %v541_v56  ;;  %v1591_v25 = vmul.f32 %v4738_v27, %v541_v56 }
 0x376   :  { %3366 = vmatpush3.msra.mxu1 %v1223_v33  ;;  %v1590_v20 = vmul.f32 %v4746_v45, %v541_v56  ;;  %v1969_v9 = vmul.f32 %v4571_v42, %v4064_v5  ;;  %v1968_v33 = vmul.f32 %v4583_v51, %v4064_v5 }
 0x377   :  { %3367 = vmatprep.subr.mxu1 %v3654_v3  ;;  %557 = vrot.lane.b32.xlu1 %v547_v28, %s3655_s19 }
 0x378   :  { %3368 = vmatpush3.msra.mxu1 %v1222_v46  ;;  %559 = vrot.lane.b32.xlu0 %v548_v63, %s3655_s19  ;;  %v1967_v46 = vmul.f32 %v4593_v50, %v4064_v5 }
 0x379   :  { %3369 = vmatprep.subr.mxu1 %v3654_v3 }
 0x37a   :  { %3370 = vmatpush3.msra.mxu1 %v1221_v40 }
 0x37b   :  { %3371 = vmatprep.subr.mxu1 %v3654_v3 }
 0x37c   :  { %3372 = vmatpush3.msra.mxu1 %v1220_v37  ;;  %v1966_v37 = vmul.f32 %v4603_v55, %v4064_v5 }
 0x37d   :  { %3373 = vmatprep.subr.mxu1 %v3654_v3 }
 0x37e   :  { %3374 = vmatpush3.msra.mxu1 %v1219_v48 }
 0x37f   :  { %3375 = vmatprep.subr.mxu1 %v3654_v3 }
 0x380   :  { %v3608_v36 = vpop.eup %3607  ;;  %3376 = vmatpush3.msra.mxu1 %v1218_v41 }
 0x381   :  { %3380 = vmatprep.subr.mxu1 %v3654_v3  ;;  %3378 = vmatmul.mubr.msk.f32.vlgmr.msra.gmra.mxu1 %vm746_vm3, %v3608_v36 }
 0x382   :  { %3381 = vmatpush3.msra.mxu1 %v4571_v42  ;;  %3404 = vmatprep.mubr.msk.f32.mxu1 %vm3658_vm1, %v3654_v3 }
 0x383   :  { %3382 = vmatprep.subr.mxu1 %v3654_v3 }
 0x384   :  { %3383 = vmatpush3.msra.mxu1 %v4583_v51 }
 0x385   :  { %3384 = vmatprep.subr.mxu1 %v3654_v3 }
 0x386   :  { %3385 = vmatpush3.msra.mxu1 %v4593_v50 }
 0x387   :  { %3386 = vmatprep.subr.mxu1 %v3654_v3 }
 0x388   :  { %3387 = vmatpush3.msra.mxu1 %v4603_v55 }
 0x389   :  { %3388 = vmatprep.subr.mxu1 %v3654_v3 }
 0x38a   :  { %3389 = vmatpush3.msra.mxu1 %v4613_v59 }
 0x38b   :  { %3390 = vmatprep.subr.mxu1 %v3654_v3 }
 0x38c   :  { %3391 = vmatpush3.msra.mxu1 %v4623_v24 }
 0x38d   :  { %3392 = vmatprep.subr.mxu1 %v3654_v3 }
 0x38e   :  { %3393 = vmatpush3.msra.mxu1 %v4633_v2 }
 0x38f   :  { %3394 = vmatprep.subr.mxu1 %v3654_v3 }
 0x390   :  { %3395 = vmatpush3.msra.mxu1 %v4643_v31 }
 0x391   :  { %3396 = vmatprep.subr.mxu1 %v3654_v3 }
 0x392   :  { %3397 = vmatpush3.msra.mxu1 %v4722_v39 }
 0x393   :  { %3398 = vmatprep.subr.mxu1 %v3654_v3 }
 0x394   :  { %3399 = vmatpush3.msra.mxu1 %v4730_v62 }
 0x395   :  { %3400 = vmatprep.subr.mxu1 %v3654_v3 }
 0x396   :  { %3401 = vmatpush3.msra.mxu1 %v4738_v27 }
 0x397   :  { %3402 = vmatprep.subr.mxu1 %v3654_v3 }
 0x398   :  { %3403 = vmatpush3.msra.mxu1 %v4746_v45 }
 0x399   :  { %3405 = vmatmul.mubr.msk.f32.vlgmr.msra.gmra.mxu1 %vm746_vm3, %v3608_v36  ;;  %3434 = vmatprep.subr.mxu1 %v3654_v3  ;;  %v1965_v36 = vmul.f32 %v4613_v59, %v4064_v5 }
 0x39a   :  { %3435 = vmatpush3.msra.mxu1 %v1601_v22  ;;  %3458 = vmatprep.mubr.msk.f32.mxu1 %vm3658_vm1, %v3654_v3 }
 0x39b   :  { %3436 = vmatprep.subr.mxu1 %v3654_v3 }
 0x39c   :  { %3437 = vmatpush3.msra.mxu1 %v1600_v54 }
 0x39d   :  { %3438 = vmatprep.subr.mxu1 %v3654_v3 }
 0x39e   :  { %3439 = vmatpush3.msra.mxu1 %v1599_v18  ;;  %v1963_v18 = vmul.f32 %v4633_v2, %v4064_v5 }
 0x39f   :  { %3440 = vmatprep.subr.mxu1 %v3654_v3 }
 0x3a0   :  { %3441 = vmatpush3.msra.mxu1 %v1598_v43  ;;  %v1586_v57 = vpop.xlane.xlu0 %1585 }
 0x3a1   :  { %3442 = vmatprep.subr.mxu1 %v3654_v3  ;;  %v1587_v1 = vsub.f32 %v4535_v19, %v1586_v57  ;;  %v1593_v19 = vmul.f32 %v4722_v39, %v541_v56  ;;  %v1964_v56 = vmul.f32 %v4623_v24, %v4064_v5 }
 0x3a2   :  { %3443 = vmatpush3.msra.mxu1 %v1597_v0  ;;  %v1962_v0 = vmul.f32 %v4643_v31, %v4064_v5 }
 0x3a3   :  { %v1588_v17 = vmul.f32 1.442695, %v1587_v1  ;;  %3444 = vmatprep.subr.mxu1 %v3654_v3 }
 0x3a4   :  { %3445 = vmatpush3.msra.mxu1 %v1596_v23  ;;  %v1961_v23 = vmul.f32 %v4722_v39, %v4064_v5 }
 0x3a5   :  { %3609 = vpow2.f32 %v1588_v17  ;;  %3446 = vmatprep.subr.mxu1 %v3654_v3 }
 0x3a6   :  { %3447 = vmatpush3.msra.mxu1 %v1595_v14  ;;  %v1960_v14 = vmul.f32 %v4730_v62, %v4064_v5 }
 0x3a7   :  { %3448 = vmatprep.subr.mxu1 %v3654_v3 }
 0x3a8   :  { %3449 = vmatpush3.msra.mxu1 %v1594_v15 }
 0x3a9   :  { %3450 = vmatprep.subr.mxu1 %v3654_v3 }
 0x3aa   :  { %3451 = vmatpush3.msra.mxu1 %v1593_v19 }
 0x3ab   :  { %3452 = vmatprep.subr.mxu1 %v3654_v3 }
 0x3ac   :  { %3453 = vmatpush3.msra.mxu1 %v1592_v61  ;;  %v1959_v61 = vmul.f32 %v4738_v27, %v4064_v5 }
 0x3ad   :  { %3454 = vmatprep.subr.mxu1 %v3654_v3 }
 0x3ae   :  { %3455 = vmatpush3.msra.mxu1 %v1591_v25 }
 0x3af   :  { %3456 = vmatprep.subr.mxu1 %v3654_v3 }
 0x3b0   :  { %3457 = vmatpush3.msra.mxu1 %v1590_v20  ;;  %v1958_v20 = vmul.f32 %v4746_v45, %v4064_v5 }
 0x3b1   :  { %3461 = vmatprep.subr.mxu1 %v3654_v3 }
 0x3b2   :  { %v3610_v47 = vpop.eup %3609 }
 0x3b3   :  { %3459 = vmatmul.mubr.msk.f32.vlgmr.msra.gmra.mxu1 %vm746_vm3, %v3610_v47 }
 0x3b4   :  { %3462 = vmatpush3.msra.mxu1 %v4571_v42  ;;  %3485 = vmatprep.mubr.msk.f32.mxu1 %vm3658_vm1, %v3654_v3 }
 0x3b5   :  { %3463 = vmatprep.subr.mxu1 %v3654_v3 }
 0x3b6   :  { %3464 = vmatpush3.msra.mxu1 %v4583_v51 }
 0x3b7   :  { %3465 = vmatprep.subr.mxu1 %v3654_v3 }
 0x3b8   :  { %3466 = vmatpush3.msra.mxu1 %v4593_v50 }
 0x3b9   :  { %v1842_v10 = vpop.permute.xlu1 %1841  ;;  %3467 = vmatprep.subr.mxu1 %v3654_v3  ;;  %v1840_v4 = vpop.permute.xlu0 %1839 }
 0x3ba   :  { %v1854_v16 = vsel %vm733_vm2, %v1840_v4, %v1842_v10  ;;  %3468 = vmatpush3.msra.mxu1 %v4603_v55 }
 0x3bb   :  { %3469 = vmatprep.subr.mxu1 %v3654_v3  ;;  %3489 = vmatpush3.xpose.msk.msra.mxu0 %vm746_vm3, %v1854_v16 }
 0x3bc   :  { %3470 = vmatpush3.msra.mxu1 %v4613_v59  ;;  %3490 = vmatprep.subr.mxu0 %v3654_v3 }
 0x3bd   :  { %v1836_v26 = vpop.permute.xlu1 %1835  ;;  %3471 = vmatprep.subr.mxu1 %v3654_v3  ;;  %v1838_v34 = vpop.permute.xlu0 %1837 }
 0x3be   :  { %v1853_v32 = vsel %vm733_vm2, %v1836_v26, %v1838_v34  ;;  %3472 = vmatpush3.msra.mxu1 %v4623_v24 }
 0x3bf   :  { %3473 = vmatprep.subr.mxu1 %v3654_v3  ;;  %3491 = vmatpush3.xpose.msk.msra.mxu0 %vm746_vm3, %v1853_v32  ;;  %v3649_v32 = vld [vmem:[%s5385_s6 + $0x8] sm:$0xff] }
 0x3c0   :  { %3474 = vmatpush3.msra.mxu1 %v4633_v2  ;;  %3492 = vmatprep.subr.mxu0 %v3654_v3 }
 0x3c1   :  { %v1832_v30 = vpop.permute.xlu1 %1831  ;;  %3475 = vmatprep.subr.mxu1 %v3654_v3  ;;  %v1834_v38 = vpop.permute.xlu0 %1833 }
 0x3c2   :  { %v1852_v53 = vsel %vm733_vm2, %v1832_v30, %v1834_v38  ;;  %3476 = vmatpush3.msra.mxu1 %v4643_v31  ;;  %v544_v30 = vmul.f32 %v3649_v32, %v4116_v44  ;;  %v2119_v44 = vld [vmem:[%s5388_s5 + $0x18] sm:$0xff] }
 0x3c3   :  { %3477 = vmatprep.subr.mxu1 %v3654_v3  ;;  %3493 = vmatpush3.xpose.msk.msra.mxu0 %vm746_vm3, %v1852_v53 }
 0x3c4   :  { %3478 = vmatpush3.msra.mxu1 %v4722_v39  ;;  %3494 = vmatprep.subr.mxu0 %v3654_v3 }
 0x3c5   :  { %v1828_v49 = vpop.permute.xlu1 %1827  ;;  %3479 = vmatprep.subr.mxu1 %v3654_v3 }
 0x3c6   :  { %v1830_v35 = vpop.permute.xlu0 %1829  ;;  %3480 = vmatpush3.msra.mxu1 %v4730_v62 }
 0x3c7   :  { %v1851_v58 = vsel %vm733_vm2, %v1828_v49, %v1830_v35  ;;  %3481 = vmatprep.subr.mxu1 %v3654_v3  ;;  %v2121_v35 = vld [vmem:[%s5388_s5 + $0x28] sm:$0xff] }
 0x3c8   :  { %3495 = vmatpush3.xpose.msk.msra.mxu0 %vm746_vm3, %v1851_v58  ;;  %3482 = vmatpush3.msra.mxu1 %v4738_v27  ;;  %v2120_v58 = vld [vmem:[%s5388_s5 + $0x20] sm:$0xff] }
 0x3c9   :  { %v1824_v6 = vpop.permute.xlu1 %1823  ;;  %3483 = vmatprep.subr.mxu1 %v3654_v3  ;;  %3496 = vmatprep.subr.mxu0 %v3654_v3 }
 0x3ca   :  { %v1826_v29 = vpop.permute.xlu0 %1825  ;;  %3484 = vmatpush3.msra.mxu1 %v4746_v45 }
 0x3cb   :  { %v1850_v12 = vsel %vm733_vm2, %v1824_v6, %v1826_v29  ;;  %3486 = vmatmul.mubr.msk.f32.vlgmr.msra.gmra.mxu1 %vm746_vm3, %v3610_v47  ;;  %3515 = vmatprep.subr.mxu1 %v3654_v3  ;;  %v2118_v29 = vld [vmem:[%s5388_s5 + $0x10] sm:$0xff] }
 0x3cc   :  { %3497 = vmatpush3.xpose.msk.msra.mxu0 %vm746_vm3, %v1850_v12  ;;  %3516 = vmatpush3.msra.mxu1 %v1969_v9  ;;  %v2117_v12 = vld [vmem:[%s5388_s5 + $0x8] sm:$0xff] }
 0x3cd   :  { %v1820_v28 = vpop.permute.xlu1 %1819  ;;  %3517 = vmatprep.subr.mxu1 %v3654_v3  ;;  %3498 = vmatprep.subr.mxu0 %v3654_v3 }
 0x3ce   :  { %v1822_v63 = vpop.permute.xlu0 %1821  ;;  %3518 = vmatpush3.msra.mxu1 %v1968_v33  ;;  %3539 = vmatprep.mubr.msk.f32.mxu1 %vm3658_vm1, %v3654_v3  ;;  %v2116_v33 = vld [vmem:[%s5388_s5] sm:$0xff] }
 0x3cf   :  { %v1849_v40 = vsel %vm733_vm2, %v1820_v28, %v1822_v63  ;;  %3519 = vmatprep.subr.mxu1 %v3654_v3 }
 0x3d0   :  { %3499 = vmatpush3.xpose.msk.msra.mxu0 %vm746_vm3, %v1849_v40  ;;  %3520 = vmatpush3.msra.mxu1 %v1967_v46 }
 0x3d1   :  { %v1816_v48 = vpop.permute.xlu1 %1815  ;;  %3521 = vmatprep.subr.mxu1 %v3654_v3  ;;  %3500 = vmatprep.subr.mxu0 %v3654_v3 }
 0x3d2   :  { %v1818_v41 = vpop.permute.xlu0 %1817  ;;  %3522 = vmatpush3.msra.mxu1 %v1966_v37 }
 0x3d3   :  { %v1848_v52 = vsel %vm733_vm2, %v1816_v48, %v1818_v41  ;;  %3523 = vmatprep.subr.mxu1 %v3654_v3 }
 0x3d4   :  { %3501 = vmatpush3.xpose.msk.msra.mxu0 %vm746_vm3, %v1848_v52  ;;  %3524 = vmatpush3.msra.mxu1 %v1965_v36 }
 0x3d5   :  { %v1812_v22 = vpop.permute.xlu1 %1811  ;;  %3525 = vmatprep.subr.mxu1 %v3654_v3  ;;  %3502 = vmatprep.subr.mxu0 %v3654_v3 }
 0x3d6   :  { %v1814_v54 = vpop.permute.xlu0 %1813  ;;  %3526 = vmatpush3.msra.mxu1 %v1964_v56 }
 0x3d7   :  { %v1847_v43 = vsel %vm733_vm2, %v1812_v22, %v1814_v54  ;;  %3527 = vmatprep.subr.mxu1 %v3654_v3 }
 0x3d8   :  { %3503 = vmatpush3.xpose.msk.msra.mxu0 %vm746_vm3, %v1847_v43  ;;  %3528 = vmatpush3.msra.mxu1 %v1963_v18 }
 0x3d9   :  { %v1808_v57 = vpop.permute.xlu1 %1807  ;;  %3529 = vmatprep.subr.mxu1 %v3654_v3  ;;  %3504 = vmatprep.subr.mxu0 %v3654_v3 }
 0x3da   :  { %v1810_v1 = vpop.permute.xlu0 %1809  ;;  %3530 = vmatpush3.msra.mxu1 %v1962_v0 }
 0x3db   :  { %v1846_v17 = vsel %vm733_vm2, %v1808_v57, %v1810_v1  ;;  %3531 = vmatprep.subr.mxu1 %v3654_v3 }
 0x3dc   :  { %3505 = vmatpush3.xpose.msk.msra.mxu0 %vm746_vm3, %v1846_v17  ;;  %3532 = vmatpush3.msra.mxu1 %v1961_v23 }
 0x3dd   :  { %v1804_v15 = vpop.permute.xlu1 %1803  ;;  %3533 = vmatprep.subr.mxu1 %v3654_v3  ;;  %3506 = vmatprep.subr.mxu0 %v3654_v3 }
 0x3de   :  { %v1806_v19 = vpop.permute.xlu0 %1805  ;;  %3534 = vmatpush3.msra.mxu1 %v1960_v14 }
 0x3df   :  { %v1845_v25 = vsel %vm733_vm2, %v1804_v15, %v1806_v19  ;;  %3535 = vmatprep.subr.mxu1 %v3654_v3 }
 0x3e0   :  { %3507 = vmatpush3.xpose.msk.msra.mxu0 %vm746_vm3, %v1845_v25  ;;  %3536 = vmatpush3.msra.mxu1 %v1959_v61 }
 0x3e1   :  { %v1800_v47 = vpop.permute.xlu1 %1799  ;;  %3537 = vmatprep.subr.mxu1 %v3654_v3  ;;  %3508 = vmatprep.subr.mxu0 %v3654_v3 }
 0x3e2   :  { %v1802_v10 = vpop.permute.xlu0 %1801  ;;  %3538 = vmatpush3.msra.mxu1 %v1958_v20 }
 0x3e3   :  { %v1844_v4 = vsel %vm733_vm2, %v1800_v47, %v1802_v10  ;;  %3542 = vmatprep.subr.mxu1 %v3654_v3 }
 0x3e4   :  { %3509 = vmatpush3.xpose.msk.msra.mxu0 %vm746_vm3, %v1844_v4 }
 0x3e5   :  { %v1796_v16 = vpop.permute.xlu1 %1795  ;;  %3510 = vmatprep.subr.mxu0 %v3654_v3 }
 0x3e6   :  { %v1798_v26 = vpop.permute.xlu0 %1797 }
 0x3e7   :  { %v1843_v34 = vsel %vm733_vm2, %v1796_v16, %v1798_v26 }
 0x3e8   :  { %3511 = vmatpush3.xpose.msk.msra.mxu0 %vm746_vm3, %v1843_v34 }
 0x3e9   :  { %v558_v5 = vpop.permute.xlu1 %557  ;;  %3569 = vmatprep.subr.mxu0 %v2121_v35 }
 0x3ea   :  { %v560_v38 = vpop.permute.xlu0 %559 }
 0x3eb   :  { %v562_v53 = vsel %vm296_vm4, %v558_v5, %v560_v38  ;;  %v2258_v38 = vld [vmem:[%s5389_s4 + $0x50] sm:$0xff] }
 0x3ec   :  { %v566_v49 = vadd.f32 %v562_v53, %v544_v30  ;;  %v2259_v30 = vld [vmem:[%s5389_s4 + $0x58] sm:$0xff]  ;;  %v2257_v53 = vld [vmem:[%s5389_s4 + $0x48] sm:$0xff] }
 0x3ee   :  { %3513 = vmatmul.mubr.msk.f32.vlgmr.msra.gmra.mxu0 %vm746_vm3, %v566_v49  ;;  %v2256_v49 = vld [vmem:[%s5389_s4 + $0x40] sm:$0xff] }
 0x3ef   :  { %3570 = vmatpush3.msra.mxu0 %v2121_v35  ;;  %v2255_v35 = vld [vmem:[%s5389_s4 + $0x38] sm:$0xff] }
 0x3f0   :  { %3571 = vmatprep.subr.mxu0 %v2120_v58 }
 0x3f1   :  { %3572 = vmatpush3.msra.mxu0 %v2120_v58  ;;  %v2254_v58 = vld [vmem:[%s5389_s4 + $0x30] sm:$0xff] }
 0x3f2   :  { %3573 = vmatprep.subr.mxu0 %v2119_v44 }
 0x3f3   :  { %3574 = vmatpush3.msra.mxu0 %v2119_v44  ;;  %v2253_v44 = vld [vmem:[%s5389_s4 + $0x28] sm:$0xff] }
 0x3f4   :  { %3575 = vmatprep.subr.mxu0 %v2118_v29 }
 0x3f5   :  { %3576 = vmatpush3.msra.mxu0 %v2118_v29 }
 0x3f6   :  { %3577 = vmatprep.subr.mxu0 %v2117_v12 }
 0x3f7   :  { %3578 = vmatpush3.msra.mxu0 %v2117_v12  ;;  %v2250_v12 = vld [vmem:[%s5389_s4 + $0x10] sm:$0xff] }
 0x3f8   :  { %3579 = vmatprep.subr.mxu0 %v2116_v33 }
 0x3f9   :  { %3580 = vmatpush3.msra.mxu0 %v2116_v33 }
 0x3fa   :  { %2394 = vmatprep.subr.mxu0 %v3654_v3 }
 0x411   :  { %v931_v6 = vpop.f32.mrf.mxu1 }
 0x413   :  { %v3298_v9 = vpop.f32.mrf.mxu1 }
 0x414   :  { %v2251_v9 = vld [vmem:[%s5389_s4 + $0x18] sm:$0xff] }
 0x429   :  { %v1001_v28 = vpop.f32.mrf.mxu1 }
 0x42a   :  { %3611 = vrcp.f32 %v1001_v28  ;;  %v2249_v28 = vld [vmem:[%s5389_s4 + $0x8] sm:$0xff] }
 0x42b   :  { %v3325_v63 = vpop.f32.mrf.mxu1 }
 0x42c   :  { %v2248_v63 = vld [vmem:[%s5389_s4] sm:$0xff] }
 0x437   :  { %v3612_v46 = vpop.eup %3611 }
 0x438   :  { %v1006_v40 = vmul.f32 %v3612_v46, %v931_v6  ;;  %v2252_v6 = vld [vmem:[%s5389_s4 + $0x20] sm:$0xff] }
 0x439   :  { %v5032_v46 = vld [vmem:[%s5388_s5 + $0x120] sm:$0xff] }
 0x43a   :  { %3581 = vmatprep.mubr.msk.f32.mxu0 %vm109_vm0, %v1006_v40  ;;  %v2375_v40 = vld [vmem:[%s5388_s5 + $0xa8] sm:$0xff] }
 0x441   :  { %v1299_v37 = vpop.f32.mrf.mxu1 }
 0x443   :  { %v3379_v48 = vpop.f32.mrf.mxu1 }
 0x444   :  { %v2373_v48 = vld [vmem:[%s5388_s5 + $0x98] sm:$0xff] }
 0x459   :  { %v1369_v41 = vpop.f32.mrf.mxu1 }
 0x45a   :  { %3613 = vrcp.f32 %v1369_v41  ;;  %v2372_v41 = vld [vmem:[%s5388_s5 + $0x90] sm:$0xff] }
 0x45b   :  { %v3406_v36 = vpop.f32.mrf.mxu1 }
 0x467   :  { %v3614_v52 = vpop.eup %3613 }
 0x468   :  { %v4935_v56 = vmul.f32 %v3614_v52, %v1299_v37  ;;  %v2374_v37 = vld [vmem:[%s5388_s5 + $0xa0] sm:$0xff]  ;;  %v2371_v52 = vld [vmem:[%s5388_s5 + $0x88] sm:$0xff] }
 0x473   :  { %v1671_v22 = vpop.f32.mrf.mxu1 }
 0x475   :  { %v3460_v54 = vpop.f32.mrf.mxu1 }
 0x476   :  { %v2370_v54 = vld [vmem:[%s5388_s5 + $0x80] sm:$0xff] }
 0x48b   :  { %v1741_v18 = vpop.f32.mrf.mxu1 }
 0x48c   :  { %3615 = vrcp.f32 %v1741_v18  ;;  %v2369_v18 = vld [vmem:[%s5388_s5 + $0x78] sm:$0xff] }
 0x48d   :  { %v3487_v43 = vpop.f32.mrf.mxu1 }
 0x48e   :  { %v2368_v43 = vld [vmem:[%s5388_s5 + $0x70] sm:$0xff] }
 0x499   :  { %v3616_v0 = vpop.eup %3615 }
 0x49a   :  { %v1746_v57 = vmul.f32 %v3616_v0, %v1671_v22  ;;  %v2367_v0 = vld [vmem:[%s5388_s5 + $0x68] sm:$0xff] }
 0x49c   :  { %3582 = vmatmul.mubr.msk.f32.vlgmr.msra.gmra.mxu0 %vm109_vm0, %v1746_v57  ;;  %v2366_v57 = vld [vmem:[%s5388_s5 + $0x60] sm:$0xff] }
 0x49d   :  { %2395 = vmatpush1.msra.mxu0 %v2375_v40 }
 0x49e   :  { %2396 = vmatprep.subr.mxu0 %v3654_v3 }
 0x49f   :  { %2397 = vmatpush1.msra.mxu0 %v2374_v37 }
 0x4a0   :  { %2398 = vmatprep.subr.mxu0 %v3654_v3 }
 0x4a1   :  { %2399 = vmatpush1.msra.mxu0 %v2373_v48 }
 0x4a2   :  { %2400 = vmatprep.subr.mxu0 %v3654_v3 }
 0x4a3   :  { %2401 = vmatpush1.msra.mxu0 %v2372_v41 }
 0x4a4   :  { %2402 = vmatprep.subr.mxu0 %v3654_v3 }
 0x4a5   :  { %2403 = vmatpush1.msra.mxu0 %v2371_v52 }
 0x4a6   :  { %2404 = vmatprep.subr.mxu0 %v3654_v3 }
 0x4a7   :  { %2405 = vmatpush1.msra.mxu0 %v2370_v54 }
 0x4a8   :  { %2406 = vmatprep.subr.mxu0 %v3654_v3 }
 0x4a9   :  { %2407 = vmatpush1.msra.mxu0 %v2369_v18 }
 0x4aa   :  { %2408 = vmatprep.subr.mxu0 %v3654_v3 }
 0x4ab   :  { %2409 = vmatpush1.msra.mxu0 %v2368_v43 }
 0x4ac   :  { %2410 = vmatprep.subr.mxu0 %v3654_v3 }
 0x4ad   :  { %2411 = vmatpush1.msra.mxu0 %v2367_v0 }
 0x4ae   :  { %v1948_v1 = vpop.f32.mrf.mxu0  ;;  %2412 = vmatprep.subr.mxu0 %v3654_v3 }
 0x4af   :  { %v1949_v23 = vadd.f32 %v1948_v1, %v4532_v60  ;;  %v4956_v60 = vld [vmem:[%s5388_s5 + $0xf0] sm:$0x3f]  ;;  %v2365_v1 = vld [vmem:[%s5388_s5 + $0x58] sm:$0xff]  ;;  %2413 = vmatpush1.msra.mxu0 %v2366_v57 }
 0x4b0   :  { %v3514_v17 = vpop.f32.mrf.mxu0  ;;  %2414 = vmatprep.subr.mxu0 %v3654_v3 }
 0x4b1   :  { %v1952_v14 = vsel %vm746_vm3, %v1949_v23, -inf  ;;  %2415 = vmatpush1.msra.mxu0 %v2365_v1  ;;  %v3652_v1 = vld [vmem:[%s5384_s1 + $0x8] sm:$0xff] }
 0x4b2   :  { %1953 = vmax.xlane.f32.xlu1 %v1952_v14  ;;  %v2364_v14 = vld [vmem:[%s5388_s5 + $0x50] sm:$0xff]  ;;  %2416 = vmatprep.subr.mxu0 %v3654_v3 }
 0x4b3   :  { %2417 = vmatpush1.msra.mxu0 %v2364_v14  ;;  %v3653_v14 = vld [vmem:[%s5384_s1] sm:$0xff] }
 0x4b4   :  { %2418 = vmatprep.subr.mxu0 %v3654_v3 }
 0x53b   :  { %v1954_v15 = vpop.xlane.xlu1 %1953 }
 0x53c   :  { %v1955_v19 = vsub.f32 %v1949_v23, %v1954_v15  ;;  %v2363_v15 = vld [vmem:[%s5388_s5 + $0x48] sm:$0xff] }
 0x53d   :  { %2419 = vmatpush1.msra.mxu0 %v2363_v15 }
 0x53e   :  { %v1956_v61 = vmul.f32 1.442695, %v1955_v19  ;;  %v2362_v19 = vld [vmem:[%s5388_s5 + $0x40] sm:$0xff]  ;;  %2420 = vmatprep.subr.mxu0 %v3654_v3 }
 0x53f   :  { %2421 = vmatpush1.msra.mxu0 %v2362_v19 }
 0x540   :  { %3617 = vpow2.f32 %v1956_v61  ;;  %v2361_v61 = vld [vmem:[%s5388_s5 + $0x38] sm:$0xff]  ;;  %2422 = vmatprep.subr.mxu0 %v3654_v3 }
 0x541   :  { %2423 = vmatpush1.msra.mxu0 %v2361_v61 }
 0x542   :  { %2424 = vmatprep.subr.mxu0 %v3654_v3 }
 0x54d   :  { %v3618_v25 = vpop.eup %3617 }
 0x54e   :  { %3540 = vmatmul.mubr.msk.f32.vlgmr.msra.gmra.mxu1 %vm746_vm3, %v3618_v25 }
 0x54f   :  { %3543 = vmatpush3.msra.mxu1 %v4571_v42  ;;  %3566 = vmatprep.mubr.msk.f32.mxu1 %vm3658_vm1, %v3654_v3  ;;  %v2125_v42 = vrot.slane %v4956_v60, %v3947_v8 }
 0x550   :  { %3544 = vmatprep.subr.mxu1 %v3654_v3 }
 0x551   :  { %3545 = vmatpush3.msra.mxu1 %v4583_v51 }
 0x552   :  { %3546 = vmatprep.subr.mxu1 %v3654_v3 }
 0x553   :  { %3547 = vmatpush3.msra.mxu1 %v4593_v50 }
 0x554   :  { %3548 = vmatprep.subr.mxu1 %v3654_v3 }
 0x555   :  { %3549 = vmatpush3.msra.mxu1 %v4603_v55 }
 0x556   :  { %3550 = vmatprep.subr.mxu1 %v3654_v3 }
 0x557   :  { %3551 = vmatpush3.msra.mxu1 %v4613_v59 }
 0x558   :  { %3552 = vmatprep.subr.mxu1 %v3654_v3 }
 0x559   :  { %3553 = vmatpush3.msra.mxu1 %v4623_v24  ;;  %v3650_v24 = vld [vmem:[%s5383_s0] sm:$0xff] }
 0x55a   :  { %3554 = vmatprep.subr.mxu1 %v3654_v3 }
 0x55b   :  { %3555 = vmatpush3.msra.mxu1 %v4633_v2 }
 0x55c   :  { %3556 = vmatprep.subr.mxu1 %v3654_v3  ;;  %v3583_v51 = vpop.f32.mrf.mxu0 }
 0x55d   :  { %3557 = vmatpush3.msra.mxu1 %v4643_v31  ;;  %v2204_v55 = vadd.f32 %v3583_v51, %v2125_v42  ;;  %v3651_v31 = vld [vmem:[%s5383_s0 + $0x8] sm:$0xff]  ;;  %v2382_v51 = vld [vmem:[%s5388_s5 + $0xe0] sm:$0xff] }
 0x55e   :  { %3558 = vmatprep.subr.mxu1 %v3654_v3  ;;  %v2198_v50 = vpop.f32.mrf.mxu0 }
 0x55f   :  { %3559 = vmatpush3.msra.mxu1 %v4722_v39  ;;  %v2199_v59 = vadd.f32 %v2198_v50, %v2125_v42  ;;  %v2208_v20 = vadd.f32 %v3651_v31, %v2204_v55  ;;  %v2383_v42 = vld [vmem:[%s5388_s5 + $0xe8] sm:$0xff]  ;;  %v2381_v50 = vld [vmem:[%s5388_s5 + $0xd8] sm:$0xff]  ;;  %v2380_v55 = vld [vmem:[%s5388_s5 + $0xd0] sm:$0xff] }
 0x560   :  { %3560 = vmatprep.subr.mxu1 %v3654_v3 }
 0x561   :  { %v2207_v2 = vadd.f32 %v3650_v24, %v2199_v59  ;;  %3561 = vmatpush3.msra.mxu1 %v4730_v62  ;;  %v2212_v62 = vsel %vm109_vm0, %v2208_v20, 0.0 }
 0x562   :  { %3562 = vmatprep.subr.mxu1 %v3654_v3 }
 0x563   :  { %3563 = vmatpush3.msra.mxu1 %v4738_v27  ;;  %v2209_v39 = vsel %vm109_vm0, %v2207_v2, 0.0 }
 0x564   :  { %3564 = vmatprep.subr.mxu1 %v3654_v3  ;;  %2210 = vadd.xlane.f32.xlu0 %v2209_v39 }
 0x565   :  { %3565 = vmatpush3.msra.mxu1 %v4746_v45 }
 0x566   :  { %3567 = vmatmul.mubr.msk.f32.vlgmr.msra.gmra.mxu1 %vm746_vm3, %v3618_v25  ;;  %2299 = vmatprep.subr.mxu1 %v2259_v30  ;;  %v2360_v25 = vld [vmem:[%s5388_s5 + $0x30] sm:$0xff] }
 0x567   :  { %2343 = vmatprep.mubr.f32.mxu1 %v3654_v3  ;;  %2300 = vmatpush1.msra.mxu1 %v2258_v38  ;;  %v3026_v38 = vld [vmem:[%s5388_s5 + $0x108] sm:$0xff] }
 0x568   :  { %2213 = vadd.xlane.f32.xlu0 %v2212_v62  ;;  %2301 = vmatprep.subr.mxu1 %v2257_v53  ;;  %v2233_v62 = vrot.slane %v4956_v60, %v3979_v21  ;;  %v3025_v53 = vld [vmem:[%s5388_s5 + $0x100] sm:$0xff] }
 0x569   :  { %2302 = vmatpush1.msra.mxu1 %v2256_v49  ;;  %2425 = vmatpush1.msra.mxu0 %v2360_v25  ;;  %v3024_v49 = vld [vmem:[%s5388_s5 + $0xf8] sm:$0xff] }
 0x56a   :  { %2303 = vmatprep.subr.mxu1 %v2255_v35  ;;  %2442 = vmatprep.subr.mxu0 %v3654_v3  ;;  %v2378_v35 = vld [vmem:[%s5388_s5 + $0xc0] sm:$0xff] }
 0x56b   :  { %2304 = vmatpush1.msra.mxu1 %v2254_v58  ;;  %2443 = vmatpush2.msra.mxu0 %v2383_v42  ;;  %v2377_v58 = vld [vmem:[%s5388_s5 + $0xb8] sm:$0xff] }
 0x56c   :  { %2305 = vmatprep.subr.mxu1 %v2253_v44  ;;  %2444 = vmatprep.subr.mxu0 %v3654_v3  ;;  %v2376_v44 = vld [vmem:[%s5388_s5 + $0xb0] sm:$0xff] }
 0x56d   :  { %2306 = vmatpush1.msra.mxu1 %v2252_v6  ;;  %2445 = vmatpush2.msra.mxu0 %v2382_v51  ;;  %v3018_v6 = vld [vmem:[%s5389_s4 + $0x60] ss:$8 sm:$0x3] }
 0x56e   :  { %2307 = vmatprep.subr.mxu1 %v2251_v9  ;;  %2446 = vmatprep.subr.mxu0 %v3654_v3  ;;  %v2270_v9 = vrot.slane %v3018_v6, %v3979_v21 }
 0x56f   :  { %2308 = vmatpush1.msra.mxu1 %v2250_v12  ;;  %2447 = vmatpush2.msra.mxu0 %v2381_v50 }
 0x570   :  { %2309 = vmatprep.subr.mxu1 %v2249_v28  ;;  %2448 = vmatprep.subr.mxu0 %v3654_v3 }
 0x571   :  { %2310 = vmatpush1.msra.mxu1 %v2248_v63  ;;  %2449 = vmatpush2.msra.mxu0 %v2380_v55 }
 0x572   :  { %3584 = vmatprep.subr.mxu1 %v5032_v46  ;;  %2450 = vmatprep.subr.mxu0 %v3654_v3 }
 0x5ed   :  { %v2211_v47 = vpop.xlane.xlu0 %2210 }
 0x5ee   :  { %v2216_v10 = vmul.f32 0.020833334, %v2211_v47 }
 0x5f0   :  { %v4983_v4 = vsub.f32 %v2207_v2, %v2216_v10  ;;  %v2245_v10 = vrot.slane %v4956_v60, %v3955_v11 }
 0x5f1   :  { %v2214_v16 = vpop.xlane.xlu0 %2213 }
 0x5f2   :  { %v2217_v27 = vmul.f32 0.020833334, %v2214_v16  ;;  %v2220_v26 = vmul.f32 %v4983_v4, %v4983_v4  ;;  %v2234_v47 = vmul.f32 %v2233_v62, %v4983_v4  ;;  %v3027_v4 = vld [vmem:[%s5388_s5 + $0x110] sm:$0xff] }
 0x5f4   :  { %v4987_v34 = vsub.f32 %v2208_v20, %v2217_v27  ;;  %v2222_v45 = vsel %vm109_vm0, %v2220_v26, 0.0 }
 0x5f5   :  { %2223 = vadd.xlane.f32.xlu1 %v2222_v45 }
 0x5f6   :  { %v2221_v5 = vmul.f32 %v4987_v34, %v4987_v34  ;;  %v2235_v26 = vmul.f32 %v2233_v62, %v4987_v34  ;;  %v3042_v62 = vld [vmem:[%s5389_s4 + $0xc0] sm:$0xff] }
 0x5f8   :  { %v2225_v32 = vsel %vm109_vm0, %v2221_v5, 0.0 }
 0x5f9   :  { %2226 = vadd.xlane.f32.xlu0 %v2225_v32  ;;  %v3028_v32 = vld [vmem:[%s5388_s5 + $0x118] sm:$0xff] }
 0x60e   :  { %v2039_v29 = vpop.f32.mrf.mxu1 }
 0x610   :  { %v3541_v33 = vpop.f32.mrf.mxu1 }
 0x626   :  { %v2109_v36 = vpop.f32.mrf.mxu1 }
 0x627   :  { %3619 = vrcp.f32 %v2109_v36  ;;  %v5176_v36 = vld [vmem:[%s5388_s5 + $0x1e8] sm:$0x3f] }
 0x628   :  { %v3568_v22 = vpop.f32.mrf.mxu1  ;;  %v2520_v54 = vrot.slane %v5176_v36, %v3947_v8 }
 0x634   :  { %v3620_v23 = vpop.eup %3619 }
 0x635   :  { %v5077_v17 = vmul.f32 %v3620_v23, %v2039_v29  ;;  %v2266_v29 = vrot.slane %v3018_v6, %v3947_v8 }
 0x67e   :  { %v2224_v59 = vpop.xlane.xlu1 %2223 }
 0x67f   :  { %v2228_v24 = vmul.f32 0.020833334, %v2224_v59 }
 0x681   :  { %v2236_v2 = vadd.f32 1e-12, %v2228_v24 }
 0x682   :  { %v2227_v31 = vpop.xlane.xlu0 %2226 }
 0x683   :  { %3621 = vrsqrt.f32 %v2236_v2  ;;  %v2229_v20 = vmul.f32 0.020833334, %v2227_v31 }
 0x685   :  { %v2237_v39 = vadd.f32 1e-12, %v2229_v20 }
 0x687   :  { %3623 = vrsqrt.f32 %v2237_v39  ;;  %v3043_v39 = vld [vmem:[%s5389_s4 + $0xc8] sm:$0xff] }
 0x690   :  { %v3622_v16 = vpop.eup %3621 }
 0x691   :  { %v2240_v27 = vmul.f32 %v3622_v16, %v2234_v47  ;;  %v3041_v47 = vld [vmem:[%s5389_s4 + $0xb8] sm:$0xff]  ;;  %v3039_v16 = vld [vmem:[%s5389_s4 + $0xa8] sm:$0xff] }
 0x693   :  { %v5123_v45 = vadd.f32 %v2245_v10, %v2240_v27  ;;  %v3038_v27 = vld [vmem:[%s5389_s4 + $0xa0] sm:$0xff] }
 0x694   :  { %v3624_v5 = vpop.eup %3623 }
 0x695   :  { %3019 = vmatmul.mubr.msk.f32.vlgmr.msra.gmra.mxu1 %vm109_vm0, %v5123_v45  ;;  %v2241_v30 = vmul.f32 %v3624_v5, %v2235_v26  ;;  %v3037_v26 = vld [vmem:[%s5389_s4 + $0x98] sm:$0xff]  ;;  %v3036_v5 = vld [vmem:[%s5389_s4 + $0x90] sm:$0xff] }
 0x696   :  { %3585 = vmatpush3.msra.mxu1 %v5032_v46  ;;  %2349 = vmatprep.mubr.f32.mxu1 %v3654_v3 }
 0x697   :  { %3586 = vmatprep.subr.mxu1 %v3028_v32  ;;  %v5135_v34 = vadd.f32 %v2245_v10, %v2241_v30  ;;  %v3040_v10 = vld [vmem:[%s5389_s4 + $0xb0] sm:$0xff]  ;;  %v3034_v30 = vld [vmem:[%s5389_s4 + $0x80] sm:$0xff] }
 0x698   :  { %3587 = vmatpush3.msra.mxu1 %v3028_v32  ;;  %v3035_v32 = vld [vmem:[%s5389_s4 + $0x88] sm:$0xff] }
 0x699   :  { %3588 = vmatprep.subr.mxu1 %v3027_v4  ;;  %3020 = vmatmul.mubr.msk.f32.gmra.mxu1 %vm109_vm0, %v5135_v34 }
 0x69a   :  { %3589 = vmatpush3.msra.mxu1 %v3027_v4  ;;  %3596 = vmatprep.mubr.msk.f32.mxu1 %vm109_vm0, %v4935_v56  ;;  %v2379_v56 = vld [vmem:[%s5388_s5 + $0xc8] sm:$0xff]  ;;  %v3033_v4 = vld [vmem:[%s5389_s4 + $0x78] sm:$0xff] }
 0x69b   :  { %3590 = vmatprep.subr.mxu1 %v3026_v38  ;;  %2451 = vmatpush2.msra.mxu0 %v2379_v56 }
 0x69c   :  { %3591 = vmatpush3.msra.mxu1 %v3026_v38  ;;  %2452 = vmatprep.subr.mxu0 %v3654_v3  ;;  %v3032_v38 = vld [vmem:[%s5389_s4 + $0x70] sm:$0xff] }
 0x69d   :  { %3592 = vmatprep.subr.mxu1 %v3025_v53  ;;  %2453 = vmatpush2.msra.mxu0 %v2378_v35 }
 0x69e   :  { %3593 = vmatpush3.msra.mxu1 %v3025_v53  ;;  %2454 = vmatprep.subr.mxu0 %v3654_v3 }
 0x69f   :  { %3594 = vmatprep.subr.mxu1 %v3024_v49  ;;  %2455 = vmatpush2.msra.mxu0 %v2377_v58 }
 0x6a0   :  { %3595 = vmatpush3.msra.mxu1 %v3024_v49  ;;  %2456 = vmatprep.subr.mxu0 %v3654_v3 }
 0x6a1   :  { %3597 = vmatmul.mubr.msk.f32.vlgmr.msra.gmra.mxu1 %vm109_vm0, %v5077_v17  ;;  %2457 = vmatpush2.msra.mxu0 %v2376_v44 }
 0x6a2   :  { %2738 = vmatprep.mubr.f32.mxu1 %v3654_v3  ;;  %2694 = vmatprep.subr.mxu1 %v3043_v39  ;;  %v3063_v39 = vld [vmem:[%s5388_s5 + $0x1a8] sm:$0xff] }
 0x6a3   :  { %2695 = vmatpush1.msra.mxu1 %v3042_v62  ;;  %v3044_v62 = vld [vmem:[%s5389_s4 + $0xd0] ss:$8 sm:$0x3]  ;;  %s3659_s4 = smov 48  }
 0x6a4   :  { %2696 = vmatprep.subr.mxu1 %v3041_v47  ;;  %v2661_v47 = vrot.slane %v3044_v62, %v3947_v8  ;;  %v2387_v8 = vrot.slane %v4956_v60, %v3963_v13 }
 0x6a5   :  { %2697 = vmatpush1.msra.mxu1 %v3040_v10  ;;  %v2665_v10 = vrot.slane %v3044_v62, %v3979_v21 }
 0x6a6   :  { %2698 = vmatprep.subr.mxu1 %v3039_v16 }
 0x6a7   :  { %2699 = vmatpush1.msra.mxu1 %v3038_v27 }
 0x6a8   :  { %2700 = vmatprep.subr.mxu1 %v3037_v26 }
 0x6a9   :  { %2701 = vmatpush1.msra.mxu1 %v3036_v5 }
 0x6aa   :  { %2702 = vmatprep.subr.mxu1 %v3035_v32 }
 0x6ab   :  { %2703 = vmatpush1.msra.mxu1 %v3034_v30 }
 0x6ac   :  { %2704 = vmatprep.subr.mxu1 %v3033_v4 }
 0x6ad   :  { %2705 = vmatpush1.msra.mxu1 %v3032_v38 }
 0x6ae   :  { %2789 = vmatprep.subr.mxu1 %v3654_v3 }
 0x755   :  { %v2345_v12 = vpop.f32.mrf.mxu1 }
 0x756   :  { %v2346_v33 = vadd.f32 %v2345_v12, %v2266_v29 }
 0x757   :  { %v2347_v28 = vpop.f32.mrf.mxu1 }
 0x758   :  { %v2348_v63 = vadd.f32 %v2347_v28, %v2270_v9  ;;  %v2356_v37 = vmax.f32 %v2346_v33, 0.0  ;;  %v2627_v33 = vrot.slane %v5176_v36, %v3979_v21  ;;  %v2782_v21 = vrot.slane %v5176_v36, %v3963_v13 }
 0x759   :  { %v2351_v46 = vpop.f32.mrf.mxu1 }
 0x75a   :  { %v2357_v40 = vmax.f32 %v2348_v63, 0.0  ;;  %v2352_v48 = vadd.f32 %v2351_v46, %v2266_v29 }
 0x75b   :  { %v2353_v41 = vpop.f32.mrf.mxu1 }
 0x75c   :  { %v2354_v52 = vadd.f32 %v2353_v41, %v2270_v9  ;;  %3021 = vmatprep.mubr.msk.f32.mxu0 %vm733_vm2, %v2357_v40  ;;  %v2358_v18 = vmax.f32 %v2352_v48, 0.0  ;;  %v2639_v48 = vrot.slane %v5176_v36, %v3955_v11  ;;  %v3060_v11 = vld [vmem:[%s5388_s5 + $0x190] sm:$0xff] }
 0x75d   :  { %2459 = vmatmul.mubr.f32.vlgmr.msra.gmra.mxu0 %v2356_v37 }
 0x75e   :  { %v2359_v22 = vmax.f32 %v2354_v52, 0.0 }
 0x760   :  { %3022 = vmatprep.mubr.msk.f32.mxu0 %vm733_vm2, %v2359_v22  ;;  %v3062_v22 = vld [vmem:[%s5388_s5 + $0x1a0] sm:$0xff] }
 0x761   :  { %v3598_v43 = vpop.f32.mrf.mxu1  ;;  %2464 = vmatmul.mubr.f32.gmra.mxu0 %v2358_v18 }
 0x762   :  { %v2599_v0 = vadd.f32 %v3598_v43, %v2520_v54  ;;  %v3059_v43 = vld [vmem:[%s5388_s5 + $0x188] sm:$0xff] }
 0x763   :  { %v2593_v57 = vpop.f32.mrf.mxu1 }
 0x764   :  { %v2603_v23 = vadd.f32 %v3652_v1, %v2599_v0  ;;  %v2594_v17 = vadd.f32 %v2593_v57, %v2520_v54  ;;  %v3061_v54 = vld [vmem:[%s5388_s5 + $0x198] sm:$0xff]  ;;  %v3058_v0 = vld [vmem:[%s5388_s5 + $0x180] sm:$0xff]  ;;  %v3056_v1 = vld [vmem:[%s5388_s5 + $0x170] sm:$0xff] }
 0x765   :  { %v3057_v57 = vld [vmem:[%s5388_s5 + $0x178] sm:$0xff] }
 0x766   :  { %v2602_v15 = vadd.f32 %v3653_v14, %v2594_v17  ;;  %v2607_v19 = vsel %vm109_vm0, %v2603_v23, 0.0  ;;  %v3054_v17 = vld [vmem:[%s5388_s5 + $0x160] sm:$0xff]  ;;  %v3053_v14 = vld [vmem:[%s5388_s5 + $0x158] sm:$0xff] }
 0x767   :  { %2608 = vadd.xlane.f32.xlu0 %v2607_v19  ;;  %v3051_v19 = vld [vmem:[%s5388_s5 + $0x148] sm:$0xff] }
 0x768   :  { %v2604_v61 = vsel %vm109_vm0, %v2602_v15, 0.0 }
 0x769   :  { %2605 = vadd.xlane.f32.xlu1 %v2604_v61  ;;  %v3050_v61 = vld [vmem:[%s5388_s5 + $0x140] sm:$0xff] }
 0x7f0   :  { %v2609_v25 = vpop.xlane.xlu0 %2608 }
 0x7f1   :  { %v2611_v42 = vmul.f32 0.020833334, %v2609_v25  ;;  %v3049_v25 = vld [vmem:[%s5388_s5 + $0x138] sm:$0xff] }
 0x7f2   :  { %v2606_v51 = vpop.xlane.xlu1 %2605 }
 0x7f3   :  { %v2613_v50 = vsub.f32 %v2603_v23, %v2611_v42  ;;  %v2610_v55 = vmul.f32 0.020833334, %v2606_v51  ;;  %v3055_v23 = vld [vmem:[%s5388_s5 + $0x168] sm:$0xff]  ;;  %v3048_v42 = vld [vmem:[%s5388_s5 + $0x130] sm:$0xff] }
 0x7f4   :  { %v3047_v51 = vld [vmem:[%s5388_s5 + $0x128] sm:$0xff] }
 0x7f5   :  { %v2612_v59 = vsub.f32 %v2602_v15, %v2610_v55  ;;  %v2615_v24 = vmul.f32 %v2613_v50, %v2613_v50  ;;  %v2629_v40 = vmul.f32 %v2627_v33, %v2613_v50  ;;  %v3052_v15 = vld [vmem:[%s5388_s5 + $0x150] sm:$0xff]  ;;  %v3070_v50 = vld [vmem:[%s5388_s5 + $0x1e0] sm:$0xff]  ;;  %v3069_v55 = vld [vmem:[%s5388_s5 + $0x1d8] sm:$0xff] }
 0x7f7   :  { %v2619_v2 = vsel %vm109_vm0, %v2615_v24, 0.0  ;;  %v2614_v31 = vmul.f32 %v2612_v59, %v2612_v59  ;;  %v2628_v63 = vmul.f32 %v2627_v33, %v2612_v59  ;;  %v3068_v59 = vld [vmem:[%s5388_s5 + $0x1d0] sm:$0xff]  ;;  %v3067_v24 = vld [vmem:[%s5388_s5 + $0x1c8] sm:$0xff] }
 0x7f8   :  { %2620 = vadd.xlane.f32.xlu0 %v2619_v2  ;;  %v3066_v2 = vld [vmem:[%s5388_s5 + $0x1c0] sm:$0xff] }
 0x7f9   :  { %v2616_v20 = vsel %vm109_vm0, %v2614_v31, 0.0  ;;  %v3065_v31 = vld [vmem:[%s5388_s5 + $0x1b8] sm:$0xff] }
 0x7fa   :  { %2617 = vadd.xlane.f32.xlu1 %v2616_v20  ;;  %v3064_v20 = vld [vmem:[%s5388_s5 + $0x1b0] sm:$0xff] }
 0x81d   :  { %v5229_v53 = vpop.f32.mrf.mxu0 }
 0x81f   :  { %v2462_v49 = vpop.f32.mrf.mxu0 }
 0x821   :  { %v5231_v56 = vpop.f32.mrf.mxu0 }
 0x823   :  { %v2467_v35 = vpop.f32.mrf.mxu0 }
 0x881   :  { %v2621_v58 = vpop.xlane.xlu0 %2620 }
 0x882   :  { %v2623_v44 = vmul.f32 0.020833334, %v2621_v58 }
 0x883   :  { %v2618_v6 = vpop.xlane.xlu1 %2617 }
 0x884   :  { %v2631_v29 = vadd.f32 1e-12, %v2623_v44  ;;  %v2622_v9 = vmul.f32 0.020833334, %v2618_v6  ;;  %v2461_v6 = vadd.f32 %v5229_v53, %v2387_v8 }
 0x886   :  { %v2630_v12 = vadd.f32 1e-12, %v2622_v9  ;;  %3625 = vrsqrt.f32 %v2631_v29 }
 0x888   :  { %3627 = vrsqrt.f32 %v2630_v12 }
 0x893   :  { %v3626_v28 = vpop.eup %3625 }
 0x894   :  { %v2635_v52 = vmul.f32 %v3626_v28, %v2629_v40  ;;  %v2469_v28 = vadd.f32 %v2461_v6, %v5123_v45 }
 0x895   :  { %v3628_v46 = vpop.eup %3627 }
 0x896   :  { %v2634_v37 = vmul.f32 %v3628_v46, %v2628_v63  ;;  %v5248_v18 = vadd.f32 %v2639_v48, %v2635_v52  ;;  %v2466_v63 = vadd.f32 %v5231_v56, %v2387_v8  ;;  %v2471_v52 = vsel %vm109_vm0, %v2469_v28, 0.0 }
 0x898   :  { %v5237_v41 = vadd.f32 %v2639_v48, %v2634_v37  ;;  %v2470_v13 = vadd.f32 %v2466_v63, %v5135_v34 }
 0x89a   :  { %3045 = vmatmul.mubr.msk.f32.vlgmr.msra.gmra.mxu1 %vm109_vm0, %v5237_v41 }
 0x89b   :  { %2744 = vmatprep.mubr.f32.mxu1 %v3654_v3  ;;  %2790 = vmatpush1.msra.mxu1 %v3062_v22 }
 0x89c   :  { %2791 = vmatprep.subr.mxu1 %v3654_v3 }
 0x89d   :  { %2792 = vmatpush1.msra.mxu1 %v3061_v54 }
 0x89e   :  { %3046 = vmatmul.mubr.msk.f32.gmra.mxu1 %vm109_vm0, %v5248_v18  ;;  %2793 = vmatprep.subr.mxu1 %v3654_v3 }
 0x89f   :  { %2794 = vmatpush1.msra.mxu1 %v3060_v11 }
 0x8a0   :  { %2795 = vmatprep.subr.mxu1 %v3654_v3 }
 0x8a1   :  { %2796 = vmatpush1.msra.mxu1 %v3059_v43 }
 0x8a2   :  { %2797 = vmatprep.subr.mxu1 %v3654_v3 }
 0x8a3   :  { %2798 = vmatpush1.msra.mxu1 %v3058_v0 }
 0x8a4   :  { %2799 = vmatprep.subr.mxu1 %v3654_v3 }
 0x8a5   :  { %2800 = vmatpush1.msra.mxu1 %v3057_v57 }
 0x8a6   :  { %2801 = vmatprep.subr.mxu1 %v3654_v3 }
 0x8a7   :  { %2802 = vmatpush1.msra.mxu1 %v3056_v1 }
 0x8a8   :  { %2803 = vmatprep.subr.mxu1 %v3654_v3 }
 0x8a9   :  { %2804 = vmatpush1.msra.mxu1 %v3055_v23 }
 0x8aa   :  { %2805 = vmatprep.subr.mxu1 %v3654_v3 }
 0x8ab   :  { %2806 = vmatpush1.msra.mxu1 %v3054_v17 }
 0x8ac   :  { %2807 = vmatprep.subr.mxu1 %v3654_v3 }
 0x8ad   :  { %2808 = vmatpush1.msra.mxu1 %v3053_v14 }
 0x8ae   :  { %2809 = vmatprep.subr.mxu1 %v3654_v3 }
 0x8af   :  { %2810 = vmatpush1.msra.mxu1 %v3052_v15 }
 0x8b0   :  { %2811 = vmatprep.subr.mxu1 %v3654_v3 }
 0x8b1   :  { %2812 = vmatpush1.msra.mxu1 %v3051_v19 }
 0x8b2   :  { %2813 = vmatprep.subr.mxu1 %v3654_v3 }
 0x8b3   :  { %2814 = vmatpush1.msra.mxu1 %v3050_v61 }
 0x8b4   :  { %2815 = vmatprep.subr.mxu1 %v3654_v3 }
 0x8b5   :  { %2816 = vmatpush1.msra.mxu1 %v3049_v25 }
 0x8b6   :  { %2817 = vmatprep.subr.mxu1 %v3654_v3 }
 0x8b7   :  { %2818 = vmatpush1.msra.mxu1 %v3048_v42 }
 0x8b8   :  { %2819 = vmatprep.subr.mxu1 %v3654_v3 }
 0x8b9   :  { %2820 = vmatpush1.msra.mxu1 %v3047_v51 }
 0x8ba   :  { %2837 = vmatprep.subr.mxu1 %v3654_v3 }
 0x8bb   :  { %2838 = vmatpush2.msra.mxu1 %v3070_v50 }
 0x8bc   :  { %2839 = vmatprep.subr.mxu1 %v3654_v3 }
 0x8bd   :  { %2840 = vmatpush2.msra.mxu1 %v3069_v55 }
 0x8be   :  { %2841 = vmatprep.subr.mxu1 %v3654_v3 }
 0x8bf   :  { %2842 = vmatpush2.msra.mxu1 %v3068_v59 }
 0x8c0   :  { %2843 = vmatprep.subr.mxu1 %v3654_v3 }
 0x8c1   :  { %2844 = vmatpush2.msra.mxu1 %v3067_v24 }
 0x8c2   :  { %2845 = vmatprep.subr.mxu1 %v3654_v3 }
 0x8c3   :  { %2846 = vmatpush2.msra.mxu1 %v3066_v2 }
 0x8c4   :  { %2847 = vmatprep.subr.mxu1 %v3654_v3 }
 0x8c5   :  { %2848 = vmatpush2.msra.mxu1 %v3065_v31 }
 0x8c6   :  { %2849 = vmatprep.subr.mxu1 %v3654_v3 }
 0x8c7   :  { %2850 = vmatpush2.msra.mxu1 %v3064_v20 }
 0x8c8   :  { %2851 = vmatprep.subr.mxu1 %v3654_v3 }
 0x8c9   :  { %2852 = vmatpush2.msra.mxu1 %v3063_v39 }
 0x95a   :  { %v2740_v16 = vpop.f32.mrf.mxu1 }
 0x95b   :  { %v2741_v27 = vadd.f32 %v2740_v16, %v2661_v47 }
 0x95c   :  { %v2742_v26 = vpop.f32.mrf.mxu1 }
 0x95d   :  { %v2743_v5 = vadd.f32 %v2742_v26, %v2665_v10  ;;  %v2751_v3 = vmax.f32 %v2741_v27, 0.0 }
 0x95e   :  { %v2746_v32 = vpop.f32.mrf.mxu1 }
 0x95f   :  { %v2752_v30 = vmax.f32 %v2743_v5, 0.0  ;;  %v2747_v4 = vadd.f32 %v2746_v32, %v2661_v47  ;;  %v2493_v47 = vsub.s32 4, %v3944_v7  ;;  %v2505_v5 = vsub.s32 5, %v3944_v7 }
 0x960   :  { %v2748_v38 = vpop.f32.mrf.mxu1 }
 0x961   :  { %v2749_v49 = vadd.f32 %v2748_v38, %v2665_v10  ;;  %3071 = vmatprep.mubr.msk.f32.mxu1 %vm733_vm2, %v2752_v30  ;;  %v2753_v58 = vmax.f32 %v2747_v4, 0.0  ;;  %v2889_v26 = vrot.slane %v5176_v36, %v2493_v47  ;;  %v2494_v30 = vrot.slane %v4956_v60, %v2493_v47 }
 0x962   :  { %2854 = vmatmul.mubr.f32.vlgmr.msra.gmra.mxu1 %v2751_v3  ;;  %v2901_v3 = vrot.slane %v5176_v36, %v2505_v5 }
 0x963   :  { %v2754_v35 = vmax.f32 %v2749_v49, 0.0 }
 0x965   :  { %3072 = vmatprep.mubr.msk.f32.mxu1 %vm733_vm2, %v2754_v35 }
 0x966   :  { %2859 = vmatmul.mubr.f32.gmra.mxu1 %v2753_v58  ;;  %v2506_v58 = vrot.slane %v4956_v60, %v2505_v5 }
 0xa22   :  { %v2855_v44 = vpop.f32.mrf.mxu1 }
 0xa23   :  { %v2856_v29 = vadd.f32 %v2855_v44, %v2782_v21 }
 0xa24   :  { %v2857_v9 = vpop.f32.mrf.mxu1 }
 0xa25   :  { %v2864_v12 = vadd.f32 %v2856_v29, %v5237_v41  ;;  %v2474_v41 = vsel %vm109_vm0, %v2470_v13, 0.0 }
 0xa26   :  { %v2860_v33 = vpop.f32.mrf.mxu1 }
 0xa27   :  { %v2861_v46 = vadd.f32 %v2860_v33, %v2782_v21  ;;  %v2866_v40 = vsel %vm109_vm0, %v2864_v12, 0.0 }
 0xa28   :  { %v2862_v37 = vpop.f32.mrf.mxu1  ;;  %2867 = vadd.xlane.f32.xlu1 %v2866_v40 }
 0xa29   :  { %v2865_v48 = vadd.f32 %v2861_v46, %v5248_v18 }
 0xa2b   :  { %v2869_v53 = vsel %vm109_vm0, %v2865_v48, 0.0 }
 0xa2c   :  { %2870 = vadd.xlane.f32.xlu0 %v2869_v53  ;;  %2472 = vadd.xlane.f32.xlu1 %v2471_v52 }
 0xa30   :  { %2475 = vadd.xlane.f32.xlu0 %v2474_v41 }
 0xab1   :  { %v2868_v45 = vpop.xlane.xlu1 %2867 }
 0xab2   :  { %v2872_v56 = vmul.f32 0.020833334, %v2868_v45 }
 0xab4   :  { %v2874_v22 = vsub.f32 %v2864_v12, %v2872_v56 }
 0xab5   :  { %v2871_v54 = vpop.xlane.xlu0 %2870  ;;  %v2473_v11 = vpop.xlane.xlu1 %2472 }
 0xab6   :  { %v2873_v43 = vmul.f32 0.020833334, %v2871_v54  ;;  %v2477_v0 = vmul.f32 0.020833334, %v2473_v11  ;;  %v2876_v57 = vmul.f32 %v2874_v22, %v2874_v22  ;;  %v2890_v32 = vmul.f32 %v2889_v26, %v2874_v22 }
 0xab8   :  { %v2875_v18 = vsub.f32 %v2865_v48, %v2873_v43  ;;  %v2479_v1 = vsub.f32 %v2469_v28, %v2477_v0  ;;  %v2878_v34 = vsel %vm109_vm0, %v2876_v57, 0.0 }
 0xab9   :  { %2879 = vadd.xlane.f32.xlu1 %v2878_v34  ;;  %v2476_v23 = vpop.xlane.xlu0 %2475 }
 0xaba   :  { %v2478_v17 = vmul.f32 0.020833334, %v2476_v23  ;;  %v2481_v14 = vmul.f32 %v2479_v1, %v2479_v1  ;;  %v2877_v15 = vmul.f32 %v2875_v18, %v2875_v18  ;;  %v2495_v49 = vmul.f32 %v2494_v30, %v2479_v1 }
 0xabb   :  { %v2891_v21 = vmul.f32 %v2889_v26, %v2875_v18 }
 0xabc   :  { %v2480_v19 = vsub.f32 %v2470_v13, %v2478_v17  ;;  %v2483_v61 = vsel %vm109_vm0, %v2481_v14, 0.0  ;;  %v2881_v25 = vsel %vm109_vm0, %v2877_v15, 0.0 }
 0xabd   :  { %2484 = vadd.xlane.f32.xlu1 %v2483_v61  ;;  %2882 = vadd.xlane.f32.xlu0 %v2881_v25 }
 0xabe   :  { %v2482_v42 = vmul.f32 %v2480_v19, %v2480_v19  ;;  %v2496_v9 = vmul.f32 %v2494_v30, %v2480_v19 }
 0xac0   :  { %v2486_v51 = vsel %vm109_vm0, %v2482_v42, 0.0 }
 0xac1   :  { %2487 = vadd.xlane.f32.xlu0 %v2486_v51 }
 0xb42   :  { %v2880_v50 = vpop.xlane.xlu1 %2879 }
 0xb43   :  { %v2884_v55 = vmul.f32 0.020833334, %v2880_v50 }
 0xb45   :  { %v2892_v59 = vadd.f32 1e-12, %v2884_v55 }
 0xb46   :  { %v2485_v24 = vpop.xlane.xlu1 %2484  ;;  %v2883_v31 = vpop.xlane.xlu0 %2882 }
 0xb47   :  { %3629 = vrsqrt.f32 %v2892_v59  ;;  %v2489_v2 = vmul.f32 0.020833334, %v2485_v24  ;;  %v2885_v20 = vmul.f32 0.020833334, %v2883_v31 }
 0xb49   :  { %v2497_v39 = vadd.f32 1e-12, %v2489_v2  ;;  %v2893_v62 = vadd.f32 1e-12, %v2885_v20 }
 0xb4a   :  { %v2488_v10 = vpop.xlane.xlu0 %2487 }
 0xb4b   :  { %3631 = vrsqrt.f32 %v2497_v39  ;;  %v2490_v16 = vmul.f32 0.020833334, %v2488_v10 }
 0xb4c   :  { %3633 = vrsqrt.f32 %v2893_v62 }
 0xb4d   :  { %v2498_v27 = vadd.f32 1e-12, %v2490_v16 }
 0xb4f   :  { %3635 = vrsqrt.f32 %v2498_v27 }
 0xb54   :  { %v3630_v4 = vpop.eup %3629 }
 0xb55   :  { %v2896_v38 = vmul.f32 %v3630_v4, %v2890_v32 }
 0xb57   :  { %v2902_v35 = vadd.f32 %v2901_v3, %v2896_v38 }
 0xb58   :  { %v3632_v8 = vpop.eup %3631 }
 0xb59   :  { %v3634_v44 = vpop.eup %3633  ;;  %2906 = vrot.lane.b32.xlu1 %v2902_v35, %s3659_s4  ;;  %v2501_v6 = vmul.f32 %v3632_v8, %v2495_v49 }
 0xb5a   :  { %v2897_v29 = vmul.f32 %v3634_v44, %v2891_v21 }
 0xb5b   :  { %v2507_v7 = vadd.f32 %v2506_v58, %v2501_v6 }
 0xb5c   :  { %v2903_v12 = vadd.f32 %v2901_v3, %v2897_v29  ;;  %v3636_v33 = vpop.eup %3635 }
 0xb5d   :  { %v2502_v28 = vmul.f32 %v3636_v33, %v2496_v9 }
 0xb5e   :  { %2908 = vrot.lane.b32.xlu0 %v2903_v12, %s3659_s4 }
 0xb5f   :  { %v2508_v36 = vadd.f32 %v2506_v58, %v2502_v28 }
 0xbcb   :  { %v2907_v63 = vpop.permute.xlu1 %2906 }
 0xbcc   :  { %v2912_v46 = vsel %vm109_vm0, %v2507_v7, %v2907_v63 }
 0xbcd   :  { %2914 = vst.msk [vmem:[%s5390_s8] sm:$0xff] %vm746_vm3, %v2912_v46 }
 0xbd0   :  { %v2909_v60 = vpop.permute.xlu0 %2908 }
 0xbd1   :  { %v2913_v40 = vsel %vm109_vm0, %v2508_v36, %v2909_v60 }
 0xbd2   :  { %2915 = vst.msk [vmem:[%s5390_s8 + $0x8] sm:$0xff] %vm746_vm3, %v2913_v40 }

</bundles_post_ra>
